<compile_context>
chip_gen: v7x
topology: tpu7x:2x2x1
jax: 0.10.0
libtpu: 0.0.40
codegen_flags: <defaults>
</compile_context>

<pallas_src>
import jax
import jax.numpy as jnp
from jax.experimental import pallas as pl
from jax.experimental.pallas import tpu as pltpu


# ----- shapes consistent with the module (n_hidden_layers=2, traj_input=False) -----
N_STATE = 16        # self.n  -> d_h_in = n, so x has 3*n features
LAYER_WIDTH = 32    # H (layer_width)
BATCH = 8


def _make_kernel(n, c1, c2, H, tb):
    """Whole forward pass for one batch tile, inside a single Pallas kernel."""
    # Row offsets into the packed 32-column weight slab (must match hl_forward).
    r_fc_in = 0
    r_fc_h0 = r_fc_in + n
    r_fc_h1 = r_fc_h0 + H
    r_base_fc = r_fc_h1 + H
    r_fcc_in = r_base_fc + n
    r_fcc_h0 = r_fcc_in + c2
    r_fcc_h1 = r_fcc_h0 + H
    r_base_fcc = r_fcc_h1 + H

    f32 = jnp.float32

    def kernel(xt_ref, xz_ref, xd_ref, w32_ref, w8_ref, bias_ref, o_ref):
        W32 = w32_ref[...]
        W8 = w8_ref[...]
        Bv = bias_ref[...]

        # E-network (fc_*) weights, pre-transposed to (in, out).
        fc_in_t = W32[r_fc_in:r_fc_in + n, :]
        fc_h0_t = W32[r_fc_h0:r_fc_h0 + H, :]
        fc_h1_t = W32[r_fc_h1:r_fc_h1 + H, :]
        base_fc_t = W32[r_base_fc:r_base_fc + n, :]        # (fc_h0.W @ fc_in.W)^T
        # N-network (fcc_*) weights.
        fcc_in_t = W32[r_fcc_in:r_fcc_in + c2, :]
        fcc_h0_t = W32[r_fcc_h0:r_fcc_h0 + H, :]
        fcc_h1_t = W32[r_fcc_h1:r_fcc_h1 + H, :]
        base_fcc_t = W32[r_base_fcc:r_base_fcc + c2, :]    # (fcc_h0.W @ fcc_in.W)^T
        fc_out_t = W8[0:H, :]
        fcc_out_t = W8[H:2 * H, :]

        b_fc_in = Bv[0:1, :]
        b_fc_h0 = Bv[1:2, :]
        b_fc_h1 = Bv[2:3, :]
        b_fc_out = Bv[3:4, 0:c2]
        b_fcc_in = Bv[4:5, :]
        b_fcc_h0 = Bv[5:6, :]
        b_fcc_h1 = Bv[6:7, :]
        b_fcc_out = Bv[7:8, 0:c2]

        def lin(h, Wt, b):                                 # nn.Linear with W^T passed
            return jnp.dot(h, Wt, preferred_element_type=f32) + b

        def relu(z):
            return jnp.maximum(z, 0.0)

        def gmat(g, Wt):
            # (B, I, K) x (K, O) -> (B, I, O) as ONE 2-D MXU matmul (no broadcast_to,
            # no per-sample batched matmuls).  Leading dims collapse is tile-aligned
            # (I is a multiple of 8, minor dim unchanged).
            Bg, Ig, Kg = g.shape
            r = jnp.dot(g.reshape(Bg * Ig, Kg), Wt, preferred_element_type=f32)
            return r.reshape(Bg, Ig, Wt.shape[1])

        def fwd_E(x):
            h0 = lin(x, fc_in_t, b_fc_in)
            h1 = relu(lin(h0, fc_h0_t, b_fc_h0))
            h2 = relu(lin(h1, fc_h1_t, b_fc_h1))
            return h1, h2, lin(h2, fc_out_t, b_fc_out)

        def fwd_N(x):
            h0 = lin(x, fcc_in_t, b_fcc_in)
            h1 = relu(lin(h0, fcc_h0_t, b_fcc_h0))
            h2 = relu(lin(h1, fcc_h1_t, b_fcc_h1))
            return h1, h2, lin(h2, fcc_out_t, b_fcc_out)

        def jac_E(h1, h2):
            # Transposed per-sample Jacobian of the fc_* MLP: (B, n, c2).
            # Keeps the original module's "offset" delta convention
            # (delta_k uses fc_hidden[k] applied to h[k+1]).
            d0 = (lin(h1, fc_h0_t, b_fc_h0) > 0.0).astype(f32)
            d1 = (lin(h2, fc_h1_t, b_fc_h1) > 0.0).astype(f32)
            g = base_fc_t[None, :, :] * d0[:, None, :]          # (B, n, H)
            g = gmat(g, fc_h1_t) * d1[:, None, :]
            return gmat(g, fc_out_t)                            # (B, n, c2)

        def jac_N(h1, h2):
            # Transposed per-sample Jacobian of the fcc_* MLP: (B, c2, c2).
            d0 = (lin(h1, fcc_h0_t, b_fcc_h0) > 0.0).astype(f32)
            d1 = (lin(h2, fcc_h1_t, b_fcc_h1) > 0.0).astype(f32)
            g = base_fcc_t[None, :, :] * d0[:, None, :]         # (B, c2, H)
            g = gmat(g, fcc_h1_t) * d1[:, None, :]
            return gmat(g, fcc_out_t)                           # (B, c2, c2)

        def st_full(xx):
            # s/t network; Jacobian kept transposed: returns ((B, d_in, c2), (B, c2)).
            h1e, h2e, E_out = fwd_E(xx)
            Eg = jac_E(h1e, h2e)
            h1n, h2n, N1_out = fwd_N(E_out)
            N1g = jac_N(h1n, h2n)                 # N2 == N1 (same net, same input)
            NE = jnp.einsum('bim,bmo->bio', Eg, N1g, preferred_element_type=f32)
            F1g = Eg * N1_out[:, None, :] + NE + NE * E_out[:, None, :]
            F1_out = E_out * N1_out + N1_out
            h1m, h2m, N3_out = fwd_N(F1_out)
            N3g = jac_N(h1m, h2m)
            NF = jnp.einsum('bim,bmo->bio', F1g, N3g, preferred_element_type=f32)
            F2g = Eg + NF + NF * F1_out[:, None, :]
            F2_out = E_out + F1_out * N3_out
            return F2g, F2_out

        def st_out_only(xx):
            # decoder only consumes s_out/t_out; all Jacobian work is dead code here.
            _, _, E_out = fwd_E(xx)
            _, _, N1_out = fwd_N(E_out)
            F1_out = E_out * N1_out + N1_out
            _, _, N3_out = fwd_N(F1_out)
            return E_out + F1_out * N3_out

        xt = xt_ref[...]                                   # (tb, n)
        xz = xz_ref[...]                                   # (tb, n)
        xd = xd_ref[...]                                   # (tb, n)

        # --- fused calcu_h on [xt ; x_zero]: one serial st_network chain ---
        x_both = jnp.concatenate([xt, xz], axis=0)         # (2*tb, n)
        x2_both = x_both[:, c1:]                           # (2*tb, c2)
        sg_t, s_out = st_full(x_both)                      # (2*tb, n, c2), (2*tb, c2)
        es = jnp.exp(s_out)
        scale = es * x2_both + 1.0                         # s*es*x2 + t, with t == s
        eye = (jax.lax.broadcasted_iota(jnp.int32, (c2, c2), 0)
               == jax.lax.broadcasted_iota(jnp.int32, (c2, c2), 1)).astype(f32)
        jac3_t = sg_t[:, :c1, :] * scale[:, None, :]                        # (2tb,c1,c2)
        jac4_t = sg_t[:, c1:, :] * scale[:, None, :] + eye[None, :, :] * es[:, None, :]

        # xt half -> h_out / h_dot; x_zero half -> Jacobian row norms.
        x1_h = xt[:, :c1]
        y2_h = es[:tb] * xt[:, c1:] + s_out[:tb]
        h_out = jnp.concatenate([x1_h, y2_h], axis=1)      # (tb, n) decoder input

        xd1 = xd[:, :c1]
        xd2 = xd[:, c1:]
        # full jacobian is [[I, 0], [jac3, jac4]]; top block contributes xd1 directly
        hdot_bot = (jnp.sum(jac3_t[:tb] * xd1[:, :, None], axis=1)
                    + jnp.sum(jac4_t[:tb] * xd2[:, :, None], axis=1))       # (tb, c2)

        znorm_bot = jnp.sqrt(jnp.sum(jac3_t[tb:] * jac3_t[tb:], axis=1)
                             + jnp.sum(jac4_t[tb:] * jac4_t[tb:], axis=1))  # (tb, c2)

        # --- decoder(h_out): forward-only s/t network ---
        s_dec = st_out_only(h_out)                         # (tb, c2)
        xhat2 = (y2_h - s_dec) * jnp.exp(-s_dec)

        # --- direct sub-slice stores: y = [h_out | h_dot | znorm | x_hat] ---
        o_ref[:, 0:c1] = x1_h
        o_ref[:, c1:n] = y2_h
        o_ref[:, n:n + c1] = xd1
        o_ref[:, n + c1:2 * n] = hdot_bot
        o_ref[:, 2 * n:2 * n + c1] = jnp.ones((tb, c1), dtype=f32)
        o_ref[:, 2 * n + c1:3 * n] = znorm_bot
        o_ref[:, 3 * n:3 * n + c1] = x1_h
        o_ref[:, 3 * n + c1:4 * n] = xhat2

    return kernel


def init_params(key, n, H):
    """Parameters in the PyTorch nn.Linear convention: weight (out, in), bias (out,)."""
    c2 = n - n // 2
    names_shapes = [
        ("fc_in_w", (H, n)), ("fc_in_b", (H,)),
        ("fc_h0_w", (H, H)), ("fc_h0_b", (H,)),
        ("fc_h1_w", (H, H)), ("fc_h1_b", (H,)),
        ("fc_out_w", (c2, H)), ("fc_out_b", (c2,)),
        ("fcc_in_w", (H, c2)), ("fcc_in_b", (H,)),
        ("fcc_h0_w", (H, H)), ("fcc_h0_b", (H,)),
        ("fcc_h1_w", (H, H)), ("fcc_h1_b", (H,)),
        ("fcc_out_w", (c2, H)), ("fcc_out_b", (c2,)),
    ]
    keys = jax.random.split(key, len(names_shapes))
    params = {}
    for (name, shape), k in zip(names_shapes, keys):
        fan_in = shape[-1]
        params[name] = (jax.random.normal(k, shape, dtype=jnp.float32)
                        * (0.5 / jnp.sqrt(jnp.float32(fan_in))))
    return params


def hl_forward(x, params, *, n=N_STATE, layer_width=LAYER_WIDTH, tb=None):
    """Forward pass of HLAttentionCouplingDiffeomorphismNet (traj_input=False)."""
    B, feat = x.shape
    assert feat == 3 * n, "forward expects x with 3*n features (xt | xtdot | x_zero)"
    c1 = n // 2
    c2 = n - c1
    H = layer_width
    assert c1 % 8 == 0 and c2 % 8 == 0 and H % 8 == 0, "packed slabs need 8-aligned dims"

    if tb is None:
        # Fill the MXU M-dim; for larger batches this also yields grid >= 2 so v7x
        # can shard the "parallel" batch axis across its two TensorCores.
        tb = B if B <= 128 else 128
    assert B % tb == 0 and tb % 8 == 0

    f32 = jnp.float32
    p = {k: jnp.asarray(v, dtype=f32) for k, v in params.items()}

    def T(w):
        return jnp.transpose(w)            # (out, in) -> (in, out)

    # Weight-only products precomputed host-side (kept out of the kernel's chain).
    base_fc_t = T(p["fc_in_w"]) @ T(p["fc_h0_w"])      # (n, H)  = (fc_h0.W @ fc_in.W)^T
    base_fcc_t = T(p["fcc_in_w"]) @ T(p["fcc_h0_w"])   # (c2, H) = (fcc_h0.W @ fcc_in.W)^T

    # Packed parameter slabs (order must match _make_kernel's row offsets).
    w32 = jnp.concatenate([
        T(p["fc_in_w"]), T(p["fc_h0_w"]), T(p["fc_h1_w"]), base_fc_t,
        T(p["fcc_in_w"]), T(p["fcc_h0_w"]), T(p["fcc_h1_w"]), base_fcc_t,
    ], axis=0)                                         # (2n + 4H + 2c2, H)
    w8 = jnp.concatenate([T(p["fc_out_w"]), T(p["fcc_out_w"])], axis=0)   # (2H, c2)

    def brow(b):
        b = b.reshape(1, -1)
        return jnp.pad(b, ((0, 0), (0, H - b.shape[1])))
    bias = jnp.concatenate([
        brow(p["fc_in_b"]), brow(p["fc_h0_b"]), brow(p["fc_h1_b"]), brow(p["fc_out_b"]),
        brow(p["fcc_in_b"]), brow(p["fcc_h0_b"]), brow(p["fcc_h1_b"]), brow(p["fcc_out_b"]),
    ], axis=0)                                         # (8, H)

    x = x.astype(f32)
    xt = x[:, :n]
    xd = x[:, n:2 * n]
    xz = x[:, 2 * n:3 * n]

    kernel = _make_kernel(n, c1, c2, H, tb)
    act_spec = pl.BlockSpec((tb, n), lambda i: (i, 0))

    return pl.pallas_call(
        kernel,
        out_shape=jax.ShapeDtypeStruct((B, 4 * n), f32),
        grid=(B // tb,),
        in_specs=[
            act_spec, act_spec, act_spec,
            pl.BlockSpec(w32.shape, lambda i: (0, 0)),
            pl.BlockSpec(w8.shape, lambda i: (0, 0)),
            pl.BlockSpec(bias.shape, lambda i: (0, 0)),
        ],
        out_specs=pl.BlockSpec((tb, 4 * n), lambda i: (i, 0)),
        compiler_params=pltpu.CompilerParams(dimension_semantics=("parallel",)),
    )(xt, xz, xd, w32, w8, bias)


if __name__ == "__main__":
    key = jax.random.PRNGKey(0)
    kx, kp = jax.random.split(key)
    x = jax.random.normal(kx, (BATCH, 3 * N_STATE), dtype=jnp.float32) * 0.5
    params = init_params(kp, N_STATE, LAYER_WIDTH)

    y = hl_forward(x, params)
    y = jax.block_until_ready(y)

    assert y.shape == (BATCH, 4 * N_STATE), y.shape
    assert bool(jnp.all(jnp.isfinite(y)))
    print("KERNEL_OK")
</pallas_src>

<mosaic_0001>
module attributes {stable_mosaic.version = 11 : i64} {
  func.func @kernel(%arg0: i32, %arg1: memref<8x16xf32, #tpu.memory_space<vmem>>, %arg2: memref<8x16xf32, #tpu.memory_space<vmem>>, %arg3: memref<8x16xf32, #tpu.memory_space<vmem>>, %arg4: memref<176x32xf32, #tpu.memory_space<vmem>>, %arg5: memref<64x8xf32, #tpu.memory_space<vmem>>, %arg6: memref<8x32xf32, #tpu.memory_space<vmem>>, %arg7: memref<8x64xf32, #tpu.memory_space<vmem>>) attributes {dimension_semantics = [#tpu.dimension_semantics<parallel>], iteration_bounds = array<i64: 1>, scalar_prefetch = 0 : i64, scratch_operands = 0 : i64, tpu.core_type = #tpu.core_type<tc>, window_params = [{transform_indices = @transform_0, window_bounds = array<i64: 8, 16>}, {transform_indices = @transform_1, window_bounds = array<i64: 8, 16>}, {transform_indices = @transform_2, window_bounds = array<i64: 8, 16>}, {pipeline_mode = #tpu.pipeline_mode<synchronous>, transform_indices = @transform_3, window_bounds = array<i64: 176, 32>}, {pipeline_mode = #tpu.pipeline_mode<synchronous>, transform_indices = @transform_4, window_bounds = array<i64: 64, 8>}, {pipeline_mode = #tpu.pipeline_mode<synchronous>, transform_indices = @transform_5, window_bounds = array<i64: 8, 32>}, {transform_indices = @transform_6, window_bounds = array<i64: 8, 64>}]} {
    %c0 = arith.constant 0 : index
    %c0_0 = arith.constant 0 : index
    %0 = vector.load %arg4[%c0, %c0_0] : memref<176x32xf32, #tpu.memory_space<vmem>>, vector<176x32xf32>
    %c0_1 = arith.constant 0 : index
    %c0_2 = arith.constant 0 : index
    %1 = vector.load %arg5[%c0_1, %c0_2] : memref<64x8xf32, #tpu.memory_space<vmem>>, vector<64x8xf32>
    %c0_3 = arith.constant 0 : index
    %c0_4 = arith.constant 0 : index
    %2 = vector.load %arg6[%c0_3, %c0_4] : memref<8x32xf32, #tpu.memory_space<vmem>>, vector<8x32xf32>
    %3 = vector.extract_strided_slice %0 {offsets = [0, 0], sizes = [16, 32], strides = [1, 1]} : vector<176x32xf32> to vector<16x32xf32>
    %4 = vector.extract_strided_slice %0 {offsets = [16, 0], sizes = [32, 32], strides = [1, 1]} : vector<176x32xf32> to vector<32x32xf32>
    %5 = vector.extract_strided_slice %0 {offsets = [48, 0], sizes = [32, 32], strides = [1, 1]} : vector<176x32xf32> to vector<32x32xf32>
    %6 = vector.extract_strided_slice %0 {offsets = [80, 0], sizes = [16, 32], strides = [1, 1]} : vector<176x32xf32> to vector<16x32xf32>
    %7 = vector.extract_strided_slice %0 {offsets = [96, 0], sizes = [8, 32], strides = [1, 1]} : vector<176x32xf32> to vector<8x32xf32>
    %8 = vector.extract_strided_slice %0 {offsets = [104, 0], sizes = [32, 32], strides = [1, 1]} : vector<176x32xf32> to vector<32x32xf32>
    %9 = vector.extract_strided_slice %0 {offsets = [136, 0], sizes = [32, 32], strides = [1, 1]} : vector<176x32xf32> to vector<32x32xf32>
    %10 = vector.extract_strided_slice %0 {offsets = [168, 0], sizes = [8, 32], strides = [1, 1]} : vector<176x32xf32> to vector<8x32xf32>
    %11 = vector.extract_strided_slice %1 {offsets = [0, 0], sizes = [32, 8], strides = [1, 1]} : vector<64x8xf32> to vector<32x8xf32>
    %12 = vector.extract_strided_slice %1 {offsets = [32, 0], sizes = [32, 8], strides = [1, 1]} : vector<64x8xf32> to vector<32x8xf32>
    %13 = vector.extract_strided_slice %2 {offsets = [0, 0], sizes = [1, 32], strides = [1, 1]} : vector<8x32xf32> to vector<1x32xf32>
    %14 = vector.extract_strided_slice %2 {offsets = [1, 0], sizes = [1, 32], strides = [1, 1]} : vector<8x32xf32> to vector<1x32xf32>
    %15 = vector.extract_strided_slice %2 {offsets = [2, 0], sizes = [1, 32], strides = [1, 1]} : vector<8x32xf32> to vector<1x32xf32>
    %16 = vector.extract_strided_slice %2 {offsets = [3, 0], sizes = [1, 8], strides = [1, 1]} : vector<8x32xf32> to vector<1x8xf32>
    %17 = vector.extract_strided_slice %2 {offsets = [4, 0], sizes = [1, 32], strides = [1, 1]} : vector<8x32xf32> to vector<1x32xf32>
    %18 = vector.extract_strided_slice %2 {offsets = [5, 0], sizes = [1, 32], strides = [1, 1]} : vector<8x32xf32> to vector<1x32xf32>
    %19 = vector.extract_strided_slice %2 {offsets = [6, 0], sizes = [1, 32], strides = [1, 1]} : vector<8x32xf32> to vector<1x32xf32>
    %20 = vector.extract_strided_slice %2 {offsets = [7, 0], sizes = [1, 8], strides = [1, 1]} : vector<8x32xf32> to vector<1x8xf32>
    %c0_5 = arith.constant 0 : index
    %c0_6 = arith.constant 0 : index
    %21 = vector.load %arg1[%c0_5, %c0_6] : memref<8x16xf32, #tpu.memory_space<vmem>>, vector<8x16xf32>
    %c0_7 = arith.constant 0 : index
    %c0_8 = arith.constant 0 : index
    %22 = vector.load %arg2[%c0_7, %c0_8] : memref<8x16xf32, #tpu.memory_space<vmem>>, vector<8x16xf32>
    %c0_9 = arith.constant 0 : index
    %c0_10 = arith.constant 0 : index
    %23 = vector.load %arg3[%c0_9, %c0_10] : memref<8x16xf32, #tpu.memory_space<vmem>>, vector<8x16xf32>
    %24 = tpu.concatenate %21, %22 in 0 : vector<8x16xf32>, vector<8x16xf32> -> vector<16x16xf32>
    %25 = vector.extract_strided_slice %24 {offsets = [0, 8], sizes = [16, 8], strides = [1, 1]} : vector<16x16xf32> to vector<16x8xf32>
    %cst = arith.constant dense<0.000000e+00> : vector<16x32xf32>
    %26 = tpu.matmul %24, %3, %cst {dimension_numbers = #tpu.dot_dimension_numbers<[1], [0], [0], [1], [0, 0, 1, 1], [], []>} : vector<16x16xf32>, vector<16x32xf32>, vector<16x32xf32> -> vector<16x32xf32>
    %27 = vector.broadcast %13 : vector<1x32xf32> to vector<16x32xf32>
    %28 = arith.addf %26, %27 : vector<16x32xf32>
    %cst_11 = arith.constant dense<0.000000e+00> : vector<16x32xf32>
    %29 = tpu.matmul %28, %4, %cst_11 {dimension_numbers = #tpu.dot_dimension_numbers<[1], [0], [0], [1], [0, 0, 1, 1], [], []>} : vector<16x32xf32>, vector<32x32xf32>, vector<16x32xf32> -> vector<16x32xf32>
    %30 = vector.broadcast %14 : vector<1x32xf32> to vector<16x32xf32>
    %31 = arith.addf %29, %30 : vector<16x32xf32>
    %cst_12 = arith.constant 0.000000e+00 : f32
    %32 = vector.broadcast %cst_12 : f32 to vector<16x32xf32>
    %33 = arith.maximumf %31, %32 : vector<16x32xf32>
    %cst_13 = arith.constant dense<0.000000e+00> : vector<16x32xf32>
    %34 = tpu.matmul %33, %5, %cst_13 {dimension_numbers = #tpu.dot_dimension_numbers<[1], [0], [0], [1], [0, 0, 1, 1], [], []>} : vector<16x32xf32>, vector<32x32xf32>, vector<16x32xf32> -> vector<16x32xf32>
    %35 = vector.broadcast %15 : vector<1x32xf32> to vector<16x32xf32>
    %36 = arith.addf %34, %35 : vector<16x32xf32>
    %cst_14 = arith.constant 0.000000e+00 : f32
    %37 = vector.broadcast %cst_14 : f32 to vector<16x32xf32>
    %38 = arith.maximumf %36, %37 : vector<16x32xf32>
    %cst_15 = arith.constant dense<0.000000e+00> : vector<16x8xf32>
    %39 = tpu.matmul %38, %11, %cst_15 {dimension_numbers = #tpu.dot_dimension_numbers<[1], [0], [0], [1], [0, 0, 1, 1], [], []>} : vector<16x32xf32>, vector<32x8xf32>, vector<16x8xf32> -> vector<16x8xf32>
    %40 = vector.broadcast %16 : vector<1x8xf32> to vector<16x8xf32>
    %41 = arith.addf %39, %40 : vector<16x8xf32>
    %cst_16 = arith.constant dense<0.000000e+00> : vector<16x32xf32>
    %42 = tpu.matmul %33, %4, %cst_16 {dimension_numbers = #tpu.dot_dimension_numbers<[1], [0], [0], [1], [0, 0, 1, 1], [], []>} : vector<16x32xf32>, vector<32x32xf32>, vector<16x32xf32> -> vector<16x32xf32>
    %43 = vector.broadcast %14 : vector<1x32xf32> to vector<16x32xf32>
    %44 = arith.addf %42, %43 : vector<16x32xf32>
    %cst_17 = arith.constant 0.000000e+00 : f32
    %45 = vector.broadcast %cst_17 : f32 to vector<16x32xf32>
    %46 = arith.cmpf ogt, %44, %45 : vector<16x32xf32>
    %47 = arith.extui %46 : vector<16x32xi1> to vector<16x32xi32>
    %48 = arith.sitofp %47 : vector<16x32xi32> to vector<16x32xf32>
    %cst_18 = arith.constant dense<0.000000e+00> : vector<16x32xf32>
    %49 = tpu.matmul %38, %5, %cst_18 {dimension_numbers = #tpu.dot_dimension_numbers<[1], [0], [0], [1], [0, 0, 1, 1], [], []>} : vector<16x32xf32>, vector<32x32xf32>, vector<16x32xf32> -> vector<16x32xf32>
    %50 = vector.broadcast %15 : vector<1x32xf32> to vector<16x32xf32>
    %51 = arith.addf %49, %50 : vector<16x32xf32>
    %cst_19 = arith.constant 0.000000e+00 : f32
    %52 = vector.broadcast %cst_19 : f32 to vector<16x32xf32>
    %53 = arith.cmpf ogt, %51, %52 : vector<16x32xf32>
    %54 = arith.extui %53 : vector<16x32xi1> to vector<16x32xi32>
    %55 = arith.sitofp %54 : vector<16x32xi32> to vector<16x32xf32>
    %56 = vector.shape_cast %6 : vector<16x32xf32> to vector<1x16x32xf32>
    %57 = vector.shape_cast %48 : vector<16x32xf32> to vector<16x1x32xf32>
    %58 = vector.broadcast %56 : vector<1x16x32xf32> to vector<16x16x32xf32>
    %59 = vector.broadcast %57 : vector<16x1x32xf32> to vector<16x16x32xf32>
    %60 = arith.mulf %58, %59 : vector<16x16x32xf32>
    %61 = vector.shape_cast %60 : vector<16x16x32xf32> to vector<256x32xf32>
    %cst_20 = arith.constant dense<0.000000e+00> : vector<256x32xf32>
    %62 = tpu.matmul %61, %5, %cst_20 {dimension_numbers = #tpu.dot_dimension_numbers<[1], [0], [0], [1], [0, 0, 1, 1], [], []>} : vector<256x32xf32>, vector<32x32xf32>, vector<256x32xf32> -> vector<256x32xf32>
    %63 = vector.shape_cast %62 : vector<256x32xf32> to vector<16x16x32xf32>
    %64 = vector.shape_cast %55 : vector<16x32xf32> to vector<16x1x32xf32>
    %65 = vector.broadcast %64 : vector<16x1x32xf32> to vector<16x16x32xf32>
    %66 = arith.mulf %63, %65 : vector<16x16x32xf32>
    %67 = vector.shape_cast %66 : vector<16x16x32xf32> to vector<256x32xf32>
    %cst_21 = arith.constant dense<0.000000e+00> : vector<256x8xf32>
    %68 = tpu.matmul %67, %11, %cst_21 {dimension_numbers = #tpu.dot_dimension_numbers<[1], [0], [0], [1], [0, 0, 1, 1], [], []>} : vector<256x32xf32>, vector<32x8xf32>, vector<256x8xf32> -> vector<256x8xf32>
    %69 = vector.shape_cast %68 : vector<256x8xf32> to vector<16x16x8xf32>
    %cst_22 = arith.constant dense<0.000000e+00> : vector<16x32xf32>
    %70 = tpu.matmul %41, %7, %cst_22 {dimension_numbers = #tpu.dot_dimension_numbers<[1], [0], [0], [1], [0, 0, 1, 1], [], []>} : vector<16x8xf32>, vector<8x32xf32>, vector<16x32xf32> -> vector<16x32xf32>
    %71 = vector.broadcast %17 : vector<1x32xf32> to vector<16x32xf32>
    %72 = arith.addf %70, %71 : vector<16x32xf32>
    %cst_23 = arith.constant dense<0.000000e+00> : vector<16x32xf32>
    %73 = tpu.matmul %72, %8, %cst_23 {dimension_numbers = #tpu.dot_dimension_numbers<[1], [0], [0], [1], [0, 0, 1, 1], [], []>} : vector<16x32xf32>, vector<32x32xf32>, vector<16x32xf32> -> vector<16x32xf32>
    %74 = vector.broadcast %18 : vector<1x32xf32> to vector<16x32xf32>
    %75 = arith.addf %73, %74 : vector<16x32xf32>
    %cst_24 = arith.constant 0.000000e+00 : f32
    %76 = vector.broadcast %cst_24 : f32 to vector<16x32xf32>
    %77 = arith.maximumf %75, %76 : vector<16x32xf32>
    %cst_25 = arith.constant dense<0.000000e+00> : vector<16x32xf32>
    %78 = tpu.matmul %77, %9, %cst_25 {dimension_numbers = #tpu.dot_dimension_numbers<[1], [0], [0], [1], [0, 0, 1, 1], [], []>} : vector<16x32xf32>, vector<32x32xf32>, vector<16x32xf32> -> vector<16x32xf32>
    %79 = vector.broadcast %19 : vector<1x32xf32> to vector<16x32xf32>
    %80 = arith.addf %78, %79 : vector<16x32xf32>
    %cst_26 = arith.constant 0.000000e+00 : f32
    %81 = vector.broadcast %cst_26 : f32 to vector<16x32xf32>
    %82 = arith.maximumf %80, %81 : vector<16x32xf32>
    %cst_27 = arith.constant dense<0.000000e+00> : vector<16x8xf32>
    %83 = tpu.matmul %82, %12, %cst_27 {dimension_numbers = #tpu.dot_dimension_numbers<[1], [0], [0], [1], [0, 0, 1, 1], [], []>} : vector<16x32xf32>, vector<32x8xf32>, vector<16x8xf32> -> vector<16x8xf32>
    %84 = vector.broadcast %20 : vector<1x8xf32> to vector<16x8xf32>
    %85 = arith.addf %83, %84 : vector<16x8xf32>
    %cst_28 = arith.constant dense<0.000000e+00> : vector<16x32xf32>
    %86 = tpu.matmul %77, %8, %cst_28 {dimension_numbers = #tpu.dot_dimension_numbers<[1], [0], [0], [1], [0, 0, 1, 1], [], []>} : vector<16x32xf32>, vector<32x32xf32>, vector<16x32xf32> -> vector<16x32xf32>
    %87 = vector.broadcast %18 : vector<1x32xf32> to vector<16x32xf32>
    %88 = arith.addf %86, %87 : vector<16x32xf32>
    %cst_29 = arith.constant 0.000000e+00 : f32
    %89 = vector.broadcast %cst_29 : f32 to vector<16x32xf32>
    %90 = arith.cmpf ogt, %88, %89 : vector<16x32xf32>
    %91 = arith.extui %90 : vector<16x32xi1> to vector<16x32xi32>
    %92 = arith.sitofp %91 : vector<16x32xi32> to vector<16x32xf32>
    %cst_30 = arith.constant dense<0.000000e+00> : vector<16x32xf32>
    %93 = tpu.matmul %82, %9, %cst_30 {dimension_numbers = #tpu.dot_dimension_numbers<[1], [0], [0], [1], [0, 0, 1, 1], [], []>} : vector<16x32xf32>, vector<32x32xf32>, vector<16x32xf32> -> vector<16x32xf32>
    %94 = vector.broadcast %19 : vector<1x32xf32> to vector<16x32xf32>
    %95 = arith.addf %93, %94 : vector<16x32xf32>
    %cst_31 = arith.constant 0.000000e+00 : f32
    %96 = vector.broadcast %cst_31 : f32 to vector<16x32xf32>
    %97 = arith.cmpf ogt, %95, %96 : vector<16x32xf32>
    %98 = arith.extui %97 : vector<16x32xi1> to vector<16x32xi32>
    %99 = arith.sitofp %98 : vector<16x32xi32> to vector<16x32xf32>
    %100 = vector.shape_cast %10 : vector<8x32xf32> to vector<1x8x32xf32>
    %101 = vector.shape_cast %92 : vector<16x32xf32> to vector<16x1x32xf32>
    %102 = vector.broadcast %100 : vector<1x8x32xf32> to vector<16x8x32xf32>
    %103 = vector.broadcast %101 : vector<16x1x32xf32> to vector<16x8x32xf32>
    %104 = arith.mulf %102, %103 : vector<16x8x32xf32>
    %105 = vector.shape_cast %104 : vector<16x8x32xf32> to vector<128x32xf32>
    %cst_32 = arith.constant dense<0.000000e+00> : vector<128x32xf32>
    %106 = tpu.matmul %105, %9, %cst_32 {dimension_numbers = #tpu.dot_dimension_numbers<[1], [0], [0], [1], [0, 0, 1, 1], [], []>} : vector<128x32xf32>, vector<32x32xf32>, vector<128x32xf32> -> vector<128x32xf32>
    %107 = vector.shape_cast %106 : vector<128x32xf32> to vector<16x8x32xf32>
    %108 = vector.shape_cast %99 : vector<16x32xf32> to vector<16x1x32xf32>
    %109 = vector.broadcast %108 : vector<16x1x32xf32> to vector<16x8x32xf32>
    %110 = arith.mulf %107, %109 : vector<16x8x32xf32>
    %111 = vector.shape_cast %110 : vector<16x8x32xf32> to vector<128x32xf32>
    %cst_33 = arith.constant dense<0.000000e+00> : vector<128x8xf32>
    %112 = tpu.matmul %111, %12, %cst_33 {dimension_numbers = #tpu.dot_dimension_numbers<[1], [0], [0], [1], [0, 0, 1, 1], [], []>} : vector<128x32xf32>, vector<32x8xf32>, vector<128x8xf32> -> vector<128x8xf32>
    %113 = vector.shape_cast %112 : vector<128x8xf32> to vector<16x8x8xf32>
    "tpu.trace_start"() <{level = 10 : i32, message = "bim,bmo->bio"}> : () -> ()
    %cst_34 = arith.constant dense<0.000000e+00> : vector<16x16x8xf32>
    %114 = tpu.matmul %69, %113, %cst_34 {dimension_numbers = #tpu.dot_dimension_numbers<[2], [1], [1], [2], [0, 0, 0, 1, 1, 2], [0], [0]>} : vector<16x16x8xf32>, vector<16x8x8xf32>, vector<16x16x8xf32> -> vector<16x16x8xf32>
    "tpu.trace_stop"() : () -> ()
    %115 = vector.shape_cast %85 : vector<16x8xf32> to vector<16x1x8xf32>
    %116 = vector.broadcast %115 : vector<16x1x8xf32> to vector<16x16x8xf32>
    %117 = arith.mulf %69, %116 : vector<16x16x8xf32>
    %118 = arith.addf %117, %114 : vector<16x16x8xf32>
    %119 = vector.shape_cast %41 : vector<16x8xf32> to vector<16x1x8xf32>
    %120 = vector.broadcast %119 : vector<16x1x8xf32> to vector<16x16x8xf32>
    %121 = arith.mulf %114, %120 : vector<16x16x8xf32>
    %122 = arith.addf %118, %121 : vector<16x16x8xf32>
    %123 = arith.mulf %41, %85 : vector<16x8xf32>
    %124 = arith.addf %123, %85 : vector<16x8xf32>
    %cst_35 = arith.constant dense<0.000000e+00> : vector<16x32xf32>
    %125 = tpu.matmul %124, %7, %cst_35 {dimension_numbers = #tpu.dot_dimension_numbers<[1], [0], [0], [1], [0, 0, 1, 1], [], []>} : vector<16x8xf32>, vector<8x32xf32>, vector<16x32xf32> -> vector<16x32xf32>
    %126 = vector.broadcast %17 : vector<1x32xf32> to vector<16x32xf32>
    %127 = arith.addf %125, %126 : vector<16x32xf32>
    %cst_36 = arith.constant dense<0.000000e+00> : vector<16x32xf32>
    %128 = tpu.matmul %127, %8, %cst_36 {dimension_numbers = #tpu.dot_dimension_numbers<[1], [0], [0], [1], [0, 0, 1, 1], [], []>} : vector<16x32xf32>, vector<32x32xf32>, vector<16x32xf32> -> vector<16x32xf32>
    %129 = vector.broadcast %18 : vector<1x32xf32> to vector<16x32xf32>
    %130 = arith.addf %128, %129 : vector<16x32xf32>
    %cst_37 = arith.constant 0.000000e+00 : f32
    %131 = vector.broadcast %cst_37 : f32 to vector<16x32xf32>
    %132 = arith.maximumf %130, %131 : vector<16x32xf32>
    %cst_38 = arith.constant dense<0.000000e+00> : vector<16x32xf32>
    %133 = tpu.matmul %132, %9, %cst_38 {dimension_numbers = #tpu.dot_dimension_numbers<[1], [0], [0], [1], [0, 0, 1, 1], [], []>} : vector<16x32xf32>, vector<32x32xf32>, vector<16x32xf32> -> vector<16x32xf32>
    %134 = vector.broadcast %19 : vector<1x32xf32> to vector<16x32xf32>
    %135 = arith.addf %133, %134 : vector<16x32xf32>
    %cst_39 = arith.constant 0.000000e+00 : f32
    %136 = vector.broadcast %cst_39 : f32 to vector<16x32xf32>
    %137 = arith.maximumf %135, %136 : vector<16x32xf32>
    %cst_40 = arith.constant dense<0.000000e+00> : vector<16x8xf32>
    %138 = tpu.matmul %137, %12, %cst_40 {dimension_numbers = #tpu.dot_dimension_numbers<[1], [0], [0], [1], [0, 0, 1, 1], [], []>} : vector<16x32xf32>, vector<32x8xf32>, vector<16x8xf32> -> vector<16x8xf32>
    %139 = vector.broadcast %20 : vector<1x8xf32> to vector<16x8xf32>
    %140 = arith.addf %138, %139 : vector<16x8xf32>
    %cst_41 = arith.constant dense<0.000000e+00> : vector<16x32xf32>
    %141 = tpu.matmul %132, %8, %cst_41 {dimension_numbers = #tpu.dot_dimension_numbers<[1], [0], [0], [1], [0, 0, 1, 1], [], []>} : vector<16x32xf32>, vector<32x32xf32>, vector<16x32xf32> -> vector<16x32xf32>
    %142 = vector.broadcast %18 : vector<1x32xf32> to vector<16x32xf32>
    %143 = arith.addf %141, %142 : vector<16x32xf32>
    %cst_42 = arith.constant 0.000000e+00 : f32
    %144 = vector.broadcast %cst_42 : f32 to vector<16x32xf32>
    %145 = arith.cmpf ogt, %143, %144 : vector<16x32xf32>
    %146 = arith.extui %145 : vector<16x32xi1> to vector<16x32xi32>
    %147 = arith.sitofp %146 : vector<16x32xi32> to vector<16x32xf32>
    %cst_43 = arith.constant dense<0.000000e+00> : vector<16x32xf32>
    %148 = tpu.matmul %137, %9, %cst_43 {dimension_numbers = #tpu.dot_dimension_numbers<[1], [0], [0], [1], [0, 0, 1, 1], [], []>} : vector<16x32xf32>, vector<32x32xf32>, vector<16x32xf32> -> vector<16x32xf32>
    %149 = vector.broadcast %19 : vector<1x32xf32> to vector<16x32xf32>
    %150 = arith.addf %148, %149 : vector<16x32xf32>
    %cst_44 = arith.constant 0.000000e+00 : f32
    %151 = vector.broadcast %cst_44 : f32 to vector<16x32xf32>
    %152 = arith.cmpf ogt, %150, %151 : vector<16x32xf32>
    %153 = arith.extui %152 : vector<16x32xi1> to vector<16x32xi32>
    %154 = arith.sitofp %153 : vector<16x32xi32> to vector<16x32xf32>
    %155 = vector.shape_cast %10 : vector<8x32xf32> to vector<1x8x32xf32>
    %156 = vector.shape_cast %147 : vector<16x32xf32> to vector<16x1x32xf32>
    %157 = vector.broadcast %155 : vector<1x8x32xf32> to vector<16x8x32xf32>
    %158 = vector.broadcast %156 : vector<16x1x32xf32> to vector<16x8x32xf32>
    %159 = arith.mulf %157, %158 : vector<16x8x32xf32>
    %160 = vector.shape_cast %159 : vector<16x8x32xf32> to vector<128x32xf32>
    %cst_45 = arith.constant dense<0.000000e+00> : vector<128x32xf32>
    %161 = tpu.matmul %160, %9, %cst_45 {dimension_numbers = #tpu.dot_dimension_numbers<[1], [0], [0], [1], [0, 0, 1, 1], [], []>} : vector<128x32xf32>, vector<32x32xf32>, vector<128x32xf32> -> vector<128x32xf32>
    %162 = vector.shape_cast %161 : vector<128x32xf32> to vector<16x8x32xf32>
    %163 = vector.shape_cast %154 : vector<16x32xf32> to vector<16x1x32xf32>
    %164 = vector.broadcast %163 : vector<16x1x32xf32> to vector<16x8x32xf32>
    %165 = arith.mulf %162, %164 : vector<16x8x32xf32>
    %166 = vector.shape_cast %165 : vector<16x8x32xf32> to vector<128x32xf32>
    %cst_46 = arith.constant dense<0.000000e+00> : vector<128x8xf32>
    %167 = tpu.matmul %166, %12, %cst_46 {dimension_numbers = #tpu.dot_dimension_numbers<[1], [0], [0], [1], [0, 0, 1, 1], [], []>} : vector<128x32xf32>, vector<32x8xf32>, vector<128x8xf32> -> vector<128x8xf32>
    %168 = vector.shape_cast %167 : vector<128x8xf32> to vector<16x8x8xf32>
    "tpu.trace_start"() <{level = 10 : i32, message = "bim,bmo->bio"}> : () -> ()
    %cst_47 = arith.constant dense<0.000000e+00> : vector<16x16x8xf32>
    %169 = tpu.matmul %122, %168, %cst_47 {dimension_numbers = #tpu.dot_dimension_numbers<[2], [1], [1], [2], [0, 0, 0, 1, 1, 2], [0], [0]>} : vector<16x16x8xf32>, vector<16x8x8xf32>, vector<16x16x8xf32> -> vector<16x16x8xf32>
    "tpu.trace_stop"() : () -> ()
    %170 = arith.addf %69, %169 : vector<16x16x8xf32>
    %171 = vector.shape_cast %124 : vector<16x8xf32> to vector<16x1x8xf32>
    %172 = vector.broadcast %171 : vector<16x1x8xf32> to vector<16x16x8xf32>
    %173 = arith.mulf %169, %172 : vector<16x16x8xf32>
    %174 = arith.addf %170, %173 : vector<16x16x8xf32>
    %175 = arith.mulf %124, %140 : vector<16x8xf32>
    %176 = arith.addf %41, %175 : vector<16x8xf32>
    %177 = math.exp %176 : vector<16x8xf32>
    %178 = arith.mulf %177, %25 : vector<16x8xf32>
    %cst_48 = arith.constant 1.000000e+00 : f32
    %179 = vector.broadcast %cst_48 : f32 to vector<16x8xf32>
    %180 = arith.addf %178, %179 : vector<16x8xf32>
    %181 = tpu.iota {dimensions = array<i32: 0>} : vector<8x8xi32>
    %182 = tpu.iota {dimensions = array<i32: 1>} : vector<8x8xi32>
    %183 = arith.cmpi eq, %181, %182 : vector<8x8xi32>
    %184 = arith.extui %183 : vector<8x8xi1> to vector<8x8xi32>
    %185 = arith.sitofp %184 : vector<8x8xi32> to vector<8x8xf32>
    %186 = vector.extract_strided_slice %174 {offsets = [0, 0, 0], sizes = [16, 8, 8], strides = [1, 1, 1]} : vector<16x16x8xf32> to vector<16x8x8xf32>
    %187 = vector.shape_cast %180 : vector<16x8xf32> to vector<16x1x8xf32>
    %188 = vector.broadcast %187 : vector<16x1x8xf32> to vector<16x8x8xf32>
    %189 = arith.mulf %186, %188 : vector<16x8x8xf32>
    %190 = vector.extract_strided_slice %174 {offsets = [0, 8, 0], sizes = [16, 8, 8], strides = [1, 1, 1]} : vector<16x16x8xf32> to vector<16x8x8xf32>
    %191 = vector.shape_cast %180 : vector<16x8xf32> to vector<16x1x8xf32>
    %192 = vector.broadcast %191 : vector<16x1x8xf32> to vector<16x8x8xf32>
    %193 = arith.mulf %190, %192 : vector<16x8x8xf32>
    %194 = vector.shape_cast %185 : vector<8x8xf32> to vector<1x8x8xf32>
    %195 = vector.shape_cast %177 : vector<16x8xf32> to vector<16x1x8xf32>
    %196 = vector.broadcast %194 : vector<1x8x8xf32> to vector<16x8x8xf32>
    %197 = vector.broadcast %195 : vector<16x1x8xf32> to vector<16x8x8xf32>
    %198 = arith.mulf %196, %197 : vector<16x8x8xf32>
    %199 = arith.addf %193, %198 : vector<16x8x8xf32>
    %200 = vector.extract_strided_slice %21 {offsets = [0, 0], sizes = [8, 8], strides = [1, 1]} : vector<8x16xf32> to vector<8x8xf32>
    %201 = vector.extract_strided_slice %177 {offsets = [0, 0], sizes = [8, 8], strides = [1, 1]} : vector<16x8xf32> to vector<8x8xf32>
    %202 = vector.extract_strided_slice %21 {offsets = [0, 8], sizes = [8, 8], strides = [1, 1]} : vector<8x16xf32> to vector<8x8xf32>
    %203 = arith.mulf %201, %202 : vector<8x8xf32>
    %204 = vector.extract_strided_slice %176 {offsets = [0, 0], sizes = [8, 8], strides = [1, 1]} : vector<16x8xf32> to vector<8x8xf32>
    %205 = arith.addf %203, %204 : vector<8x8xf32>
    %206 = tpu.concatenate %200, %205 in 1 : vector<8x8xf32>, vector<8x8xf32> -> vector<8x16xf32>
    %207 = vector.extract_strided_slice %23 {offsets = [0, 0], sizes = [8, 8], strides = [1, 1]} : vector<8x16xf32> to vector<8x8xf32>
    %208 = vector.extract_strided_slice %23 {offsets = [0, 8], sizes = [8, 8], strides = [1, 1]} : vector<8x16xf32> to vector<8x8xf32>
    %209 = vector.extract_strided_slice %189 {offsets = [0, 0, 0], sizes = [8, 8, 8], strides = [1, 1, 1]} : vector<16x8x8xf32> to vector<8x8x8xf32>
    %210 = vector.shape_cast %207 : vector<8x8xf32> to vector<8x8x1xf32>
    %211 = vector.broadcast %210 : vector<8x8x1xf32> to vector<8x8x8xf32>
    %212 = arith.mulf %209, %211 : vector<8x8x8xf32>
    %cst_49 = arith.constant dense<0.000000e+00> : vector<8x8xf32>
    %213 = vector.multi_reduction <add>, %212, %cst_49 [1] : vector<8x8x8xf32> to vector<8x8xf32>
    %214 = vector.extract_strided_slice %199 {offsets = [0, 0, 0], sizes = [8, 8, 8], strides = [1, 1, 1]} : vector<16x8x8xf32> to vector<8x8x8xf32>
    %215 = vector.shape_cast %208 : vector<8x8xf32> to vector<8x8x1xf32>
    %216 = vector.broadcast %215 : vector<8x8x1xf32> to vector<8x8x8xf32>
    %217 = arith.mulf %214, %216 : vector<8x8x8xf32>
    %cst_50 = arith.constant dense<0.000000e+00> : vector<8x8xf32>
    %218 = vector.multi_reduction <add>, %217, %cst_50 [1] : vector<8x8x8xf32> to vector<8x8xf32>
    %219 = arith.addf %213, %218 : vector<8x8xf32>
    %220 = vector.extract_strided_slice %189 {offsets = [8, 0, 0], sizes = [8, 8, 8], strides = [1, 1, 1]} : vector<16x8x8xf32> to vector<8x8x8xf32>
    %221 = vector.extract_strided_slice %189 {offsets = [8, 0, 0], sizes = [8, 8, 8], strides = [1, 1, 1]} : vector<16x8x8xf32> to vector<8x8x8xf32>
    %222 = arith.mulf %220, %221 : vector<8x8x8xf32>
    %cst_51 = arith.constant dense<0.000000e+00> : vector<8x8xf32>
    %223 = vector.multi_reduction <add>, %222, %cst_51 [1] : vector<8x8x8xf32> to vector<8x8xf32>
    %224 = vector.extract_strided_slice %199 {offsets = [8, 0, 0], sizes = [8, 8, 8], strides = [1, 1, 1]} : vector<16x8x8xf32> to vector<8x8x8xf32>
    %225 = vector.extract_strided_slice %199 {offsets = [8, 0, 0], sizes = [8, 8, 8], strides = [1, 1, 1]} : vector<16x8x8xf32> to vector<8x8x8xf32>
    %226 = arith.mulf %224, %225 : vector<8x8x8xf32>
    %cst_52 = arith.constant dense<0.000000e+00> : vector<8x8xf32>
    %227 = vector.multi_reduction <add>, %226, %cst_52 [1] : vector<8x8x8xf32> to vector<8x8xf32>
    %228 = arith.addf %223, %227 : vector<8x8xf32>
    %229 = math.sqrt %228 : vector<8x8xf32>
    %cst_53 = arith.constant dense<0.000000e+00> : vector<8x32xf32>
    %230 = tpu.matmul %206, %3, %cst_53 {dimension_numbers = #tpu.dot_dimension_numbers<[1], [0], [0], [1], [0, 0, 1, 1], [], []>} : vector<8x16xf32>, vector<16x32xf32>, vector<8x32xf32> -> vector<8x32xf32>
    %231 = vector.broadcast %13 : vector<1x32xf32> to vector<8x32xf32>
    %232 = arith.addf %230, %231 : vector<8x32xf32>
    %cst_54 = arith.constant dense<0.000000e+00> : vector<8x32xf32>
    %233 = tpu.matmul %232, %4, %cst_54 {dimension_numbers = #tpu.dot_dimension_numbers<[1], [0], [0], [1], [0, 0, 1, 1], [], []>} : vector<8x32xf32>, vector<32x32xf32>, vector<8x32xf32> -> vector<8x32xf32>
    %234 = vector.broadcast %14 : vector<1x32xf32> to vector<8x32xf32>
    %235 = arith.addf %233, %234 : vector<8x32xf32>
    %cst_55 = arith.constant 0.000000e+00 : f32
    %236 = vector.broadcast %cst_55 : f32 to vector<8x32xf32>
    %237 = arith.maximumf %235, %236 : vector<8x32xf32>
    %cst_56 = arith.constant dense<0.000000e+00> : vector<8x32xf32>
    %238 = tpu.matmul %237, %5, %cst_56 {dimension_numbers = #tpu.dot_dimension_numbers<[1], [0], [0], [1], [0, 0, 1, 1], [], []>} : vector<8x32xf32>, vector<32x32xf32>, vector<8x32xf32> -> vector<8x32xf32>
    %239 = vector.broadcast %15 : vector<1x32xf32> to vector<8x32xf32>
    %240 = arith.addf %238, %239 : vector<8x32xf32>
    %cst_57 = arith.constant 0.000000e+00 : f32
    %241 = vector.broadcast %cst_57 : f32 to vector<8x32xf32>
    %242 = arith.maximumf %240, %241 : vector<8x32xf32>
    %cst_58 = arith.constant dense<0.000000e+00> : vector<8x8xf32>
    %243 = tpu.matmul %242, %11, %cst_58 {dimension_numbers = #tpu.dot_dimension_numbers<[1], [0], [0], [1], [0, 0, 1, 1], [], []>} : vector<8x32xf32>, vector<32x8xf32>, vector<8x8xf32> -> vector<8x8xf32>
    %244 = vector.broadcast %16 : vector<1x8xf32> to vector<8x8xf32>
    %245 = arith.addf %243, %244 : vector<8x8xf32>
    %cst_59 = arith.constant dense<0.000000e+00> : vector<8x32xf32>
    %246 = tpu.matmul %245, %7, %cst_59 {dimension_numbers = #tpu.dot_dimension_numbers<[1], [0], [0], [1], [0, 0, 1, 1], [], []>} : vector<8x8xf32>, vector<8x32xf32>, vector<8x32xf32> -> vector<8x32xf32>
    %247 = vector.broadcast %17 : vector<1x32xf32> to vector<8x32xf32>
    %248 = arith.addf %246, %247 : vector<8x32xf32>
    %cst_60 = arith.constant dense<0.000000e+00> : vector<8x32xf32>
    %249 = tpu.matmul %248, %8, %cst_60 {dimension_numbers = #tpu.dot_dimension_numbers<[1], [0], [0], [1], [0, 0, 1, 1], [], []>} : vector<8x32xf32>, vector<32x32xf32>, vector<8x32xf32> -> vector<8x32xf32>
    %250 = vector.broadcast %18 : vector<1x32xf32> to vector<8x32xf32>
    %251 = arith.addf %249, %250 : vector<8x32xf32>
    %cst_61 = arith.constant 0.000000e+00 : f32
    %252 = vector.broadcast %cst_61 : f32 to vector<8x32xf32>
    %253 = arith.maximumf %251, %252 : vector<8x32xf32>
    %cst_62 = arith.constant dense<0.000000e+00> : vector<8x32xf32>
    %254 = tpu.matmul %253, %9, %cst_62 {dimension_numbers = #tpu.dot_dimension_numbers<[1], [0], [0], [1], [0, 0, 1, 1], [], []>} : vector<8x32xf32>, vector<32x32xf32>, vector<8x32xf32> -> vector<8x32xf32>
    %255 = vector.broadcast %19 : vector<1x32xf32> to vector<8x32xf32>
    %256 = arith.addf %254, %255 : vector<8x32xf32>
    %cst_63 = arith.constant 0.000000e+00 : f32
    %257 = vector.broadcast %cst_63 : f32 to vector<8x32xf32>
    %258 = arith.maximumf %256, %257 : vector<8x32xf32>
    %cst_64 = arith.constant dense<0.000000e+00> : vector<8x8xf32>
    %259 = tpu.matmul %258, %12, %cst_64 {dimension_numbers = #tpu.dot_dimension_numbers<[1], [0], [0], [1], [0, 0, 1, 1], [], []>} : vector<8x32xf32>, vector<32x8xf32>, vector<8x8xf32> -> vector<8x8xf32>
    %260 = vector.broadcast %20 : vector<1x8xf32> to vector<8x8xf32>
    %261 = arith.addf %259, %260 : vector<8x8xf32>
    %262 = arith.mulf %245, %261 : vector<8x8xf32>
    %263 = arith.addf %262, %261 : vector<8x8xf32>
    %cst_65 = arith.constant dense<0.000000e+00> : vector<8x32xf32>
    %264 = tpu.matmul %263, %7, %cst_65 {dimension_numbers = #tpu.dot_dimension_numbers<[1], [0], [0], [1], [0, 0, 1, 1], [], []>} : vector<8x8xf32>, vector<8x32xf32>, vector<8x32xf32> -> vector<8x32xf32>
    %265 = vector.broadcast %17 : vector<1x32xf32> to vector<8x32xf32>
    %266 = arith.addf %264, %265 : vector<8x32xf32>
    %cst_66 = arith.constant dense<0.000000e+00> : vector<8x32xf32>
    %267 = tpu.matmul %266, %8, %cst_66 {dimension_numbers = #tpu.dot_dimension_numbers<[1], [0], [0], [1], [0, 0, 1, 1], [], []>} : vector<8x32xf32>, vector<32x32xf32>, vector<8x32xf32> -> vector<8x32xf32>
    %268 = vector.broadcast %18 : vector<1x32xf32> to vector<8x32xf32>
    %269 = arith.addf %267, %268 : vector<8x32xf32>
    %cst_67 = arith.constant 0.000000e+00 : f32
    %270 = vector.broadcast %cst_67 : f32 to vector<8x32xf32>
    %271 = arith.maximumf %269, %270 : vector<8x32xf32>
    %cst_68 = arith.constant dense<0.000000e+00> : vector<8x32xf32>
    %272 = tpu.matmul %271, %9, %cst_68 {dimension_numbers = #tpu.dot_dimension_numbers<[1], [0], [0], [1], [0, 0, 1, 1], [], []>} : vector<8x32xf32>, vector<32x32xf32>, vector<8x32xf32> -> vector<8x32xf32>
    %273 = vector.broadcast %19 : vector<1x32xf32> to vector<8x32xf32>
    %274 = arith.addf %272, %273 : vector<8x32xf32>
    %cst_69 = arith.constant 0.000000e+00 : f32
    %275 = vector.broadcast %cst_69 : f32 to vector<8x32xf32>
    %276 = arith.maximumf %274, %275 : vector<8x32xf32>
    %cst_70 = arith.constant dense<0.000000e+00> : vector<8x8xf32>
    %277 = tpu.matmul %276, %12, %cst_70 {dimension_numbers = #tpu.dot_dimension_numbers<[1], [0], [0], [1], [0, 0, 1, 1], [], []>} : vector<8x32xf32>, vector<32x8xf32>, vector<8x8xf32> -> vector<8x8xf32>
    %278 = vector.broadcast %20 : vector<1x8xf32> to vector<8x8xf32>
    %279 = arith.addf %277, %278 : vector<8x8xf32>
    %280 = arith.mulf %263, %279 : vector<8x8xf32>
    %281 = arith.addf %245, %280 : vector<8x8xf32>
    %282 = arith.subf %205, %281 : vector<8x8xf32>
    %cst_71 = arith.constant 0.000000e+00 : f32
    %283 = vector.broadcast %cst_71 : f32 to vector<8x8xf32>
    %284 = arith.subf %283, %281 : vector<8x8xf32>
    %285 = math.exp %284 : vector<8x8xf32>
    %286 = arith.mulf %282, %285 : vector<8x8xf32>
    %c0_72 = arith.constant 0 : index
    %c0_73 = arith.constant 0 : index
    %287 = vector.load %arg7[%c0_72, %c0_73] : memref<8x64xf32, #tpu.memory_space<vmem>>, vector<8x8xf32>
    tpu.vector_store %arg7[%c0_72, %c0_73], %200 {strides = array<i32>} : memref<8x64xf32, #tpu.memory_space<vmem>>, vector<8x8xf32>,
    %c0_74 = arith.constant 0 : index
    %c8 = arith.constant 8 : index
    %288 = vector.load %arg7[%c0_74, %c8] : memref<8x64xf32, #tpu.memory_space<vmem>>, vector<8x8xf32>
    tpu.vector_store %arg7[%c0_74, %c8], %205 {strides = array<i32>} : memref<8x64xf32, #tpu.memory_space<vmem>>, vector<8x8xf32>,
    %c0_75 = arith.constant 0 : index
    %c16 = arith.constant 16 : index
    %289 = vector.load %arg7[%c0_75, %c16] : memref<8x64xf32, #tpu.memory_space<vmem>>, vector<8x8xf32>
    tpu.vector_store %arg7[%c0_75, %c16], %207 {strides = array<i32>} : memref<8x64xf32, #tpu.memory_space<vmem>>, vector<8x8xf32>,
    %c0_76 = arith.constant 0 : index
    %c24 = arith.constant 24 : index
    %290 = vector.load %arg7[%c0_76, %c24] : memref<8x64xf32, #tpu.memory_space<vmem>>, vector<8x8xf32>
    tpu.vector_store %arg7[%c0_76, %c24], %219 {strides = array<i32>} : memref<8x64xf32, #tpu.memory_space<vmem>>, vector<8x8xf32>,
    %cst_77 = arith.constant 1.000000e+00 : f32
    %291 = vector.broadcast %cst_77 : f32 to vector<8x8xf32>
    %c0_78 = arith.constant 0 : index
    %c32 = arith.constant 32 : index
    %292 = vector.load %arg7[%c0_78, %c32] : memref<8x64xf32, #tpu.memory_space<vmem>>, vector<8x8xf32>
    tpu.vector_store %arg7[%c0_78, %c32], %291 {strides = array<i32>} : memref<8x64xf32, #tpu.memory_space<vmem>>, vector<8x8xf32>,
    %c0_79 = arith.constant 0 : index
    %c40 = arith.constant 40 : index
    %293 = vector.load %arg7[%c0_79, %c40] : memref<8x64xf32, #tpu.memory_space<vmem>>, vector<8x8xf32>
    tpu.vector_store %arg7[%c0_79, %c40], %229 {strides = array<i32>} : memref<8x64xf32, #tpu.memory_space<vmem>>, vector<8x8xf32>,
    %c0_80 = arith.constant 0 : index
    %c48 = arith.constant 48 : index
    %294 = vector.load %arg7[%c0_80, %c48] : memref<8x64xf32, #tpu.memory_space<vmem>>, vector<8x8xf32>
    tpu.vector_store %arg7[%c0_80, %c48], %200 {strides = array<i32>} : memref<8x64xf32, #tpu.memory_space<vmem>>, vector<8x8xf32>,
    %c0_81 = arith.constant 0 : index
    %c56 = arith.constant 56 : index
    %295 = vector.load %arg7[%c0_81, %c56] : memref<8x64xf32, #tpu.memory_space<vmem>>, vector<8x8xf32>
    tpu.vector_store %arg7[%c0_81, %c56], %286 {strides = array<i32>} : memref<8x64xf32, #tpu.memory_space<vmem>>, vector<8x8xf32>,
    return
  }
  func.func @transform_0(%arg0: i32) -> (i32, i32) {
    %c0_i32 = arith.constant 0 : i32
    %c0_i32_0 = arith.constant 0 : i32
    return %arg0, %c0_i32 : i32, i32
  }
  func.func @transform_1(%arg0: i32) -> (i32, i32) {
    %c0_i32 = arith.constant 0 : i32
    %c0_i32_0 = arith.constant 0 : i32
    return %arg0, %c0_i32 : i32, i32
  }
  func.func @transform_2(%arg0: i32) -> (i32, i32) {
    %c0_i32 = arith.constant 0 : i32
    %c0_i32_0 = arith.constant 0 : i32
    return %arg0, %c0_i32 : i32, i32
  }
  func.func @transform_3(%arg0: i32) -> (i32, i32) {
    %c0_i32 = arith.constant 0 : i32
    %c0_i32_0 = arith.constant 0 : i32
    %c0_i32_1 = arith.constant 0 : i32
    return %c0_i32, %c0_i32_0 : i32, i32
  }
  func.func @transform_4(%arg0: i32) -> (i32, i32) {
    %c0_i32 = arith.constant 0 : i32
    %c0_i32_0 = arith.constant 0 : i32
    %c0_i32_1 = arith.constant 0 : i32
    return %c0_i32, %c0_i32_0 : i32, i32
  }
  func.func @transform_5(%arg0: i32) -> (i32, i32) {
    %c0_i32 = arith.constant 0 : i32
    %c0_i32_0 = arith.constant 0 : i32
    %c0_i32_1 = arith.constant 0 : i32
    return %c0_i32, %c0_i32_0 : i32, i32
  }
  func.func @transform_6(%arg0: i32) -> (i32, i32) {
    %c0_i32 = arith.constant 0 : i32
    %c0_i32_0 = arith.constant 0 : i32
    return %arg0, %c0_i32 : i32, i32
  }
}

</mosaic_0001>

<bundles_post_ra>
// kernel: tpu_custom_call.1
= control target key start
LH: loop header
LB: loop body
LE: loop exit
PB: predicated region body
PF: predicated region fallthrough
CT: control target
= control target key end

     0   :  { %vm62_vm0 = vcmask 130048   ;;  %s13080_s0 = inlined_call_operand.vmem [shape: f32[8,16], index: 0, kind: input, shape index: {}]   ;;  %s13081_s1 = inlined_call_operand.vmem [shape: f32[8,16], index: 1, kind: input, shape index: {}]   ;;  %s13082_s2 = inlined_call_operand.vmem [shape: f32[8,16], index: 2, kind: input, shape index: {}]   ;;  %s13083_s3 = inlined_call_operand.vmem [shape: f32[176,32], index: 3, kind: input, shape index: {}]   ;;  %s13084_s4 = inlined_call_operand.vmem [shape: f32[64,8], index: 4, kind: input, shape index: {}]   ;;  %s13085_s5 = inlined_call_operand.vmem [shape: f32[8,32], index: 5, kind: input, shape index: {}]   ;;  %s13086_s6 = inlined_call_operand.hbm [shape: f32[8,64], index: 6, kind: output, shape index: {}]  }
   0x1   :  { %v24_v0 = vld [vmem:[%s13083_s3] sm:$0xff]  ;;  %v25_v1 = vld [vmem:[%s13083_s3 + $0x8] sm:$0xff]  ;;  %v26_v4 = vld [vmem:[%s13083_s3 + $0x10] sm:$0xff] }
   0x2   :  { %v11087_v2 = vld [vmem:[%s13080_s0] sm:$0xff]  ;;  %v11089_v3 = vpack.c.bf16 %v25_v1, %v24_v0  ;;  %v27_v5 = vld [vmem:[%s13083_s3 + $0x18] sm:$0xff] }
   0x3   :  { %13193 = vst [vmem:[#allocation5_spill] sm:$0xff] %v11087_v2  ;;  %10043 = vmatprep.mubr.msk.f32.mxu0 %vm62_vm0, %v11087_v2  ;;  %v11099_v6 = vpack.c.bf16 %v27_v5, %v26_v4 }
   0x4   :  { %13194 = vst [vmem:[#allocation6_spill] sm:$0xff] %v11089_v3 }
   0x5   :  { %13195 = vst [vmem:[#allocation7_spill] sm:$0xff] %v11099_v6 }
   0x6   :  { %11 = vsyncpa [#allocation3], 0  ;;  %10738 = vmatprep.subr.bf16.mxu0 %v11089_v3  ;;  %v56_v7 = vld [vmem:[%s13081_s1] sm:$0xff]  ;;  %10742 = vmatprep.subr.bf16.mxu1 %v11099_v6  ;;  %v29_v9 = vld [vmem:[%s13083_s3 + $0x28] sm:$0xff]  ;;  %v13087_v14 = vlaneseq  ;;  %vm148_vm1 = vcmask 261120   ;;  %v13092_v56 = vmov 0.0  }
   0x7   :  { %10740 = vmatpush3.bf16.msra.mxu0 %v11089_v3  ;;  %10744 = vmatpush3.bf16.msra.mxu1 %v11099_v6  ;;  %v28_v8 = vld [vmem:[%s13083_s3 + $0x20] sm:$0xff]  ;;  %v30_v11 = vld [vmem:[%s13083_s3 + $0x30] sm:$0xff]  ;;  %v31_v12 = vld [vmem:[%s13083_s3 + $0x38] sm:$0xff]  ;;  %v11030_v46 = vmov 1966171168   ;;  %vm1636_vm4 = vcmask 64512  }
   0x8   :  { %v11115_v10 = vpack.c.bf16 %v29_v9, %v28_v8  ;;  %v11125_v13 = vpack.c.bf16 %v31_v12, %v30_v11  ;;  %v11130_v15 = vshrl.u32 %v13087_v14, 7  ;;  %v11138_v17 = vld [vmem:[%s13085_s5] sm:$0xff]  ;;  %v33_v24 = vld [vmem:[%s13083_s3 + $0x48] sm:$0xff]  ;;  %v48_v37 = vld [vmem:[%s13084_s4 + $0x10] sm:$0xff]  ;;  %v570_v47 = vunpack.c.l.s4 %v11030_v46  ;;  %9303 = vst.msk [vmem:[#allocation2] sm:$0xff] %vm1636_vm4, %v11087_v2  ;;  %s11032_s16 = smov 120  }
   0x9   :  { %v32_v23 = vld [vmem:[%s13083_s3 + $0x40] sm:$0xff]  ;;  %v47_v27 = vld [vmem:[%s13084_s4 + $0x8] sm:$0xff]  ;;  %v49_v38 = vld [vmem:[%s13084_s4 + $0x18] sm:$0xff]  ;;  %s11033_s18 = smov 8   ;;  %vm9304_vm15 = vcmask 130112   ;;  %s11037_s21 = smov 24  }
   0xa   :  { %10044 = vmatmul.mubr.msk.f32.vlgmr.msra.gmra.mrb[0].mxu0 %vm62_vm0, %v56_v7  ;;  %13196 = vst [vmem:[#allocation8_spill] sm:$0xff] %v11115_v10  ;;  %10746 = vmatprep.subr.bf16.mxu1 %v11115_v10  ;;  %13197 = vst [vmem:[#allocation9_spill] sm:$0xff] %v11125_v13  ;;  %v11133_v16 = vsub.s32 0, %v11130_v15  ;;  %v11154_v25 = vpack.c.bf16 %v33_v24, %v32_v23  ;;  %v46_v26 = vld [vmem:[%s13084_s4] sm:$0xff]  ;;  %v13091_v29 = vsub.s32 1, %v11130_v15  ;;  %v13090_v41 = vsub.s32 2, %v11130_v15 }
   0xb   :  { %10748 = vmatpush3.bf16.msra.mxu1 %v11115_v10  ;;  %10750 = vmatprep.subr.bf16.mxu0 %v11125_v13  ;;  %13198 = vst [vmem:[#allocation10_spill] sm:$0xff] %v11130_v15  ;;  %v11165_v28 = vpack.c.bf16 %v47_v27, %v46_v26  ;;  %v11194_v39 = vpack.c.bf16 %v49_v38, %v48_v37  ;;  %v36_v40 = vld [vmem:[%s13083_s3 + $0x60] sm:$0xff]  ;;  %v571_v51 = vunpack.c.0.s8 %v570_v47  ;;  %v11231_v62 = vld [vmem:[%s13083_s3 + $0x58] sm:$0xff]  ;;  %v11236_v63 = vld [vmem:[%s13083_s3 + $0x50] sm:$0xff]  ;;  %s11038_s22 = smov 40   ;;  %s11041_s25 = smov 56  }
   0xc   :  { %10752 = vmatpush3.bf16.msra.mxu0 %v11125_v13  ;;  %v11142_v18 = vrot.slane %v11138_v17, %v11133_v16  ;;  %13200 = vst [vmem:[#allocation12_spill] sm:$0xff] %v11154_v25  ;;  %v11173_v30 = vrot.slane %v11138_v17, %v13091_v29  ;;  %v11206_v42 = vrot.slane %v11138_v17, %v13090_v41  ;;  %v51_v14 = vld [vmem:[%s13084_s4 + $0x28] sm:$0xff]  ;;  %s11042_s26 = smov [#allocation2]  }
   0xd   :  { %10754 = vmatprep.subr.bf16.mxu0 %v11154_v25  ;;  %13201 = vst [vmem:[#allocation13_spill] sm:$0xff] %v11165_v28  ;;  %10758 = vmatprep.subr.bf16.mxu1 %v11165_v28  ;;  %13203 = vst [vmem:[#allocation15_spill] sm:$0xff] %v11194_v39  ;;  %v11216_v54 = vsub.s32 %v571_v51, %v11130_v15  ;;  %s9378_s27 = sshll.u32 %s11042_s26, 4  ;;  %s9379_s27 = int_to_ptr.vmem [resolvable:$true] %s9378_s27 }
   0xe   :  { %13199 = vst [vmem:[#allocation11_spill] sm:$0xff] %v11142_v18  ;;  %13202 = vst [vmem:[#allocation14_spill] sm:$0xff] %v11173_v30  ;;  %s11006_s28 = scalar_lea.vmem %s9379_s27, 128  ;;  %p11011_p1 = scmp.lt.s32.totalorder %s9379_s27, %s9379_s27 }
   0xf   :  { %13204 = vst [vmem:[#allocation16_spill] sm:$0xff] %v11206_v42  ;;  %p11007_p0 = scmp.ne.s32.totalorder %s9379_s27, %s11006_s28  ;;  %p11012_p2 = scmp.lt.s32.totalorder %s11006_s28, %s11006_s28 }
  0x10   :  { %10756 = vmatpush3.bf16.msra.mxu0 %v11154_v25 }
  0x11   :  { %10766 = vmatprep.subr.bf16.mxu0 %v11099_v6  ;;  %p11013_p3 = por %p11012_p2, %p11011_p1 }
  0x13   :  { %p11014_p4 = pnand %p11013_p3, %p11007_p0 }
  0xdd   :  { %v10045_v19 = vpop.f32.mrb[0].mxu0 }
  0xde   :  { %v135_v20 = vpop.f32.mrb[1].mxu0  ;;  %v141_v22 = vadd.f32 %v10045_v19, %v11142_v18 }
  0xdf   :  { %v136_v21 = vadd.f32 %v135_v20, %v11142_v18 }
  0xe1   :  { %10054 = vmatprep.mubr.msk.f32.mxu1 %vm148_vm1, %v136_v21 }
  0xe2   :  { %10055 = vmatmul.mubr.msk.f32.vlgmr.msra.gmra.mrb[0].mxu1 %vm148_vm1, %v141_v22 }
  0xe3   :  { %10760 = vmatpush3.bf16.msra.mxu1 %v11165_v28 }
  0xe4   :  { %10762 = vmatprep.subr.bf16.mxu1 %v11194_v39 }
  0xe7   :  { %10764 = vmatpush3.bf16.msra.mxu1 %v11194_v39 }
  0xe8   :  { %10774 = vmatprep.subr.bf16.mxu1 %v11125_v13 }
 0x1b5   :  { %v10056_v31 = vpop.f32.mrb[0].mxu1 }
 0x1b6   :  { %v227_v32 = vadd.f32 %v10056_v31, %v11173_v30  ;;  %v221_v33 = vpop.f32.mrb[1].mxu1 }
 0x1b7   :  { %v222_v34 = vadd.f32 %v221_v33, %v11173_v30 }
 0x1b8   :  { %v231_v36 = vmax.f32 %v227_v32, 0.0 }
 0x1b9   :  { %v230_v35 = vmax.f32 %v222_v34, 0.0 }
 0x1bb   :  { %10065 = vmatprep.mubr.msk.f32.mxu0 %vm148_vm1, %v230_v35 }
 0x1bc   :  { %10066 = vmatmul.mubr.msk.f32.vlgmr.msra.gmra.mrb[2].mxu0 %vm148_vm1, %v231_v36 }
 0x1bd   :  { %10768 = vmatpush3.bf16.msra.mxu0 %v11099_v6  ;;  %10087 = vmatprep.mubr.msk.f32.mxu0 %vm148_vm1, %v230_v35 }
 0x1be   :  { %10770 = vmatprep.subr.bf16.mxu0 %v11115_v10 }
 0x1c1   :  { %10772 = vmatpush3.bf16.msra.mxu0 %v11115_v10 }
 0x1c2   :  { %10782 = vmatprep.subr.bf16.mxu0 %v11125_v13 }
 0x1c4   :  { %10088 = vmatmul.mubr.msk.f32.vlgmr.msra.gmra.mrb[4].mxu0 %vm148_vm1, %v231_v36 }
 0x1c5   :  { %10784 = vmatpush3.bf16.msra.mxu0 %v11125_v13 }
 0x1c6   :  { %10786 = vmatprep.subr.bf16.mxu0 %v11154_v25 }
 0x1c9   :  { %10788 = vmatpush3.bf16.msra.mxu0 %v11154_v25 }
 0x1ca   :  { %10213 = vmatprep.subr.mxu0 %v36_v40 }
 0x28f   :  { %v10067_v43 = vpop.f32.mrb[2].mxu0 }
 0x290   :  { %v314_v44 = vadd.f32 %v10067_v43, %v11206_v42  ;;  %v308_v45 = vpop.f32.mrb[3].mxu0 }
 0x291   :  { %v309_v48 = vadd.f32 %v308_v45, %v11206_v42 }
 0x292   :  { %v318_v50 = vmax.f32 %v314_v44, 0.0 }
 0x293   :  { %v317_v49 = vmax.f32 %v309_v48, 0.0 }
 0x295   :  { %10076 = vmatprep.mubr.msk.f32.mxu1 %vm148_vm1, %v317_v49 }
 0x296   :  { %10077 = vmatmul.mubr.msk.f32.vlgmr.msra.gmra.mrb[2].mxu1 %vm148_vm1, %v318_v50 }
 0x297   :  { %v10089_v52 = vpop.f32.mrb[4].mxu0  ;;  %10776 = vmatpush3.bf16.msra.mxu1 %v11125_v13  ;;  %10098 = vmatprep.mubr.msk.f32.mxu1 %vm148_vm1, %v317_v49 }
 0x298   :  { %v470_v53 = vpop.f32.mrb[5].mxu0  ;;  %10778 = vmatprep.subr.bf16.mxu1 %v11154_v25  ;;  %v476_v26 = vadd.f32 %v10089_v52, %v11173_v30 }
 0x299   :  { %v471_v55 = vadd.f32 %v470_v53, %v11173_v30 }
 0x29a   :  { %vm480_vm3 = vcmp.gt.f32.partialorder %v476_v26, 0.0 }
 0x29b   :  { %vm479_vm2 = vcmp.gt.f32.partialorder %v471_v55, 0.0  ;;  %10780 = vmatpush3.bf16.msra.mxu1 %v11154_v25  ;;  %v9397_v38 = vsel %vm480_vm3, 1.0, %v13092_v56  ;;  %vm9320_vm3 = vcmask 1041409  }
 0x29c   :  { %v9396_v57 = vsel %vm479_vm2, 1.0, %v13092_v56  ;;  %10790 = vmatprep.subr.bf16.mxu1 %v11165_v28  ;;  %v624_v43 = vrot.slane %v9397_v38, %v11216_v54  ;;  %vm11035_vm2 = vmmov 0  }
 0x29d   :  { %v575_v58 = vrot.slane %v9396_v57, %v11216_v54  ;;  %v568_v0 = vcombine.high %v9396_v57, %v9396_v57 }
 0x29e   :  { %10099 = vmatmul.mubr.msk.f32.vlgmr.msra.gmra.mrb[4].mxu1 %vm148_vm1, %v318_v50  ;;  %v632_v48 = vcombine.high %v624_v43, %v624_v43  ;;  %v640_v49 = vrot.slane %v624_v43, %v11216_v54 }
 0x29f   :  { %v583_v59 = vcombine.high %v575_v58, %v575_v58  ;;  %10792 = vmatpush3.bf16.msra.mxu1 %v11165_v28  ;;  %v591_v60 = vrot.slane %v575_v58, %v11216_v54  ;;  %v582_v11 = vrot.slane %v568_v0, %v11216_v54 }
 0x2a0   :  { %10794 = vmatprep.subr.bf16.mxu1 %v11194_v39  ;;  %v654_v53 = vrot.slane %v632_v48, %v11216_v54  ;;  %v701_v55 = vrot.slane %v640_v49, %v11133_v16 }
 0x2a1   :  { %v605_v61 = vrot.slane %v583_v59, %v11216_v54  ;;  %v613_v1 = vcombine.high %v591_v60, %v591_v60  ;;  %v669_v4 = vrot.slane %v591_v60, %v11133_v16  ;;  %v584_v21 = vcombine.high %v582_v11, %v582_v11 }
 0x2a2   :  { %v598_v22 = vrot.slane %v582_v11, %v11216_v54  ;;  %v617_v59 = vcombine.high %v9397_v38, %v9397_v38  ;;  %v662_v60 = vcombine.high %v640_v49, %v640_v49  ;;  %v762_v0 = vmul.f32 %v701_v55, %v11236_v63 }
 0x2a3   :  { %10796 = vmatpush3.bf16.msra.mxu1 %v11194_v39  ;;  %v673_v5 = vrot.slane %v605_v61, %v11133_v16  ;;  %v747_v7 = vmul.f32 %v669_v4, %v11231_v62  ;;  %v746_v8 = vmul.f32 %v669_v4, %v11236_v63  ;;  %v615_v12 = vcombine.high %v605_v61, %v605_v61 }
 0x2a4   :  { %v677_v19 = vrot.slane %v613_v1, %v11133_v16  ;;  %v612_v31 = vrot.slane %v584_v21, %v11216_v54  ;;  %v685_v32 = vrot.slane %v598_v22, %v11133_v16  ;;  %v614_v35 = vcombine.high %v598_v22, %v598_v22 }
 0x2a5   :  { %v748_v9 = vmul.f32 %v673_v5, %v11236_v63  ;;  %10109 = vmatprep.mubr.msk.f32.mxu0 %vm148_vm1, %v746_v8  ;;  %v749_v20 = vmul.f32 %v673_v5, %v11231_v62  ;;  %v681_v24 = vrot.slane %v615_v12, %v11133_v16  ;;  %v705_v61 = vrot.slane %v654_v53, %v11133_v16 }
 0x2a6   :  { %10110 = vmatmul.mubr.msk.f32.vlgmr.msra.gmra.mrb[6].mxu0 %vm148_vm1, %v747_v7  ;;  %v750_v23 = vmul.f32 %v677_v19, %v11236_v63  ;;  %v751_v27 = vmul.f32 %v677_v19, %v11231_v62  ;;  %v754_v36 = vmul.f32 %v685_v32, %v11236_v63  ;;  %v689_v37 = vrot.slane %v612_v31, %v11133_v16 }
 0x2a7   :  { %10112 = vmatprep.mubr.msk.f32.mxu0 %vm148_vm1, %v748_v9  ;;  %10214 = vmatpush3.msra.mxu0 %v36_v40  ;;  %v752_v33 = vmul.f32 %v681_v24, %v11236_v63  ;;  %v753_v34 = vmul.f32 %v681_v24, %v11231_v62  ;;  %v755_v40 = vmul.f32 %v685_v32, %v11231_v62 }
 0x2a8   :  { %v616_v44 = vcombine.high %v612_v31, %v612_v31  ;;  %v756_v45 = vmul.f32 %v689_v37, %v11236_v63  ;;  %v693_v46 = vrot.slane %v614_v35, %v11133_v16  ;;  %v757_v47 = vmul.f32 %v689_v37, %v11231_v62 }
 0x2a9   :  { %v763_v1 = vmul.f32 %v701_v55, %v11231_v62  ;;  %v631_v4 = vrot.slane %v617_v59, %v11216_v54  ;;  %v664_v5 = vcombine.high %v654_v53, %v654_v53  ;;  %v709_v7 = vrot.slane %v662_v60, %v11133_v16 }
 0x2aa   :  { %10113 = vmatmul.mubr.msk.f32.gmra.mrb[8].mxu0 %vm148_vm1, %v749_v20  ;;  %v758_v50 = vmul.f32 %v693_v46, %v11236_v63  ;;  %v697_v51 = vrot.slane %v616_v44, %v11133_v16  ;;  %v759_v52 = vmul.f32 %v693_v46, %v11231_v62  ;;  %v764_v8 = vmul.f32 %v705_v61, %v11236_v63  ;;  %v37_v46 = vld [vmem:[%s13083_s3 + $0x68] sm:$0xff] }
 0x2ab   :  { %10115 = vmatprep.mubr.msk.f32.mxu0 %vm148_vm1, %v750_v23  ;;  %v765_v9 = vmul.f32 %v705_v61, %v11231_v62  ;;  %v633_v11 = vcombine.high %v631_v4, %v631_v4  ;;  %v647_v12 = vrot.slane %v631_v4, %v11216_v54  ;;  %v766_v19 = vmul.f32 %v709_v7, %v11236_v63 }
 0x2ac   :  { %v760_v57 = vmul.f32 %v697_v51, %v11236_v63  ;;  %v761_v58 = vmul.f32 %v697_v51, %v11231_v62  ;;  %v713_v20 = vrot.slane %v664_v5, %v11133_v16  ;;  %v767_v21 = vmul.f32 %v709_v7, %v11231_v62 }
 0x2ad   :  { %v661_v22 = vrot.slane %v633_v11, %v11216_v54  ;;  %v717_v23 = vrot.slane %v647_v12, %v11133_v16 }
 0x2ae   :  { %10116 = vmatmul.mubr.msk.f32.gmra.mrb[10].mxu0 %vm148_vm1, %v751_v27  ;;  %v768_v24 = vmul.f32 %v713_v20, %v11236_v63  ;;  %v769_v26 = vmul.f32 %v713_v20, %v11231_v62  ;;  %v663_v27 = vcombine.high %v647_v12, %v647_v12 }
 0x2af   :  { %10118 = vmatprep.mubr.msk.f32.mxu0 %vm148_vm1, %v752_v33  ;;  %v770_v31 = vmul.f32 %v717_v23, %v11236_v63  ;;  %v721_v32 = vrot.slane %v661_v22, %v11133_v16  ;;  %v771_v33 = vmul.f32 %v717_v23, %v11231_v62 }
 0x2b1   :  { %v772_v35 = vmul.f32 %v721_v32, %v11236_v63  ;;  %v773_v37 = vmul.f32 %v721_v32, %v11231_v62 }
 0x2b2   :  { %10119 = vmatmul.mubr.msk.f32.gmra.mrb[12].mxu0 %vm148_vm1, %v753_v34  ;;  %v665_v34 = vcombine.high %v661_v22, %v661_v22 }
 0x2b3   :  { %10121 = vmatprep.mubr.msk.f32.mxu0 %vm148_vm1, %v754_v36  ;;  %v725_v36 = vrot.slane %v663_v27, %v11133_v16 }
 0x2b5   :  { %v774_v38 = vmul.f32 %v725_v36, %v11236_v63  ;;  %v775_v43 = vmul.f32 %v725_v36, %v11231_v62 }
 0x2b6   :  { %10122 = vmatmul.mubr.msk.f32.gmra.mrb[14].mxu0 %vm148_vm1, %v755_v40  ;;  %v729_v40 = vrot.slane %v665_v34, %v11133_v16 }
 0x2b7   :  { %10124 = vmatprep.mubr.msk.f32.mxu0 %vm148_vm1, %v756_v45 }
 0x2b8   :  { %v776_v44 = vmul.f32 %v729_v40, %v11236_v63  ;;  %v777_v45 = vmul.f32 %v729_v40, %v11231_v62  ;;  %v38_v63 = vld [vmem:[%s13083_s3 + $0x70] sm:$0xff]  ;;  %v13089_v62 = vsub.s32 3, %v11130_v15 }
 0x2ba   :  { %10125 = vmatmul.mubr.msk.f32.gmra.mrb[16].mxu0 %vm148_vm1, %v757_v47  ;;  %v11338_v47 = vpack.c.bf16 %v38_v63, %v37_v46  ;;  %v11345_v48 = vrot.slane %v11138_v17, %v13089_v62 }
 0x2bb   :  { %10127 = vmatprep.mubr.msk.f32.mxu0 %vm148_vm1, %v758_v50 }
 0x2bc   :  { %13205 = vst [vmem:[#allocation17_spill] sm:$0xff] %v11338_v47  ;;  %10798 = vmatprep.subr.bf16.mxu1 %v11338_v47  ;;  %13206 = vst [vmem:[#allocation18_spill] sm:$0xff] %v11345_v48 }
 0x2be   :  { %10128 = vmatmul.mubr.msk.f32.gmra.mrb[18].mxu0 %vm148_vm1, %v759_v52 }
 0x2bf   :  { %10130 = vmatprep.mubr.msk.f32.mxu0 %vm148_vm1, %v760_v57 }
 0x2c2   :  { %10131 = vmatmul.mubr.msk.f32.gmra.mrb[20].mxu0 %vm148_vm1, %v761_v58 }
 0x2c3   :  { %10133 = vmatprep.mubr.msk.f32.mxu0 %vm148_vm1, %v762_v0 }
 0x2c6   :  { %10134 = vmatmul.mubr.msk.f32.gmra.mrb[22].mxu0 %vm148_vm1, %v763_v1 }
 0x2c7   :  { %10136 = vmatprep.mubr.msk.f32.mxu0 %vm148_vm1, %v764_v8 }
 0x2ca   :  { %10137 = vmatmul.mubr.msk.f32.gmra.mrb[24].mxu0 %vm148_vm1, %v765_v9 }
 0x2cb   :  { %10139 = vmatprep.mubr.msk.f32.mxu0 %vm148_vm1, %v766_v19 }
 0x2ce   :  { %10140 = vmatmul.mubr.msk.f32.gmra.mrb[26].mxu0 %vm148_vm1, %v767_v21 }
 0x2cf   :  { %10142 = vmatprep.mubr.msk.f32.mxu0 %vm148_vm1, %v768_v24 }
 0x2d2   :  { %10143 = vmatmul.mubr.msk.f32.gmra.mrb[28].mxu0 %vm148_vm1, %v769_v26 }
 0x2d3   :  { %10145 = vmatprep.mubr.msk.f32.mxu0 %vm148_vm1, %v770_v31 }
 0x2d6   :  { %10146 = vmatmul.mubr.msk.f32.gmra.mrb[30].mxu0 %vm148_vm1, %v771_v33 }
 0x2d7   :  { %10148 = vmatprep.mubr.msk.f32.mxu0 %vm148_vm1, %v772_v35 }
 0x2da   :  { %10149 = vmatmul.mubr.msk.f32.gmra.mrb[32].mxu0 %vm148_vm1, %v773_v37 }
 0x2db   :  { %10151 = vmatprep.mubr.msk.f32.mxu0 %vm148_vm1, %v774_v38 }
 0x2de   :  { %10152 = vmatmul.mubr.msk.f32.gmra.mrb[34].mxu0 %vm148_vm1, %v775_v43 }
 0x2df   :  { %10154 = vmatprep.mubr.msk.f32.mxu0 %vm148_vm1, %v776_v44 }
 0x2e2   :  { %10155 = vmatmul.mubr.msk.f32.gmra.mrb[36].mxu0 %vm148_vm1, %v777_v45 }
 0x369   :  { %v10078_v49 = vpop.f32.mrb[2].mxu1 }
 0x36a   :  { %v395_v50 = vpop.f32.mrb[3].mxu1  ;;  %v11351_v52 = vadd.f32 %v10078_v49, %v11345_v48 }
 0x36b   :  { %v11348_v51 = vadd.f32 %v395_v50, %v11345_v48 }
 0x36c   :  { %13207 = vst [vmem:[#allocation19_spill] sm:$0xff] %v11351_v52 }
 0x36d   :  { %10215 = vmatprep.mubr.msk.f32.mxu0 %vm1636_vm4, %v11348_v51 }
 0x36e   :  { %10216 = vmatmul.mubr.msk.f32.vlgmr.msra.gmra.mrb[38].mxu0 %vm1636_vm4, %v11351_v52 }
 0x371   :  { %v10100_v53 = vpop.f32.mrb[4].mxu1 }
 0x372   :  { %v551_v55 = vpop.f32.mrb[5].mxu1  ;;  %v557_v38 = vadd.f32 %v10100_v53, %v11206_v42 }
 0x373   :  { %v552_v57 = vadd.f32 %v551_v55, %v11206_v42 }
 0x374   :  { %vm561_vm6 = vcmp.gt.f32.partialorder %v557_v38, 0.0 }
 0x375   :  { %vm560_vm5 = vcmp.gt.f32.partialorder %v552_v57, 0.0 }
 0x376   :  { %v9400_v58 = vsel %vm560_vm5, 1.0, %v13092_v56  ;;  %vm9322_vm5 = vcmask 1042434  }
 0x377   :  { %v1108_v59 = vrot.slane %v9400_v58, %v11216_v54  ;;  %v1101_v11 = vcombine.high %v9400_v58, %v9400_v58  ;;  %v9401_v58 = vsel %vm561_vm6, 1.0, %v13092_v56  ;;  %vm9324_vm6 = vcmask 1043459  }
 0x379   :  { %v1116_v60 = vcombine.high %v1108_v59, %v1108_v59  ;;  %v1124_v61 = vrot.slane %v1108_v59, %v11216_v54  ;;  %v10111_v4 = vpop.f32.mrb[6].mxu0  ;;  %v1115_v23 = vrot.slane %v1101_v11, %v11216_v54 }
 0x37a   :  { %v940_v7 = vpop.f32.mrb[7].mxu0 }
 0x37b   :  { %v1202_v0 = vrot.slane %v1124_v61, %v11133_v16  ;;  %v1138_v1 = vrot.slane %v1116_v60, %v11216_v54  ;;  %v1146_v12 = vcombine.high %v1124_v61, %v1124_v61  ;;  %v1131_v35 = vrot.slane %v1115_v23, %v11216_v54 }
 0x37c   :  { %v1117_v36 = vcombine.high %v1115_v23, %v1115_v23 }
 0x37d   :  { %v1280_v5 = vmul.f32 %v10111_v4, %v1202_v0  ;;  %v1206_v8 = vrot.slane %v1138_v1, %v11133_v16  ;;  %v1279_v9 = vmul.f32 %v1202_v0, %v940_v7  ;;  %v10114_v19 = vpop.f32.mrb[8].mxu0  ;;  %v1210_v24 = vrot.slane %v1146_v12, %v11133_v16 }
 0x37e   :  { %v950_v21 = vpop.f32.mrb[9].mxu0  ;;  %v1148_v26 = vcombine.high %v1138_v1, %v1138_v1  ;;  %v1218_v45 = vrot.slane %v1131_v35, %v11133_v16  ;;  %v1145_v46 = vrot.slane %v1117_v36, %v11216_v54  ;;  %v1147_v57 = vcombine.high %v1131_v35, %v1131_v35 }
 0x37f   :  { %10165 = vmatprep.mubr.msk.f32.mxu1 %vm148_vm1, %v1279_v9  ;;  %v1282_v20 = vmul.f32 %v10114_v19, %v1206_v8  ;;  %v1281_v22 = vmul.f32 %v1206_v8, %v950_v21  ;;  %v1157_v1 = vrot.slane %v9401_v58, %v11216_v54  ;;  %v1150_v35 = vcombine.high %v9401_v58, %v9401_v58 }
 0x380   :  { %10166 = vmatmul.mubr.msk.f32.vlgmr.msra.gmra.mrb[6].mxu1 %vm148_vm1, %v1280_v5  ;;  %v1214_v34 = vrot.slane %v1148_v26, %v11133_v16  ;;  %v1222_v53 = vrot.slane %v1145_v46, %v11133_v16  ;;  %v1226_v4 = vrot.slane %v1147_v57, %v11133_v16  ;;  %v1149_v5 = vcombine.high %v1145_v46, %v1145_v46 }
 0x381   :  { %10800 = vmatpush3.bf16.msra.mxu1 %v11338_v47  ;;  %v10117_v27 = vpop.f32.mrb[10].mxu0  ;;  %10168 = vmatprep.mubr.msk.f32.mxu1 %vm148_vm1, %v1281_v22  ;;  %v1165_v12 = vcombine.high %v1157_v1, %v1157_v1 }
 0x382   :  { %v1284_v31 = vmul.f32 %v10117_v27, %v1210_v24  ;;  %v960_v32 = vpop.f32.mrb[11].mxu0  ;;  %v1230_v19 = vrot.slane %v1149_v5, %v11133_v16 }
 0x383   :  { %v1283_v33 = vmul.f32 %v1210_v24, %v960_v32  ;;  %v1187_v27 = vrot.slane %v1165_v12, %v11216_v54 }
 0x384   :  { %10169 = vmatmul.mubr.msk.f32.gmra.mrb[8].mxu1 %vm148_vm1, %v1282_v20  ;;  %v1173_v20 = vrot.slane %v1157_v1, %v11216_v54 }
 0x385   :  { %v10120_v37 = vpop.f32.mrb[12].mxu0  ;;  %10171 = vmatprep.mubr.msk.f32.mxu1 %vm148_vm1, %v1283_v33  ;;  %v1238_v36 = vrot.slane %v1187_v27, %v11133_v16 }
 0x386   :  { %v1286_v40 = vmul.f32 %v10120_v37, %v1214_v34  ;;  %v970_v43 = vpop.f32.mrb[13].mxu0  ;;  %v1234_v26 = vrot.slane %v1173_v20, %v11133_v16  ;;  %v1195_v37 = vcombine.high %v1173_v20, %v1173_v20 }
 0x387   :  { %v1285_v44 = vmul.f32 %v1214_v34, %v970_v43 }
 0x388   :  { %10172 = vmatmul.mubr.msk.f32.gmra.mrb[10].mxu1 %vm148_vm1, %v1284_v31  ;;  %v1242_v46 = vrot.slane %v1195_v37, %v11133_v16 }
 0x389   :  { %v10123_v63 = vpop.f32.mrb[14].mxu0  ;;  %10174 = vmatprep.mubr.msk.f32.mxu1 %vm148_vm1, %v1285_v44 }
 0x38a   :  { %v1288_v49 = vmul.f32 %v10123_v63, %v1218_v45  ;;  %v980_v50 = vpop.f32.mrb[15].mxu0  ;;  %v1197_v63 = vcombine.high %v1187_v27, %v1187_v27 }
 0x38b   :  { %v1287_v55 = vmul.f32 %v1218_v45, %v980_v50  ;;  %v1164_v45 = vrot.slane %v1150_v35, %v11216_v54 }
 0x38c   :  { %10175 = vmatmul.mubr.msk.f32.gmra.mrb[12].mxu1 %vm148_vm1, %v1286_v40  ;;  %v1246_v57 = vrot.slane %v1197_v63, %v11133_v16 }
 0x38d   :  { %v10126_v59 = vpop.f32.mrb[16].mxu0  ;;  %10177 = vmatprep.mubr.msk.f32.mxu1 %vm148_vm1, %v1287_v55  ;;  %v1180_v58 = vrot.slane %v1164_v45, %v11216_v54 }
 0x38e   :  { %v1290_v60 = vmul.f32 %v10126_v59, %v1222_v53  ;;  %v990_v61 = vpop.f32.mrb[17].mxu0  ;;  %v1166_v59 = vcombine.high %v1164_v45, %v1164_v45  ;;  %v41_v45 = vld [vmem:[%s13083_s3 + $0x88] sm:$0xff] }
 0x38f   :  { %v1289_v0 = vmul.f32 %v1222_v53, %v990_v61 }
 0x390   :  { %10178 = vmatmul.mubr.msk.f32.gmra.mrb[14].mxu1 %vm148_vm1, %v1288_v49  ;;  %v1194_v5 = vrot.slane %v1166_v59, %v11216_v54 }
 0x391   :  { %v10129_v7 = vpop.f32.mrb[18].mxu0  ;;  %10180 = vmatprep.mubr.msk.f32.mxu1 %vm148_vm1, %v1289_v0 }
 0x392   :  { %v1292_v8 = vmul.f32 %v10129_v7, %v1226_v4  ;;  %v1000_v9 = vpop.f32.mrb[19].mxu0  ;;  %v1254_v12 = vrot.slane %v1194_v5, %v11133_v16 }
 0x393   :  { %v1291_v11 = vmul.f32 %v1226_v4, %v1000_v9  ;;  %v1250_v4 = vrot.slane %v1180_v58, %v11133_v16 }
 0x394   :  { %10181 = vmatmul.mubr.msk.f32.gmra.mrb[16].mxu1 %vm148_vm1, %v1290_v60 }
 0x395   :  { %v10132_v21 = vpop.f32.mrb[20].mxu0  ;;  %10183 = vmatprep.mubr.msk.f32.mxu1 %vm148_vm1, %v1291_v11 }
 0x396   :  { %v1294_v22 = vmul.f32 %v10132_v21, %v1230_v19  ;;  %v1010_v23 = vpop.f32.mrb[21].mxu0 }
 0x397   :  { %v1293_v24 = vmul.f32 %v1230_v19, %v1010_v23  ;;  %v1196_v19 = vcombine.high %v1180_v58, %v1180_v58 }
 0x398   :  { %10184 = vmatmul.mubr.msk.f32.gmra.mrb[18].mxu1 %vm148_vm1, %v1292_v8 }
 0x399   :  { %v10135_v31 = vpop.f32.mrb[22].mxu0  ;;  %10186 = vmatprep.mubr.msk.f32.mxu1 %vm148_vm1, %v1293_v24  ;;  %v1258_v24 = vrot.slane %v1196_v19, %v11133_v16 }
 0x39a   :  { %v1296_v32 = vmul.f32 %v10135_v31, %v1234_v26  ;;  %v1020_v33 = vpop.f32.mrb[23].mxu0 }
 0x39b   :  { %v1295_v34 = vmul.f32 %v1234_v26, %v1020_v33  ;;  %v1198_v26 = vcombine.high %v1194_v5, %v1194_v5 }
 0x39c   :  { %10187 = vmatmul.mubr.msk.f32.gmra.mrb[20].mxu1 %vm148_vm1, %v1294_v22 }
 0x39d   :  { %v10138_v38 = vpop.f32.mrb[24].mxu0  ;;  %10189 = vmatprep.mubr.msk.f32.mxu1 %vm148_vm1, %v1295_v34  ;;  %v1262_v34 = vrot.slane %v1198_v26, %v11133_v16 }
 0x39e   :  { %v1298_v40 = vmul.f32 %v10138_v38, %v1238_v36  ;;  %v1030_v43 = vpop.f32.mrb[25].mxu0 }
 0x39f   :  { %v1297_v44 = vmul.f32 %v1238_v36, %v1030_v43  ;;  %v40_v43 = vld [vmem:[%s13083_s3 + $0x80] sm:$0xff] }
 0x3a0   :  { %10190 = vmatmul.mubr.msk.f32.gmra.mrb[22].mxu1 %vm148_vm1, %v1296_v32 }
 0x3a1   :  { %v10141_v49 = vpop.f32.mrb[26].mxu0  ;;  %10192 = vmatprep.mubr.msk.f32.mxu1 %vm148_vm1, %v1297_v44 }
 0x3a2   :  { %v1300_v50 = vmul.f32 %v10141_v49, %v1242_v46  ;;  %v1040_v55 = vpop.f32.mrb[27].mxu0  ;;  %v13088_v49 = vsub.s32 4, %v11130_v15 }
 0x3a3   :  { %v1299_v53 = vmul.f32 %v1242_v46, %v1040_v55  ;;  %v42_v46 = vld [vmem:[%s13083_s3 + $0x90] sm:$0xff] }
 0x3a4   :  { %10193 = vmatmul.mubr.msk.f32.gmra.mrb[24].mxu1 %vm148_vm1, %v1298_v40  ;;  %v39_v40 = vld [vmem:[%s13083_s3 + $0x78] sm:$0xff]  ;;  %v11438_v63 = vpack.c.bf16 %v42_v46, %v41_v45 }
 0x3a5   :  { %v10144_v60 = vpop.f32.mrb[28].mxu0  ;;  %10195 = vmatprep.mubr.msk.f32.mxu1 %vm148_vm1, %v1299_v53  ;;  %v11428_v44 = vpack.c.bf16 %v40_v43, %v39_v40 }
 0x3a6   :  { %v1302_v61 = vmul.f32 %v10144_v60, %v1246_v57  ;;  %v1050_v0 = vpop.f32.mrb[29].mxu0  ;;  %13209 = vst [vmem:[#allocation21_spill] sm:$0xff] %v11438_v63  ;;  %10806 = vmatprep.subr.bf16.mxu0 %v11438_v63 }
 0x3a7   :  { %v1301_v1 = vmul.f32 %v1246_v57, %v1050_v0  ;;  %13208 = vst [vmem:[#allocation20_spill] sm:$0xff] %v11428_v44  ;;  %10802 = vmatprep.subr.bf16.mxu1 %v11428_v44  ;;  %10808 = vmatpush3.bf16.msra.mxu0 %v11438_v63 }
 0x3a8   :  { %10196 = vmatmul.mubr.msk.f32.gmra.mrb[26].mxu1 %vm148_vm1, %v1300_v50  ;;  %v11446_v50 = vrot.slane %v11138_v17, %v13088_v49 }
 0x3a9   :  { %v10147_v7 = vpop.f32.mrb[30].mxu0  ;;  %10198 = vmatprep.mubr.msk.f32.mxu1 %vm148_vm1, %v1301_v1  ;;  %10804 = vmatpush3.bf16.msra.mxu1 %v11428_v44 }
 0x3aa   :  { %v1304_v8 = vmul.f32 %v10147_v7, %v1250_v4  ;;  %v1060_v9 = vpop.f32.mrb[31].mxu0  ;;  %13210 = vst [vmem:[#allocation22_spill] sm:$0xff] %v11446_v50 }
 0x3ab   :  { %v1303_v11 = vmul.f32 %v1250_v4, %v1060_v9 }
 0x3ac   :  { %10199 = vmatmul.mubr.msk.f32.gmra.mrb[28].mxu1 %vm148_vm1, %v1302_v61 }
 0x3ad   :  { %v10150_v20 = vpop.f32.mrb[32].mxu0  ;;  %10201 = vmatprep.mubr.msk.f32.mxu1 %vm148_vm1, %v1303_v11 }
 0x3ae   :  { %v1306_v21 = vmul.f32 %v10150_v20, %v1254_v12  ;;  %v1070_v22 = vpop.f32.mrb[33].mxu0 }
 0x3af   :  { %v1305_v23 = vmul.f32 %v1254_v12, %v1070_v22 }
 0x3b0   :  { %10202 = vmatmul.mubr.msk.f32.gmra.mrb[30].mxu1 %vm148_vm1, %v1304_v8 }
 0x3b1   :  { %v10153_v27 = vpop.f32.mrb[34].mxu0  ;;  %10204 = vmatprep.mubr.msk.f32.mxu1 %vm148_vm1, %v1305_v23 }
 0x3b2   :  { %v1308_v31 = vmul.f32 %v10153_v27, %v1258_v24  ;;  %v1080_v32 = vpop.f32.mrb[35].mxu0 }
 0x3b3   :  { %v1307_v33 = vmul.f32 %v1258_v24, %v1080_v32 }
 0x3b4   :  { %10205 = vmatmul.mubr.msk.f32.gmra.mrb[32].mxu1 %vm148_vm1, %v1306_v21 }
 0x3b5   :  { %v10156_v35 = vpop.f32.mrb[36].mxu0  ;;  %10207 = vmatprep.mubr.msk.f32.mxu1 %vm148_vm1, %v1307_v33 }
 0x3b6   :  { %v1310_v36 = vmul.f32 %v10156_v35, %v1262_v34  ;;  %v1090_v37 = vpop.f32.mrb[37].mxu0 }
 0x3b7   :  { %v1309_v38 = vmul.f32 %v1262_v34, %v1090_v37 }
 0x3b8   :  { %10208 = vmatmul.mubr.msk.f32.gmra.mrb[34].mxu1 %vm148_vm1, %v1308_v31 }
 0x3b9   :  { %10210 = vmatprep.mubr.msk.f32.mxu1 %vm148_vm1, %v1309_v38 }
 0x3bc   :  { %10211 = vmatmul.mubr.msk.f32.gmra.mrb[36].mxu1 %vm148_vm1, %v1310_v36 }
 0x441   :  { %v10217_v55 = vpop.f32.mrb[38].mxu0 }
 0x442   :  { %v1709_v53 = vpop.f32.mrb[39].mxu0  ;;  %v1715_v58 = vadd.f32 %v10217_v55, %v11446_v50  ;;  %v43_v55 = vld [vmem:[%s13083_s3 + $0x98] sm:$0xff] }
 0x443   :  { %v1710_v57 = vadd.f32 %v1709_v53, %v11446_v50  ;;  %v44_v53 = vld [vmem:[%s13083_s3 + $0xa0] sm:$0xff] }
 0x445   :  { %10226 = vmatprep.mubr.msk.f32.mxu1 %vm148_vm1, %v1710_v57  ;;  %v11522_v57 = vpack.c.bf16 %v44_v53, %v43_v55  ;;  %v13095_v55 = vsub.s32 5, %v11130_v15 }
 0x446   :  { %10227 = vmatmul.mubr.msk.f32.vlgmr.msra.gmra.mrb[38].mxu1 %vm148_vm1, %v1715_v58  ;;  %v50_v58 = vld [vmem:[%s13084_s4 + $0x20] sm:$0xff] }
 0x447   :  { %13242 = vst [vmem:[#allocation54_spill] sm:$0xff] %v11522_v57  ;;  %10810 = vmatprep.subr.bf16.mxu0 %v11522_v57  ;;  %v11533_v49 = vpack.c.bf16 %v51_v14, %v50_v58  ;;  %v11541_v53 = vrot.slane %v11138_v17, %v13095_v55 }
 0x448   :  { %10812 = vmatpush3.bf16.msra.mxu0 %v11522_v57 }
 0x449   :  { %10822 = vmatprep.subr.bf16.mxu0 %v11338_v47  ;;  %13243 = vst [vmem:[#allocation55_spill] sm:$0xff] %v11533_v49  ;;  %10814 = vmatprep.subr.bf16.mxu1 %v11533_v49  ;;  %13244 = vst [vmem:[#allocation56_spill] sm:$0xff] %v11541_v53 }
 0x44a   :  { %10816 = vmatpush3.bf16.msra.mxu1 %v11533_v49 }
 0x453   :  { %v11452_v59 = vpop.f32.mrb[6].mxu1 }
 0x454   :  { %v11454_v60 = vpop.f32.mrb[7].mxu1 }
 0x455   :  { %13211 = vst [vmem:[#allocation23_spill] sm:$0xff] %v11454_v60 }
 0x457   :  { %v11456_v61 = vpop.f32.mrb[8].mxu1 }
 0x458   :  { %13212 = vst [vmem:[#allocation24_spill] sm:$0xff] %v11456_v61  ;;  %v11458_v0 = vpop.f32.mrb[9].mxu1 }
 0x459   :  { %13213 = vst [vmem:[#allocation25_spill] sm:$0xff] %v11458_v0 }
 0x45b   :  { %v11460_v1 = vpop.f32.mrb[10].mxu1 }
 0x45c   :  { %13214 = vst [vmem:[#allocation26_spill] sm:$0xff] %v11460_v1  ;;  %v11462_v4 = vpop.f32.mrb[11].mxu1 }
 0x45d   :  { %13215 = vst [vmem:[#allocation27_spill] sm:$0xff] %v11462_v4 }
 0x45f   :  { %v11464_v5 = vpop.f32.mrb[12].mxu1 }
 0x460   :  { %13216 = vst [vmem:[#allocation28_spill] sm:$0xff] %v11464_v5  ;;  %v11466_v7 = vpop.f32.mrb[13].mxu1 }
 0x461   :  { %13217 = vst [vmem:[#allocation29_spill] sm:$0xff] %v11466_v7 }
 0x463   :  { %v11468_v8 = vpop.f32.mrb[14].mxu1 }
 0x464   :  { %13218 = vst [vmem:[#allocation30_spill] sm:$0xff] %v11468_v8  ;;  %v11470_v9 = vpop.f32.mrb[15].mxu1 }
 0x465   :  { %13219 = vst [vmem:[#allocation31_spill] sm:$0xff] %v11470_v9 }
 0x467   :  { %v11472_v11 = vpop.f32.mrb[16].mxu1 }
 0x468   :  { %13220 = vst [vmem:[#allocation32_spill] sm:$0xff] %v11472_v11  ;;  %v11474_v12 = vpop.f32.mrb[17].mxu1 }
 0x469   :  { %13221 = vst [vmem:[#allocation33_spill] sm:$0xff] %v11474_v12 }
 0x46b   :  { %v11476_v19 = vpop.f32.mrb[18].mxu1 }
 0x46c   :  { %13222 = vst [vmem:[#allocation34_spill] sm:$0xff] %v11476_v19  ;;  %v11478_v20 = vpop.f32.mrb[19].mxu1 }
 0x46d   :  { %13223 = vst [vmem:[#allocation35_spill] sm:$0xff] %v11478_v20 }
 0x46f   :  { %v11480_v21 = vpop.f32.mrb[20].mxu1 }
 0x470   :  { %13224 = vst [vmem:[#allocation36_spill] sm:$0xff] %v11480_v21  ;;  %v11482_v22 = vpop.f32.mrb[21].mxu1 }
 0x471   :  { %13225 = vst [vmem:[#allocation37_spill] sm:$0xff] %v11482_v22 }
 0x473   :  { %v11484_v23 = vpop.f32.mrb[22].mxu1 }
 0x474   :  { %13226 = vst [vmem:[#allocation38_spill] sm:$0xff] %v11484_v23  ;;  %v11486_v24 = vpop.f32.mrb[23].mxu1 }
 0x475   :  { %13227 = vst [vmem:[#allocation39_spill] sm:$0xff] %v11486_v24 }
 0x477   :  { %v11488_v26 = vpop.f32.mrb[24].mxu1 }
 0x478   :  { %13228 = vst [vmem:[#allocation40_spill] sm:$0xff] %v11488_v26  ;;  %v11490_v27 = vpop.f32.mrb[25].mxu1 }
 0x479   :  { %13229 = vst [vmem:[#allocation41_spill] sm:$0xff] %v11490_v27 }
 0x47b   :  { %v11492_v31 = vpop.f32.mrb[26].mxu1 }
 0x47c   :  { %13230 = vst [vmem:[#allocation42_spill] sm:$0xff] %v11492_v31  ;;  %v11494_v32 = vpop.f32.mrb[27].mxu1 }
 0x47d   :  { %13231 = vst [vmem:[#allocation43_spill] sm:$0xff] %v11494_v32 }
 0x47f   :  { %v11496_v33 = vpop.f32.mrb[28].mxu1 }
 0x480   :  { %13232 = vst [vmem:[#allocation44_spill] sm:$0xff] %v11496_v33  ;;  %v11498_v34 = vpop.f32.mrb[29].mxu1 }
 0x481   :  { %13233 = vst [vmem:[#allocation45_spill] sm:$0xff] %v11498_v34 }
 0x483   :  { %v11500_v35 = vpop.f32.mrb[30].mxu1 }
 0x484   :  { %13234 = vst [vmem:[#allocation46_spill] sm:$0xff] %v11500_v35  ;;  %v11502_v36 = vpop.f32.mrb[31].mxu1 }
 0x485   :  { %13235 = vst [vmem:[#allocation47_spill] sm:$0xff] %v11502_v36 }
 0x487   :  { %v11504_v37 = vpop.f32.mrb[32].mxu1 }
 0x488   :  { %13236 = vst [vmem:[#allocation48_spill] sm:$0xff] %v11504_v37  ;;  %v11506_v38 = vpop.f32.mrb[33].mxu1 }
 0x489   :  { %13237 = vst [vmem:[#allocation49_spill] sm:$0xff] %v11506_v38 }
 0x48b   :  { %v11508_v40 = vpop.f32.mrb[34].mxu1 }
 0x48c   :  { %13238 = vst [vmem:[#allocation50_spill] sm:$0xff] %v11508_v40  ;;  %v11510_v43 = vpop.f32.mrb[35].mxu1 }
 0x48d   :  { %13239 = vst [vmem:[#allocation51_spill] sm:$0xff] %v11510_v43 }
 0x48f   :  { %v11512_v45 = vpop.f32.mrb[36].mxu1 }
 0x490   :  { %13240 = vst [vmem:[#allocation52_spill] sm:$0xff] %v11512_v45  ;;  %v11514_v46 = vpop.f32.mrb[37].mxu1 }
 0x491   :  { %13241 = vst [vmem:[#allocation53_spill] sm:$0xff] %v11514_v46 }
 0x519   :  { %v10228_v62 = vpop.f32.mrb[38].mxu1 }
 0x51a   :  { %v1800_v41 = vadd.f32 %v10228_v62, %v11541_v53  ;;  %v1794_v29 = vpop.f32.mrb[39].mxu1  ;;  %v13099_v62 = vsub.s32 6, %v11130_v15 }
 0x51b   :  { %v1795_v56 = vadd.f32 %v1794_v29, %v11541_v53  ;;  %v52_v29 = vld [vmem:[%s13084_s4 + $0x30] sm:$0xff] }
 0x51c   :  { %v1804_v14 = vmax.f32 %v1800_v41, 0.0  ;;  %v53_v41 = vld [vmem:[%s13084_s4 + $0x38] sm:$0xff] }
 0x51d   :  { %v1803_v48 = vmax.f32 %v1795_v56, 0.0  ;;  %v11562_v56 = vpack.c.bf16 %v53_v41, %v52_v29 }
 0x51f   :  { %10237 = vmatprep.mubr.msk.f32.mxu0 %vm148_vm1, %v1803_v48  ;;  %13245 = vst [vmem:[#allocation57_spill] sm:$0xff] %v11562_v56  ;;  %10818 = vmatprep.subr.bf16.mxu1 %v11562_v56 }
 0x520   :  { %10238 = vmatmul.mubr.msk.f32.vlgmr.msra.gmra.mrb[40].mxu0 %vm148_vm1, %v1804_v14  ;;  %10820 = vmatpush3.bf16.msra.mxu1 %v11562_v56 }
 0x521   :  { %10824 = vmatpush3.bf16.msra.mxu0 %v11338_v47  ;;  %10259 = vmatprep.mubr.msk.f32.mxu0 %vm148_vm1, %v1803_v48  ;;  %v11571_v48 = vrot.slane %v11138_v17, %v13099_v62 }
 0x522   :  { %10826 = vmatprep.subr.bf16.mxu0 %v11428_v44  ;;  %10830 = vmatprep.subr.bf16.mxu1 %v11438_v63 }
 0x523   :  { %13246 = vst [vmem:[#allocation58_spill] sm:$0xff] %v11571_v48 }
 0x525   :  { %10828 = vmatpush3.bf16.msra.mxu0 %v11428_v44 }
 0x526   :  { %10838 = vmatprep.subr.bf16.mxu0 %v11438_v63 }
 0x528   :  { %10260 = vmatmul.mubr.msk.f32.vlgmr.msra.gmra.mrb[42].mxu0 %vm148_vm1, %v1804_v14 }
 0x529   :  { %10840 = vmatpush3.bf16.msra.mxu0 %v11438_v63 }
 0x52a   :  { %10842 = vmatprep.subr.bf16.mxu0 %v11522_v57 }
 0x52d   :  { %10844 = vmatpush3.bf16.msra.mxu0 %v11522_v57 }
 0x5f3   :  { %v10239_v58 = vpop.f32.mrb[40].mxu0 }
 0x5f4   :  { %v1887_v14 = vadd.f32 %v10239_v58, %v11571_v48  ;;  %v1881_v55 = vpop.f32.mrb[41].mxu0  ;;  %v13247_v58 = vmov 0.0  }
 0x5f5   :  { %v1882_v29 = vadd.f32 %v1881_v55, %v11571_v48 }
 0x5f6   :  { %v1891_v42 = vmax.f32 %v1887_v14, 0.0 }
 0x5f7   :  { %v1890_v41 = vmax.f32 %v1882_v29, 0.0 }
 0x5f9   :  { %10248 = vmatprep.mubr.msk.f32.mxu1 %vm148_vm1, %v1890_v41 }
 0x5fa   :  { %10249 = vmatmul.mubr.msk.f32.vlgmr.msra.gmra.mrb[40].mxu1 %vm148_vm1, %v1891_v42 }
 0x5fb   :  { %v10261_v30 = vpop.f32.mrb[42].mxu0  ;;  %10832 = vmatpush3.bf16.msra.mxu1 %v11438_v63  ;;  %10270 = vmatprep.mubr.msk.f32.mxu1 %vm148_vm1, %v1890_v41 }
 0x5fc   :  { %v2043_v39 = vpop.f32.mrb[43].mxu0  ;;  %10834 = vmatprep.subr.bf16.mxu1 %v11522_v57  ;;  %v2049_v55 = vadd.f32 %v10261_v30, %v11541_v53 }
 0x5fd   :  { %v2044_v17 = vadd.f32 %v2043_v39, %v11541_v53 }
 0x5fe   :  { %vm2053_vm8 = vcmp.gt.f32.partialorder %v2049_v55, 0.0 }
 0x5ff   :  { %vm2052_vm7 = vcmp.gt.f32.partialorder %v2044_v17, 0.0  ;;  %10836 = vmatpush3.bf16.msra.mxu1 %v11522_v57  ;;  %v9477_v39 = vsel %vm2053_vm8, 1.0, %v13247_v58  ;;  %v11596_v17 = vld [vmem:[%s13083_s3 + $0xa8] sm:$0xff]  ;;  %vm9328_vm8 = vcmask 1045509  }
 0x600   :  { %v9476_v14 = vsel %vm2052_vm7, 1.0, %v13247_v58  ;;  %10846 = vmatprep.subr.bf16.mxu1 %v11533_v49  ;;  %v2197_v10 = vrot.slane %v9477_v39, %v11216_v54  ;;  %vm9326_vm7 = vcmask 1044484  }
 0x601   :  { %v2141_v29 = vcombine.high %v9476_v14, %v9476_v14  ;;  %v2148_v62 = vrot.slane %v9476_v14, %v11216_v54 }
 0x602   :  { %10271 = vmatmul.mubr.msk.f32.vlgmr.msra.gmra.mrb[42].mxu1 %vm148_vm1, %v1891_v42 }
 0x603   :  { %v2155_v41 = vrot.slane %v2141_v29, %v11216_v54  ;;  %v2156_v28 = vcombine.high %v2148_v62, %v2148_v62  ;;  %v2164_v18 = vrot.slane %v2148_v62, %v11216_v54  ;;  %10848 = vmatpush3.bf16.msra.mxu1 %v11533_v49 }
 0x604   :  { %10850 = vmatprep.subr.bf16.mxu1 %v11562_v56 }
 0x605   :  { %v2178_v30 = vrot.slane %v2156_v28, %v11216_v54  ;;  %v2157_v42 = vcombine.high %v2155_v41, %v2155_v41  ;;  %v2186_v14 = vcombine.high %v2164_v18, %v2164_v18  ;;  %v2171_v62 = vrot.slane %v2155_v41, %v11216_v54 }
 0x606   :  { %v2242_v55 = vrot.slane %v2164_v18, %v11133_v16  ;;  %v2190_v18 = vcombine.high %v9477_v39, %v9477_v39 }
 0x607   :  { %10852 = vmatpush3.bf16.msra.mxu1 %v11562_v56  ;;  %v2188_v29 = vcombine.high %v2178_v30, %v2178_v30  ;;  %v2246_v25 = vrot.slane %v2178_v30, %v11133_v16  ;;  %v2250_v28 = vrot.slane %v2186_v14, %v11133_v16  ;;  %v2185_v6 = vrot.slane %v2157_v42, %v11216_v54 }
 0x608   :  { %v2319_v13 = vmul.f32 %v2242_v55, %v11596_v17  ;;  %v2187_v41 = vcombine.high %v2171_v62, %v2171_v62  ;;  %v2258_v56 = vrot.slane %v2171_v62, %v11133_v16  ;;  %v2205_v30 = vcombine.high %v2197_v10, %v2197_v10 }
 0x609   :  { %v2320_v3 = vmul.f32 %v2246_v25, %v11596_v17  ;;  %v2321_v2 = vmul.f32 %v2250_v28, %v11596_v17  ;;  %v2254_v53 = vrot.slane %v2188_v29, %v11133_v16  ;;  %v2189_v14 = vcombine.high %v2185_v6, %v2185_v6 }
 0x60a   :  { %10281 = vmatprep.mubr.msk.f32.mxu0 %vm148_vm1, %v2319_v13  ;;  %v2262_v25 = vrot.slane %v2185_v6, %v11133_v16  ;;  %v2213_v55 = vrot.slane %v2197_v10, %v11216_v54  ;;  %v2323_v29 = vmul.f32 %v2258_v56, %v11596_v17  ;;  %v2266_v28 = vrot.slane %v2187_v41, %v11133_v16 }
 0x60b   :  { %10282 = vmatmul.mubr.msk.f32.vlgmr.msra.gmra.mrb[44].mxu0 %vm148_vm1, %v2320_v3  ;;  %v2322_v42 = vmul.f32 %v2254_v53, %v11596_v17  ;;  %v2204_v3 = vrot.slane %v2190_v18, %v11216_v54  ;;  %v2270_v53 = vrot.slane %v2189_v14, %v11133_v16 }
 0x60c   :  { %10284 = vmatprep.mubr.msk.f32.mxu0 %vm148_vm1, %v2321_v2  ;;  %v2227_v2 = vrot.slane %v2205_v30, %v11216_v54  ;;  %v2324_v13 = vmul.f32 %v2262_v25, %v11596_v17  ;;  %v2235_v39 = vcombine.high %v2213_v55, %v2213_v55  ;;  %v2274_v6 = vrot.slane %v2213_v55, %v11133_v16 }
 0x60d   :  { %v2325_v10 = vmul.f32 %v2266_v28, %v11596_v17  ;;  %v2206_v56 = vcombine.high %v2204_v3, %v2204_v3  ;;  %v2326_v18 = vmul.f32 %v2270_v53, %v11596_v17  ;;  %v2220_v30 = vrot.slane %v2204_v3, %v11216_v54 }
 0x60e   :  { %v2237_v62 = vcombine.high %v2227_v2, %v2227_v2  ;;  %v2278_v41 = vrot.slane %v2227_v2, %v11133_v16  ;;  %v2327_v14 = vmul.f32 %v2274_v6, %v11596_v17 }
 0x60f   :  { %10285 = vmatmul.mubr.msk.f32.gmra.mrb[46].mxu0 %vm148_vm1, %v2322_v42  ;;  %v2282_v42 = vrot.slane %v2235_v39, %v11133_v16  ;;  %v2234_v25 = vrot.slane %v2206_v56, %v11216_v54  ;;  %v2236_v28 = vcombine.high %v2220_v30, %v2220_v30  ;;  %v2290_v2 = vrot.slane %v2220_v30, %v11133_v16 }
 0x610   :  { %10287 = vmatprep.mubr.msk.f32.mxu0 %vm148_vm1, %v2323_v29  ;;  %v2328_v55 = vmul.f32 %v2278_v41, %v11596_v17  ;;  %v2286_v29 = vrot.slane %v2237_v62, %v11133_v16  ;;  %v13113_v30 = vsub.s32 7, %v11130_v15 }
 0x611   :  { %v2238_v3 = vcombine.high %v2234_v25, %v2234_v25  ;;  %v2294_v39 = vrot.slane %v2234_v25, %v11133_v16  ;;  %v2331_v6 = vmul.f32 %v2290_v2, %v11596_v17 }
 0x612   :  { %v2330_v53 = vmul.f32 %v2286_v29, %v11596_v17 }
 0x613   :  { %10288 = vmatmul.mubr.msk.f32.gmra.mrb[48].mxu0 %vm148_vm1, %v2324_v13  ;;  %v2329_v13 = vmul.f32 %v2282_v42, %v11596_v17  ;;  %v2332_v56 = vmul.f32 %v2294_v39, %v11596_v17  ;;  %v2302_v62 = vrot.slane %v2238_v3, %v11133_v16  ;;  %v11001_v42 = vld [vmem:[%s13085_s5] sm:$0xff] }
 0x614   :  { %10290 = vmatprep.mubr.msk.f32.mxu0 %vm148_vm1, %v2325_v10  ;;  %v2298_v10 = vrot.slane %v2236_v28, %v11133_v16 }
 0x616   :  { %v2333_v41 = vmul.f32 %v2298_v10, %v11596_v17 }
 0x617   :  { %10291 = vmatmul.mubr.msk.f32.gmra.mrb[50].mxu0 %vm148_vm1, %v2326_v18  ;;  %v2334_v18 = vmul.f32 %v2302_v62, %v11596_v17 }
 0x618   :  { %10293 = vmatprep.mubr.msk.f32.mxu0 %vm148_vm1, %v2327_v14  ;;  %v11663_v14 = vrot.slane %v11001_v42, %v13113_v30 }
 0x61a   :  { %13248 = vst [vmem:[#allocation59_spill] sm:$0xff] %v11663_v14 }
 0x61b   :  { %10294 = vmatmul.mubr.msk.f32.gmra.mrb[52].mxu0 %vm148_vm1, %v2328_v55 }
 0x61c   :  { %10296 = vmatprep.mubr.msk.f32.mxu0 %vm148_vm1, %v2329_v13 }
 0x61f   :  { %10297 = vmatmul.mubr.msk.f32.gmra.mrb[54].mxu0 %vm148_vm1, %v2330_v53 }
 0x620   :  { %10299 = vmatprep.mubr.msk.f32.mxu0 %vm148_vm1, %v2331_v6 }
 0x623   :  { %10300 = vmatmul.mubr.msk.f32.gmra.mrb[56].mxu0 %vm148_vm1, %v2332_v56 }
 0x624   :  { %10302 = vmatprep.mubr.msk.f32.mxu0 %vm148_vm1, %v2333_v41 }
 0x627   :  { %10303 = vmatmul.mubr.msk.f32.gmra.mrb[58].mxu0 %vm148_vm1, %v2334_v18 }
 0x628   :  { %10339 = vmatprep.mubr.msk.f32.mxu0 %vm1636_vm4, %v11454_v60 }
 0x6cd   :  { %v10250_v25 = vpop.f32.mrb[40].mxu1 }
 0x6ce   :  { %v11666_v55 = vadd.f32 %v10250_v25, %v11663_v14  ;;  %v1968_v17 = vpop.f32.mrb[41].mxu1 }
 0x6cf   :  { %v11669_v29 = vadd.f32 %v1968_v17, %v11663_v14 }
 0x6d0   :  { %13249 = vst [vmem:[#allocation60_spill] sm:$0xff] %v11666_v55  ;;  %v11673_v28 = vrot.slane %v11666_v55, %v11216_v54 }
 0x6d1   :  { %v4215_v2 = vcombine.high %v11669_v29, %v11669_v29  ;;  %v4222_v13 = vrot.slane %v11669_v29, %v11216_v54 }
 0x6d2   :  { %v11681_v3 = vrot.slane %v11673_v28, %v11216_v54 }
 0x6d3   :  { %v4238_v53 = vrot.slane %v4222_v13, %v11216_v54  ;;  %v4230_v39 = vcombine.high %v4222_v13, %v4222_v13  ;;  %v11685_v6 = vrot.slane %v4215_v2, %v11216_v54 }
 0x6d4   :  { %v4348_v10 = vrot.slane %v11681_v3, %v11133_v16 }
 0x6d5   :  { %v10272_v56 = vpop.f32.mrb[42].mxu1  ;;  %v4316_v62 = vrot.slane %v4238_v53, %v11133_v16  ;;  %v4252_v41 = vrot.slane %v4230_v39, %v11216_v54  ;;  %v4260_v18 = vcombine.high %v4238_v53, %v4238_v53  ;;  %v11693_v42 = vrot.slane %v11685_v6, %v11216_v54 }
 0x6d6   :  { %v2130_v25 = vadd.f32 %v10272_v56, %v11571_v48  ;;  %v2124_v17 = vpop.f32.mrb[43].mxu1  ;;  %v11697_v13 = vmul.f32 %v11484_v23, %v4348_v10  ;;  %v11700_v2 = vmul.f32 %v4348_v10, %v11486_v24 }
 0x6d7   :  { %v2125_v30 = vadd.f32 %v2124_v17, %v11571_v48  ;;  %v11704_v15 = vmul.f32 %v11452_v59, %v4316_v62  ;;  %v11707_v53 = vmul.f32 %v4316_v62, %v11454_v60  ;;  %v4320_v39 = vrot.slane %v4252_v41, %v11133_v16 }
 0x6d8   :  { %13250 = vst [vmem:[#allocation61_spill] sm:$0xff] %v11697_v13  ;;  %13251 = vst [vmem:[#allocation62_spill] sm:$0xff] %v11700_v2  ;;  %vm2134_vm9 = vcmp.gt.f32.partialorder %v2130_v25, 0.0  ;;  %v4324_v56 = vrot.slane %v4260_v18, %v11133_v16  ;;  %v4262_v14 = vcombine.high %v4252_v41, %v4252_v41  ;;  %v4332_v50 = vrot.slane %v11693_v42, %v11133_v16 }
 0x6d9   :  { %13252 = vst [vmem:[#allocation63_spill] sm:$0xff] %v11704_v15  ;;  %13253 = vst [vmem:[#allocation64_spill] sm:$0xff] %v11707_v53  ;;  %v9481_v10 = vsel %vm2134_vm9, 1.0, %v13247_v58  ;;  %vm2133_vm10 = vcmp.gt.f32.partialorder %v2125_v30, 0.0  ;;  %v11715_v17 = vmul.f32 %v11456_v61, %v4320_v39  ;;  %v11718_v48 = vmul.f32 %v4320_v39, %v11458_v0 }
 0x6da   :  { %v2586_v62 = vrot.slane %v9481_v10, %v11216_v54  ;;  %v9480_v60 = vsel %vm2133_vm10, 1.0, %v13247_v58  ;;  %v11723_v25 = vmul.f32 %v11460_v1, %v4324_v56  ;;  %v11727_v2 = vmul.f32 %v4324_v56, %v11462_v4 }
 0x6db   :  { %13254 = vst [vmem:[#allocation65_spill] sm:$0xff] %v11715_v17  ;;  %13255 = vst [vmem:[#allocation66_spill] sm:$0xff] %v11718_v48  ;;  %v2530_v41 = vcombine.high %v9480_v60, %v9480_v60  ;;  %v2537_v18 = vrot.slane %v9480_v60, %v11216_v54  ;;  %v4328_v30 = vrot.slane %v4262_v14, %v11133_v16  ;;  %vm9330_vm9 = vcmask 1046534  }
 0x6dc   :  { %13256 = vst [vmem:[#allocation67_spill] sm:$0xff] %v11723_v25  ;;  %13257 = vst [vmem:[#allocation68_spill] sm:$0xff] %v11727_v2  ;;  %v4264_v13 = vcombine.high %v11666_v55, %v11666_v55  ;;  %v11733_v39 = vmul.f32 %v11468_v8, %v4332_v50  ;;  %v2579_v60 = vcombine.high %v9481_v10, %v9481_v10  ;;  %vm9332_vm10 = vcmask 1047559  }
 0x6dd   :  { %v2544_v48 = vrot.slane %v2530_v41, %v11216_v54  ;;  %v2545_v58 = vcombine.high %v2537_v18, %v2537_v18  ;;  %v2553_v17 = vrot.slane %v2537_v18, %v11216_v54  ;;  %v11738_v25 = vmul.f32 %v11464_v5, %v4328_v30 }
 0x6de   :  { %13258 = vst [vmem:[#allocation69_spill] sm:$0xff] %v11733_v39  ;;  %v2594_v53 = vcombine.high %v2586_v62, %v2586_v62  ;;  %v4279_v56 = vcombine.high %v11673_v28, %v11673_v28  ;;  %v10283_v39 = vpop.f32.mrb[44].mxu0  ;;  %v11746_v57 = vrot.slane %v4264_v13, %v11216_v54  ;;  %v4231_v28 = vcombine.high %v11685_v6, %v11685_v6 }
 0x6df   :  { %13259 = vst [vmem:[#allocation70_spill] sm:$0xff] %v11738_v25  ;;  %v2567_v14 = vrot.slane %v2545_v58, %v11216_v54  ;;  %v2631_v2 = vrot.slane %v2553_v17, %v11133_v16  ;;  %v2575_v15 = vcombine.high %v2553_v17, %v2553_v17  ;;  %v2546_v49 = vcombine.high %v2544_v48, %v2544_v48  ;;  %v2449_v25 = vpop.f32.mrb[45].mxu0 }
 0x6e0   :  { %v2560_v41 = vrot.slane %v2544_v48, %v11216_v54  ;;  %v11753_v58 = vrot.slane %v2579_v60, %v11216_v54  ;;  %v11757_v48 = vrot.slane %v2594_v53, %v11216_v54  ;;  %v4301_v55 = vrot.slane %v4279_v56, %v11216_v54 }
 0x6e1   :  { %v2635_v18 = vrot.slane %v2567_v14, %v11133_v16  ;;  %v2577_v10 = vcombine.high %v2567_v14, %v2567_v14  ;;  %v2574_v63 = vrot.slane %v2546_v49, %v11216_v54  ;;  %v2708_v17 = vmul.f32 %v2631_v2, %v2449_v25 }
 0x6e2   :  { %v2639_v44 = vrot.slane %v2575_v15, %v11133_v16  ;;  %v4309_v49 = vcombine.high %v11681_v3, %v11681_v3  ;;  %v10286_v14 = vpop.f32.mrb[46].mxu0  ;;  %v2576_v6 = vcombine.high %v2560_v41, %v2560_v41  ;;  %v11765_v60 = vrot.slane %v2586_v62, %v11216_v54 }
 0x6e3   :  { %v2709_v13 = vmul.f32 %v10283_v39, %v2635_v18  ;;  %v2643_v47 = vrot.slane %v2577_v10, %v11133_v16  ;;  %10313 = vmatprep.mubr.msk.f32.mxu1 %vm148_vm1, %v2708_v17  ;;  %v11768_v15 = vmul.f32 %v4328_v30, %v11466_v7  ;;  %v4294_v2 = vrot.slane %v11746_v57, %v11216_v54  ;;  %v2459_v25 = vpop.f32.mrb[47].mxu0 }
 0x6e4   :  { %v2578_v39 = vcombine.high %v2574_v63, %v2574_v63  ;;  %v11774_v3 = vmul.f32 %v4332_v50, %v11470_v9  ;;  %v4259_v56 = vrot.slane %v4231_v28, %v11216_v54  ;;  %v2710_v18 = vmul.f32 %v2639_v44, %v2459_v25 }
 0x6e5   :  { %13260 = vst [vmem:[#allocation71_spill] sm:$0xff] %v11768_v15  ;;  %v2711_v53 = vmul.f32 %v10286_v14, %v2643_v47  ;;  %10314 = vmatmul.mubr.msk.f32.vlgmr.msra.gmra.mrb[44].mxu1 %vm148_vm1, %v2709_v13  ;;  %v2647_v62 = vrot.slane %v2560_v41, %v11133_v16  ;;  %v2667_v30 = vrot.slane %v11757_v48, %v11133_v16 }
 0x6e6   :  { %13261 = vst [vmem:[#allocation72_spill] sm:$0xff] %v11774_v3  ;;  %v2595_v10 = vcombine.high %v11753_v58, %v11753_v58  ;;  %v2651_v47 = vrot.slane %v2574_v63, %v11133_v16  ;;  %v4336_v17 = vrot.slane %v4259_v56, %v11133_v16  ;;  %v4261_v13 = vcombine.high %v11693_v42, %v11693_v42  ;;  %v10289_v14 = vpop.f32.mrb[48].mxu0 }
 0x6e7   :  { %v4263_v50 = vcombine.high %v4259_v56, %v4259_v56  ;;  %10316 = vmatprep.mubr.msk.f32.mxu1 %vm148_vm1, %v2710_v18  ;;  %v2655_v44 = vrot.slane %v2576_v6, %v11133_v16  ;;  %v4352_v41 = vrot.slane %v4301_v55, %v11133_v16  ;;  %v4356_v28 = vrot.slane %v4309_v49, %v11133_v16  ;;  %v2469_v15 = vpop.f32.mrb[49].mxu0 }
 0x6e8   :  { %v4311_v25 = vcombine.high %v4301_v55, %v4301_v55  ;;  %v2713_v3 = vmul.f32 %v10289_v14, %v2651_v47  ;;  %v2659_v63 = vrot.slane %v2578_v39, %v11133_v16  ;;  %v11793_v52 = vmul.f32 %v11472_v11, %v4336_v17 }
 0x6e9   :  { %10317 = vmatmul.mubr.msk.f32.gmra.mrb[46].mxu1 %vm148_vm1, %v2711_v53  ;;  %v4340_v42 = vrot.slane %v4261_v13, %v11133_v16  ;;  %v2712_v56 = vmul.f32 %v2647_v62, %v2469_v15  ;;  %v11797_v18 = vmul.f32 %v4336_v17, %v11474_v12  ;;  %v4344_v6 = vrot.slane %v4263_v50, %v11133_v16 }
 0x6ea   :  { %v11801_v49 = vmul.f32 %v11488_v26, %v4352_v41  ;;  %v11810_v39 = vmul.f32 %v11492_v31, %v4356_v28  ;;  %v11813_v47 = vmul.f32 %v4352_v41, %v11490_v27  ;;  %v10292_v15 = vpop.f32.mrb[50].mxu0  ;;  %v11823_v13 = vmul.f32 %v4356_v28, %v11494_v32 }
 0x6eb   :  { %v11804_v55 = vmul.f32 %v11476_v19, %v4340_v42  ;;  %v11807_v53 = vmul.f32 %v4340_v42, %v11478_v20  ;;  %10319 = vmatprep.mubr.msk.f32.mxu1 %vm148_vm1, %v2712_v56  ;;  %v11817_v62 = vmul.f32 %v11480_v21, %v4344_v6  ;;  %v11820_v17 = vmul.f32 %v4344_v6, %v11482_v22  ;;  %v2479_v42 = vpop.f32.mrb[51].mxu0 }
 0x6ec   :  { %13262 = vst [vmem:[#allocation73_spill] sm:$0xff] %v11801_v49  ;;  %13263 = vst [vmem:[#allocation74_spill] sm:$0xff] %v11810_v39  ;;  %v4360_v50 = vrot.slane %v4311_v25, %v11133_v16  ;;  %v2715_v14 = vmul.f32 %v10292_v15, %v2659_v63  ;;  %v4364_v41 = vrot.slane %v4294_v2, %v11133_v16 }
 0x6ed   :  { %13264 = vst [vmem:[#allocation75_spill] sm:$0xff] %v11813_v47  ;;  %10320 = vmatmul.mubr.msk.f32.gmra.mrb[48].mxu1 %vm148_vm1, %v2713_v3  ;;  %v4280_v56 = vcombine.high %v11746_v57, %v11746_v57  ;;  %v4310_v47 = vcombine.high %v4294_v2, %v4294_v2  ;;  %v2714_v39 = vmul.f32 %v2655_v44, %v2479_v42 }
 0x6ee   :  { %v2626_v6 = vcombine.high %v11757_v48, %v11757_v48  ;;  %v11833_v49 = vmul.f32 %v11496_v33, %v4360_v50  ;;  %v11836_v28 = vmul.f32 %v4360_v50, %v11498_v34  ;;  %v11839_v25 = vmul.f32 %v11500_v35, %v4364_v41  ;;  %v10295_v2 = vpop.f32.mrb[52].mxu0 }
 0x6ef   :  { %v11842_v3 = vmul.f32 %v4364_v41, %v11502_v36  ;;  %v4308_v63 = vrot.slane %v4280_v56, %v11216_v54  ;;  %v4372_v57 = vrot.slane %v4310_v47, %v11133_v16  ;;  %10322 = vmatprep.mubr.msk.f32.mxu1 %vm148_vm1, %v2714_v39  ;;  %v2663_v48 = vrot.slane %v11765_v60, %v11133_v16  ;;  %v2489_v50 = vpop.f32.mrb[53].mxu0 }
 0x6f0   :  { %13265 = vst [vmem:[#allocation76_spill] sm:$0xff] %v11836_v28  ;;  %v2624_v44 = vcombine.high %v11765_v60, %v11765_v60  ;;  %v2717_v15 = vmul.f32 %v10295_v2, %v2667_v30  ;;  %v2623_v28 = vrot.slane %v2595_v10, %v11216_v54 }
 0x6f1   :  { %13266 = vst [vmem:[#allocation77_spill] sm:$0xff] %v11842_v3  ;;  %10323 = vmatmul.mubr.msk.f32.gmra.mrb[50].mxu1 %vm148_vm1, %v2715_v14  ;;  %v4368_v42 = vrot.slane %v4308_v63, %v11133_v16  ;;  %v11854_v41 = vmul.f32 %v11508_v40, %v4372_v57  ;;  %v11857_v47 = vmul.f32 %v4372_v57, %v11510_v43 }
 0x6f2   :  { %v2716_v56 = vmul.f32 %v2663_v48, %v2489_v50  ;;  %v4312_v39 = vcombine.high %v4308_v63, %v4308_v63  ;;  %v2675_v3 = vrot.slane %v2626_v6, %v11133_v16  ;;  %v10298_v14 = vpop.f32.mrb[54].mxu0  ;;  %v2671_v2 = vrot.slane %v2624_v44, %v11133_v16 }
 0x6f3   :  { %13267 = vst [vmem:[#allocation78_spill] sm:$0xff] %v11857_v47  ;;  %v11862_v60 = vmul.f32 %v11504_v37, %v4368_v42  ;;  %v11865_v30 = vmul.f32 %v4368_v42, %v11506_v38  ;;  %v2609_v57 = vrot.slane %v11753_v58, %v11216_v54  ;;  %v2499_v6 = vpop.f32.mrb[55].mxu0  ;;  %v2627_v47 = vcombine.high %v2623_v28, %v2623_v28 }
 0x6f4   :  { %10325 = vmatprep.mubr.msk.f32.mxu1 %vm148_vm1, %v2716_v56  ;;  %v4376_v63 = vrot.slane %v4312_v39, %v11133_v16  ;;  %v2719_v48 = vmul.f32 %v10298_v14, %v2675_v3  ;;  %v2718_v10 = vmul.f32 %v2671_v2, %v2499_v6  ;;  %v2683_v56 = vrot.slane %v2623_v28, %v11133_v16 }
 0x6f5   :  { %10326 = vmatmul.mubr.msk.f32.gmra.mrb[52].mxu1 %vm148_vm1, %v2717_v15  ;;  %v2679_v58 = vrot.slane %v2609_v57, %v11133_v16  ;;  %v2625_v39 = vcombine.high %v2609_v57, %v2609_v57  ;;  %v2691_v2 = vrot.slane %v2627_v47, %v11133_v16 }
 0x6f6   :  { %v11874_v50 = vmul.f32 %v11512_v45, %v4376_v63  ;;  %v11877_v42 = vmul.f32 %v4376_v63, %v11514_v46  ;;  %v10301_v44 = vpop.f32.mrb[56].mxu0  ;;  %10328 = vmatprep.mubr.msk.f32.mxu1 %vm148_vm1, %v2718_v10 }
 0x6f7   :  { %v2721_v3 = vmul.f32 %v10301_v44, %v2683_v56  ;;  %v2509_v14 = vpop.f32.mrb[57].mxu0  ;;  %v2687_v63 = vrot.slane %v2625_v39, %v11133_v16 }
 0x6f8   :  { %13268 = vst [vmem:[#allocation79_spill] sm:$0xff] %v11877_v42  ;;  %v2720_v15 = vmul.f32 %v2679_v58, %v2509_v14 }
 0x6f9   :  { %10329 = vmatmul.mubr.msk.f32.gmra.mrb[54].mxu1 %vm148_vm1, %v2719_v48 }
 0x6fa   :  { %v10304_v6 = vpop.f32.mrb[58].mxu0  ;;  %10331 = vmatprep.mubr.msk.f32.mxu1 %vm148_vm1, %v2720_v15 }
 0x6fb   :  { %v2723_v42 = vmul.f32 %v10304_v6, %v2691_v2  ;;  %v2519_v28 = vpop.f32.mrb[59].mxu0 }
 0x6fc   :  { %v2722_v10 = vmul.f32 %v2687_v63, %v2519_v28  ;;  %v4699_v28 = vmul.f32 %v11669_v29, %v11348_v51 }
 0x6fd   :  { %10332 = vmatmul.mubr.msk.f32.gmra.mrb[56].mxu1 %vm148_vm1, %v2721_v3 }
 0x6fe   :  { %10334 = vmatprep.mubr.msk.f32.mxu1 %vm148_vm1, %v2722_v10 }
 0x701   :  { %10335 = vmatmul.mubr.msk.f32.gmra.mrb[58].mxu1 %vm148_vm1, %v2723_v42 }
 0x702   :  { %10349 = vmatprep.mubr.msk.f32.mxu1 %vm1636_vm4, %v11462_v4 }
 0x7b8   :  { %v10315_v57 = vpop.f32.mrb[44].mxu1 }
 0x7b9   :  { %v2838_v48 = vpop.f32.mrb[45].mxu1 }
 0x7ba   :  { %10337 = vmatprep.subr.mxu0 %v2838_v48 }
 0x7bb   :  { %10338 = vmatpush3.msra.mxu0 %v2838_v48  ;;  %v13269_v48 = vld [vmem:[#allocation19_spill] sm:$0xff] }
 0x7bc   :  { %v10318_v47 = vpop.f32.mrb[46].mxu1  ;;  %10340 = vmatmul.mubr.msk.f32.vlgmr.msra.gmra.mrb[60].mxu0 %vm1636_vm4, %v11452_v59  ;;  %10342 = vmatprep.subr.mxu0 %v10315_v57 }
 0x7bd   :  { %v2848_v56 = vpop.f32.mrb[47].mxu1  ;;  %10343 = vmatpush3.msra.mxu0 %v10315_v57  ;;  %10344 = vmatprep.mubr.msk.f32.mxu0 %vm1636_vm4, %v11458_v0 }
 0x7be   :  { %10347 = vmatprep.subr.mxu1 %v2848_v56  ;;  %10352 = vmatprep.subr.mxu0 %v10318_v47 }
 0x7bf   :  { %10348 = vmatpush3.msra.mxu1 %v2848_v56 }
 0x7c0   :  { %v10321_v42 = vpop.f32.mrb[48].mxu1  ;;  %10345 = vmatmul.mubr.msk.f32.vlgmr.msra.gmra.mrb[62].mxu0 %vm1636_vm4, %v11456_v61  ;;  %10350 = vmatmul.mubr.msk.f32.vlgmr.msra.gmra.mrb[60].mxu1 %vm1636_vm4, %v11460_v1 }
 0x7c1   :  { %10353 = vmatpush3.msra.mxu0 %v10318_v47  ;;  %v2858_v44 = vpop.f32.mrb[49].mxu1  ;;  %10354 = vmatprep.mubr.msk.f32.mxu0 %vm1636_vm4, %v11466_v7  ;;  %v13270_v47 = vld [vmem:[#allocation60_spill] sm:$0xff] }
 0x7c2   :  { %10359 = vmatprep.mubr.msk.f32.mxu1 %vm1636_vm4, %v11470_v9  ;;  %10362 = vmatprep.subr.mxu0 %v10321_v42  ;;  %v4700_v56 = vmul.f32 %v13270_v47, %v13269_v48 }
 0x7c3   :  { %10357 = vmatprep.subr.mxu1 %v2858_v44 }
 0x7c4   :  { %10358 = vmatpush3.msra.mxu1 %v2858_v44  ;;  %v10324_v58 = vpop.f32.mrb[50].mxu1  ;;  %10355 = vmatmul.mubr.msk.f32.vlgmr.msra.gmra.mrb[64].mxu0 %vm1636_vm4, %v11464_v5  ;;  %v11959_v44 = vadd.f32 %v4700_v56, %v13270_v47 }
 0x7c5   :  { %10360 = vmatmul.mubr.msk.f32.vlgmr.msra.gmra.mrb[62].mxu1 %vm1636_vm4, %v11468_v8  ;;  %10363 = vmatpush3.msra.mxu0 %v10321_v42  ;;  %v2868_v39 = vpop.f32.mrb[51].mxu1  ;;  %v11950_v42 = vadd.f32 %v4699_v28, %v11669_v29  ;;  %v13271_v29 = vld [vmem:[#allocation17_spill] sm:$0xff] }
 0x7c6   :  { %10364 = vmatprep.mubr.msk.f32.mxu0 %vm1636_vm4, %v11474_v12  ;;  %10369 = vmatprep.mubr.msk.f32.mxu1 %vm1636_vm4, %v11478_v20 }
 0x7c7   :  { %10372 = vmatprep.subr.mxu0 %v10324_v58  ;;  %10367 = vmatprep.subr.mxu1 %v2868_v39 }
 0x7c8   :  { %10368 = vmatpush3.msra.mxu1 %v2868_v39  ;;  %v10327_v3 = vpop.f32.mrb[52].mxu1  ;;  %10365 = vmatmul.mubr.msk.f32.vlgmr.msra.gmra.mrb[66].mxu0 %vm1636_vm4, %v11472_v11  ;;  %v13272_v39 = vld [vmem:[#allocation20_spill] sm:$0xff] }
 0x7c9   :  { %10370 = vmatmul.mubr.msk.f32.vlgmr.msra.gmra.mrb[64].mxu1 %vm1636_vm4, %v11476_v19  ;;  %10373 = vmatpush3.msra.mxu0 %v10324_v58  ;;  %v2878_v14 = vpop.f32.mrb[53].mxu1  ;;  %v11002_v58 = vld [vmem:[%s13083_s3 + $0x60] sm:$0xff] }
 0x7ca   :  { %10374 = vmatprep.mubr.msk.f32.mxu0 %vm1636_vm4, %v11482_v22  ;;  %10379 = vmatprep.mubr.msk.f32.mxu1 %vm1636_vm4, %v11486_v24 }
 0x7cb   :  { %10382 = vmatprep.subr.mxu0 %v10327_v3  ;;  %10377 = vmatprep.subr.mxu1 %v2878_v14 }
 0x7cc   :  { %10378 = vmatpush3.msra.mxu1 %v2878_v14  ;;  %v10330_v15 = vpop.f32.mrb[54].mxu1  ;;  %10375 = vmatmul.mubr.msk.f32.vlgmr.msra.gmra.mrb[68].mxu0 %vm1636_vm4, %v11480_v21  ;;  %v13274_v14 = vld [vmem:[#allocation54_spill] sm:$0xff] }
 0x7cd   :  { %10380 = vmatmul.mubr.msk.f32.vlgmr.msra.gmra.mrb[66].mxu1 %vm1636_vm4, %v11484_v23  ;;  %10383 = vmatpush3.msra.mxu0 %v10327_v3  ;;  %v2888_v2 = vpop.f32.mrb[55].mxu1  ;;  %v13273_v3 = vld [vmem:[#allocation21_spill] sm:$0xff]  ;;  %v13281_v23 = vld [vmem:[#allocation68_spill] sm:$0xff] }
 0x7ce   :  { %10384 = vmatprep.mubr.msk.f32.mxu0 %vm1636_vm4, %v11490_v27  ;;  %10389 = vmatprep.mubr.msk.f32.mxu1 %vm1636_vm4, %v11494_v32 }
 0x7cf   :  { %10392 = vmatprep.subr.mxu0 %v10330_v15  ;;  %10387 = vmatprep.subr.mxu1 %v2888_v2 }
 0x7d0   :  { %10388 = vmatpush3.msra.mxu1 %v2888_v2  ;;  %v10333_v6 = vpop.f32.mrb[56].mxu1  ;;  %10385 = vmatmul.mubr.msk.f32.vlgmr.msra.gmra.mrb[70].mxu0 %vm1636_vm4, %v11488_v26  ;;  %v4464_v2 = vrot.slane %v11348_v51, %v11216_v54 }
 0x7d1   :  { %10390 = vmatmul.mubr.msk.f32.vlgmr.msra.gmra.mrb[68].mxu1 %vm1636_vm4, %v11492_v31  ;;  %10393 = vmatpush3.msra.mxu0 %v10330_v15  ;;  %v2898_v63 = vpop.f32.mrb[57].mxu1  ;;  %v13275_v15 = vld [vmem:[#allocation55_spill] sm:$0xff] }
 0x7d2   :  { %10394 = vmatprep.mubr.msk.f32.mxu0 %vm1636_vm4, %v11498_v34  ;;  %10399 = vmatprep.mubr.msk.f32.mxu1 %vm1636_vm4, %v11502_v36  ;;  %v4472_v28 = vcombine.high %v4464_v2, %v4464_v2  ;;  %v13277_v36 = vld [vmem:[#allocation64_spill] sm:$0xff] }
 0x7d3   :  { %10402 = vmatprep.subr.mxu0 %v10333_v6  ;;  %10397 = vmatprep.subr.mxu1 %v2898_v63 }
 0x7d4   :  { %10398 = vmatpush3.msra.mxu1 %v2898_v63  ;;  %v10336_v10 = vpop.f32.mrb[58].mxu1  ;;  %10395 = vmatmul.mubr.msk.f32.vlgmr.msra.gmra.mrb[72].mxu0 %vm1636_vm4, %v11496_v33  ;;  %v4480_v63 = vrot.slane %v4464_v2, %v11216_v54  ;;  %v4494_v47 = vrot.slane %v4472_v28, %v11216_v54  ;;  %v4506_v2 = vcombine.high %v13269_v48, %v13269_v48 }
 0x7d5   :  { %10400 = vmatmul.mubr.msk.f32.vlgmr.msra.gmra.mrb[70].mxu1 %vm1636_vm4, %v11500_v35  ;;  %10403 = vmatpush3.msra.mxu0 %v10333_v6  ;;  %v2908_v57 = vpop.f32.mrb[59].mxu1  ;;  %v4457_v6 = vcombine.high %v11348_v51, %v11348_v51 }
 0x7d6   :  { %10404 = vmatprep.mubr.msk.f32.mxu0 %vm1636_vm4, %v11506_v38  ;;  %10409 = vmatprep.mubr.msk.f32.mxu1 %vm1636_vm4, %v11510_v43  ;;  %v4502_v56 = vcombine.high %v4480_v63, %v4480_v63  ;;  %v13276_v43 = vld [vmem:[#allocation63_spill] sm:$0xff]  ;;  %v4562_v28 = vrot.slane %v4494_v47, %v11133_v16  ;;  %v4504_v33 = vcombine.high %v4494_v47, %v4494_v47  ;;  %v13280_v47 = vld [vmem:[#allocation66_spill] sm:$0xff] }
 0x7d7   :  { %10412 = vmatprep.subr.mxu0 %v10336_v10  ;;  %10407 = vmatprep.subr.mxu1 %v2908_v57 }
 0x7d8   :  { %10408 = vmatpush3.msra.mxu1 %v2908_v57  ;;  %10405 = vmatmul.mubr.msk.f32.vlgmr.msra.gmra.mrb[74].mxu0 %vm1636_vm4, %v11504_v37  ;;  %v4558_v57 = vrot.slane %v4480_v63, %v11133_v16  ;;  %v4566_v63 = vrot.slane %v4502_v56, %v11133_v16  ;;  %v4570_v12 = vrot.slane %v4504_v33, %v11133_v16 }
 0x7d9   :  { %10410 = vmatmul.mubr.msk.f32.vlgmr.msra.gmra.mrb[72].mxu1 %vm1636_vm4, %v11508_v40  ;;  %10413 = vmatpush3.msra.mxu0 %v10336_v10  ;;  %v4471_v10 = vrot.slane %v4457_v6, %v11216_v54 }
 0x7da   :  { %10414 = vmatprep.mubr.msk.f32.mxu0 %vm1636_vm4, %v11514_v46  ;;  %10419 = vmatprep.mubr.msk.f32.mxu1 %vm1636_vm4, %v11950_v42 }
 0x7db   :  { %10417 = vmatprep.subr.mxu1 %v11002_v58  ;;  %10854 = vmatprep.subr.bf16.mxu0 %v13271_v29  ;;  %v4473_v46 = vcombine.high %v4471_v10, %v4471_v10 }
 0x7dc   :  { %10418 = vmatpush3.msra.mxu1 %v11002_v58  ;;  %10415 = vmatmul.mubr.msk.f32.vlgmr.msra.gmra.mrb[76].mxu0 %vm1636_vm4, %v11512_v45  ;;  %v4513_v45 = vrot.slane %v13269_v48, %v11216_v54 }
 0x7dd   :  { %10420 = vmatmul.mubr.msk.f32.vlgmr.msra.gmra.mrb[74].mxu1 %vm1636_vm4, %v11959_v44  ;;  %10856 = vmatpush3.bf16.msra.mxu0 %v13271_v29 }
 0x7de   :  { %10858 = vmatprep.subr.bf16.mxu0 %v13272_v39  ;;  %10862 = vmatprep.subr.bf16.mxu1 %v13273_v3  ;;  %v4521_v19 = vcombine.high %v4513_v45, %v4513_v45 }
 0x7df   :  { %10864 = vmatpush3.bf16.msra.mxu1 %v13273_v3 }
 0x7e0   :  { %10866 = vmatprep.subr.bf16.mxu1 %v13274_v14 }
 0x7e1   :  { %10860 = vmatpush3.bf16.msra.mxu0 %v13272_v39 }
 0x7e2   :  { %10870 = vmatprep.subr.bf16.mxu0 %v13275_v15 }
 0x7e3   :  { %10868 = vmatpush3.bf16.msra.mxu1 %v13274_v14 }
 0x7e4   :  { %10878 = vmatprep.subr.bf16.mxu1 %v13271_v29 }
 0x88f   :  { %v10341_v58 = vpop.f32.mrb[60].mxu0 }
 0x890   :  { %v4426_v38 = vadd.f32 %v10341_v58, %v13276_v43  ;;  %v4636_v40 = vmul.f32 %v10341_v58, %v4558_v57  ;;  %v2989_v37 = vpop.f32.mrb[61].mxu0  ;;  %v4487_v43 = vrot.slane %v4471_v10, %v11216_v54  ;;  %v4501_v58 = vrot.slane %v4473_v46, %v11216_v54 }
 0x891   :  { %v4425_v34 = vadd.f32 %v13277_v36, %v2989_v37  ;;  %v4635_v35 = vmul.f32 %v4558_v57, %v2989_v37  ;;  %v12001_v36 = vrot.slane %v4513_v45, %v11216_v54  ;;  %v13278_v37 = vld [vmem:[#allocation65_spill] sm:$0xff] }
 0x892   :  { %v11992_v6 = vadd.f32 %v4636_v40, %v4426_v38  ;;  %v13279_v40 = vld [vmem:[#allocation67_spill] sm:$0xff]  ;;  %v4503_v11 = vcombine.high %v4487_v43, %v4487_v43 }
 0x893   :  { %v11996_v32 = vadd.f32 %v4635_v35, %v4425_v34  ;;  %v10346_v27 = vpop.f32.mrb[62].mxu0  ;;  %v10351_v31 = vpop.f32.mrb[60].mxu1 }
 0x894   :  { %v4428_v57 = vadd.f32 %v10346_v27, %v13278_v37  ;;  %v4638_v38 = vmul.f32 %v10346_v27, %v4562_v28  ;;  %v4430_v26 = vadd.f32 %v10351_v31, %v13279_v40  ;;  %v4640_v24 = vmul.f32 %v10351_v31, %v4566_v63  ;;  %v3070_v22 = vpop.f32.mrb[63].mxu0  ;;  %v3151_v56 = vpop.f32.mrb[61].mxu1 }
 0x895   :  { %v4427_v34 = vadd.f32 %v13280_v47, %v3070_v22  ;;  %v4637_v35 = vmul.f32 %v4562_v28, %v3070_v22  ;;  %v4429_v21 = vadd.f32 %v13281_v23, %v3151_v56  ;;  %v4639_v20 = vmul.f32 %v4566_v63, %v3151_v56  ;;  %v13282_v47 = vld [vmem:[#allocation70_spill] sm:$0xff] }
 0x896   :  { %v12007_v10 = vadd.f32 %v4638_v38, %v4428_v57  ;;  %v12009_v46 = vadd.f32 %v4640_v24, %v4430_v26  ;;  %v4574_v40 = vrot.slane %v4487_v43, %v11133_v16  ;;  %v4578_v57 = vrot.slane %v4501_v58, %v11133_v16  ;;  %v13283_v26 = vld [vmem:[#allocation69_spill] sm:$0xff]  ;;  %v13284_v38 = vld [vmem:[#allocation71_spill] sm:$0xff] }
 0x897   :  { %v12012_v37 = vadd.f32 %v4637_v35, %v4427_v34  ;;  %v12014_v27 = vadd.f32 %v4639_v20, %v4429_v21  ;;  %v10356_v31 = vpop.f32.mrb[64].mxu0  ;;  %v4520_v24 = vrot.slane %v4506_v2, %v11216_v54  ;;  %v13285_v35 = vld [vmem:[#allocation72_spill] sm:$0xff]  ;;  %v4582_v2 = vrot.slane %v4503_v11, %v11133_v16 }
 0x898   :  { %v4432_v22 = vadd.f32 %v10356_v31, %v13282_v47  ;;  %v4642_v28 = vmul.f32 %v10356_v31, %v4570_v12  ;;  %v10361_v23 = vpop.f32.mrb[62].mxu1  ;;  %v3232_v63 = vpop.f32.mrb[65].mxu0  ;;  %v4505_v47 = vcombine.high %v4501_v58, %v4501_v58 }
 0x899   :  { %v4434_v33 = vadd.f32 %v10361_v23, %v13283_v26  ;;  %v4644_v45 = vmul.f32 %v10361_v23, %v4574_v40  ;;  %v4431_v56 = vadd.f32 %v13284_v38, %v3232_v63  ;;  %v4641_v20 = vmul.f32 %v4570_v12, %v3232_v63  ;;  %v3313_v21 = vpop.f32.mrb[63].mxu1 }
 0x89a   :  { %v12022_v34 = vadd.f32 %v4642_v28, %v4432_v22  ;;  %v4433_v43 = vadd.f32 %v13285_v35, %v3313_v21  ;;  %v4643_v9 = vmul.f32 %v4574_v40, %v3313_v21  ;;  %v4543_v26 = vrot.slane %v4521_v19, %v11216_v54 }
 0x89b   :  { %v12025_v31 = vadd.f32 %v4644_v45, %v4434_v33  ;;  %v12027_v7 = vadd.f32 %v4641_v20, %v4431_v56  ;;  %v10366_v8 = vpop.f32.mrb[66].mxu0  ;;  %v4590_v40 = vrot.slane %v12001_v36, %v11133_v16 }
 0x89c   :  { %v12031_v23 = vadd.f32 %v4643_v9, %v4433_v43  ;;  %v4436_v12 = vadd.f32 %v10366_v8, %v11793_v52  ;;  %v4646_v63 = vmul.f32 %v10366_v8, %v4578_v57  ;;  %v10371_v22 = vpop.f32.mrb[64].mxu1  ;;  %v3394_v28 = vpop.f32.mrb[67].mxu0  ;;  %v4586_v52 = vrot.slane %v4505_v47, %v11133_v16 }
 0x89d   :  { %v4438_v58 = vadd.f32 %v10371_v22, %v11804_v55  ;;  %v4648_v33 = vmul.f32 %v10371_v22, %v4582_v2  ;;  %v4435_v45 = vadd.f32 %v11797_v18, %v3394_v28  ;;  %v4645_v38 = vmul.f32 %v4578_v57, %v3394_v28  ;;  %v3475_v56 = vpop.f32.mrb[65].mxu1 }
 0x89e   :  { %v12038_v11 = vadd.f32 %v4646_v63, %v4436_v12  ;;  %v4437_v9 = vadd.f32 %v11807_v53, %v3475_v56  ;;  %v4647_v19 = vmul.f32 %v4582_v2, %v3475_v56  ;;  %v4594_v35 = vrot.slane %v4543_v26, %v11133_v16  ;;  %v13286_v63 = vld [vmem:[#allocation61_spill] sm:$0xff] }
 0x89f   :  { %v12042_v8 = vadd.f32 %v4648_v33, %v4438_v58  ;;  %v12044_v20 = vadd.f32 %v4645_v38, %v4435_v45  ;;  %v10376_v21 = vpop.f32.mrb[68].mxu0  ;;  %v4551_v55 = vcombine.high %v12001_v36, %v12001_v36  ;;  %v4522_v2 = vcombine.high %v4520_v24, %v4520_v24  ;;  %v13287_v38 = vld [vmem:[#allocation62_spill] sm:$0xff] }
 0x8a0   :  { %v12049_v18 = vadd.f32 %v4647_v19, %v4437_v9  ;;  %v4440_v57 = vadd.f32 %v10376_v21, %v11817_v62  ;;  %v4650_v43 = vmul.f32 %v10376_v21, %v4586_v52  ;;  %v10381_v12 = vpop.f32.mrb[66].mxu1  ;;  %v3556_v53 = vpop.f32.mrb[69].mxu0  ;;  %v4553_v9 = vcombine.high %v4543_v26, %v4543_v26 }
 0x8a1   :  { %v4442_v47 = vadd.f32 %v10381_v12, %v13286_v63  ;;  %v4652_v22 = vmul.f32 %v10381_v12, %v4590_v40  ;;  %v4439_v28 = vadd.f32 %v11820_v17, %v3556_v53  ;;  %v4649_v58 = vmul.f32 %v4586_v52, %v3556_v53  ;;  %v3637_v33 = vpop.f32.mrb[67].mxu1  ;;  %v13288_v17 = vld [vmem:[#allocation73_spill] sm:$0xff] }
 0x8a2   :  { %v12054_v45 = vadd.f32 %v4650_v43, %v4440_v57  ;;  %v4441_v56 = vadd.f32 %v13287_v38, %v3637_v33  ;;  %v4651_v36 = vmul.f32 %v4590_v40, %v3637_v33  ;;  %v4598_v5 = vrot.slane %v4551_v55, %v11133_v16  ;;  %v13289_v40 = vld [vmem:[#allocation74_spill] sm:$0xff] }
 0x8a3   :  { %v12057_v19 = vadd.f32 %v4652_v22, %v4442_v47  ;;  %v12059_v62 = vadd.f32 %v4649_v58, %v4439_v28  ;;  %v10386_v21 = vpop.f32.mrb[70].mxu0  ;;  %v4536_v63 = vrot.slane %v4520_v24, %v11216_v54  ;;  %v4550_v38 = vrot.slane %v4522_v2, %v11216_v54  ;;  %v13290_v22 = vld [vmem:[#allocation75_spill] sm:$0xff] }
 0x8a4   :  { %v12063_v12 = vadd.f32 %v4651_v36, %v4441_v56  ;;  %v4444_v52 = vadd.f32 %v10386_v21, %v13288_v17  ;;  %v4654_v53 = vmul.f32 %v10386_v21, %v4594_v35  ;;  %v10391_v57 = vpop.f32.mrb[68].mxu1  ;;  %v3718_v43 = vpop.f32.mrb[71].mxu0  ;;  %v4602_v56 = vrot.slane %v4553_v9, %v11133_v16 }
 0x8a5   :  { %v4446_v26 = vadd.f32 %v10391_v57, %v13289_v40  ;;  %v4656_v47 = vmul.f32 %v10391_v57, %v4598_v5  ;;  %v4443_v28 = vadd.f32 %v13290_v22, %v3718_v43  ;;  %v4653_v58 = vmul.f32 %v4594_v35, %v3718_v43  ;;  %v3799_v33 = vpop.f32.mrb[69].mxu1 }
 0x8a6   :  { %v12069_v4 = vadd.f32 %v4654_v53, %v4444_v52  ;;  %v4445_v24 = vadd.f32 %v11823_v13, %v3799_v33  ;;  %v4655_v55 = vmul.f32 %v4598_v5, %v3799_v33  ;;  %v4606_v2 = vrot.slane %v4536_v63, %v11133_v16  ;;  %v13292_v33 = vld [vmem:[#allocation77_spill] sm:$0xff] }
 0x8a7   :  { %v12073_v36 = vadd.f32 %v4656_v47, %v4446_v26  ;;  %v12075_v21 = vadd.f32 %v4653_v58, %v4443_v28  ;;  %v10396_v17 = vpop.f32.mrb[72].mxu0  ;;  %v4552_v40 = vcombine.high %v4536_v63, %v4536_v63  ;;  %v4610_v13 = vrot.slane %v4550_v38, %v11133_v16  ;;  %v13291_v26 = vld [vmem:[#allocation76_spill] sm:$0xff] }
 0x8a8   :  { %v12078_v57 = vadd.f32 %v4655_v55, %v4445_v24  ;;  %v4448_v35 = vadd.f32 %v10396_v17, %v11833_v49  ;;  %v4658_v43 = vmul.f32 %v10396_v17, %v4602_v56  ;;  %v10401_v52 = vpop.f32.mrb[70].mxu1  ;;  %v3880_v53 = vpop.f32.mrb[73].mxu0  ;;  %v4554_v55 = vcombine.high %v4550_v38, %v4550_v38 }
 0x8a9   :  { %v4450_v5 = vadd.f32 %v10401_v52, %v11839_v25  ;;  %v4660_v9 = vmul.f32 %v10401_v52, %v4606_v2  ;;  %v4447_v47 = vadd.f32 %v13291_v26, %v3880_v53  ;;  %v4657_v22 = vmul.f32 %v4602_v56, %v3880_v53  ;;  %v3961_v28 = vpop.f32.mrb[71].mxu1  ;;  %v13293_v26 = vld [vmem:[#allocation78_spill] sm:$0xff] }
 0x8aa   :  { %v12084_v58 = vadd.f32 %v4658_v43, %v4448_v35  ;;  %v4449_v63 = vadd.f32 %v13292_v33, %v3961_v28  ;;  %v4659_v24 = vmul.f32 %v4606_v2, %v3961_v28  ;;  %v4614_v1 = vrot.slane %v4552_v40, %v11133_v16 }
 0x8ab   :  { %v12087_v0 = vadd.f32 %v4660_v9, %v4450_v5  ;;  %v12089_v49 = vadd.f32 %v4657_v22, %v4447_v47  ;;  %v10406_v17 = vpop.f32.mrb[74].mxu0  ;;  %v4618_v40 = vrot.slane %v4554_v55, %v11133_v16 }
 0x8ac   :  { %v12092_v61 = vadd.f32 %v4659_v24, %v4449_v63  ;;  %v4452_v25 = vadd.f32 %v10406_v17, %v11862_v60  ;;  %v4662_v52 = vmul.f32 %v10406_v17, %v4610_v13  ;;  %v10411_v56 = vpop.f32.mrb[72].mxu1  ;;  %v4042_v53 = vpop.f32.mrb[75].mxu0  ;;  %v13294_v17 = vld [vmem:[#allocation79_spill] sm:$0xff] }
 0x8ad   :  { %v4454_v35 = vadd.f32 %v10411_v56, %v11854_v41  ;;  %v4664_v43 = vmul.f32 %v10411_v56, %v4614_v1  ;;  %v4451_v2 = vadd.f32 %v11865_v30, %v4042_v53  ;;  %v4661_v38 = vmul.f32 %v4610_v13, %v4042_v53  ;;  %v4123_v5 = vpop.f32.mrb[73].mxu1 }
 0x8ae   :  { %v12097_v9 = vadd.f32 %v4662_v52, %v4452_v25  ;;  %v4453_v47 = vadd.f32 %v13293_v26, %v4123_v5  ;;  %v4663_v22 = vmul.f32 %v4614_v1, %v4123_v5  ;;  %v13295_v1 = vld [vmem:[#allocation22_spill] sm:$0xff] }
 0x8af   :  { %v12101_v28 = vadd.f32 %v4664_v43, %v4454_v35  ;;  %v12103_v60 = vadd.f32 %v4661_v38, %v4451_v2  ;;  %v10416_v33 = vpop.f32.mrb[76].mxu0  ;;  %v13297_v38 = vld [vmem:[#allocation56_spill] sm:$0xff] }
 0x8b0   :  { %v12105_v63 = vadd.f32 %v4663_v22, %v4453_v47  ;;  %v4456_v41 = vadd.f32 %v10416_v33, %v11874_v50  ;;  %v4666_v24 = vmul.f32 %v10416_v33, %v4618_v40  ;;  %v10421_v30 = vpop.f32.mrb[74].mxu1  ;;  %v4204_v13 = vpop.f32.mrb[77].mxu0  ;;  %v13296_v50 = vld [vmem:[#allocation57_spill] sm:$0xff]  ;;  %v11003_v33 = vld [vmem:[%s13081_s1] sm:$0xff] }
 0x8b1   :  { %v4455_v25 = vadd.f32 %v13294_v17, %v4204_v13  ;;  %v4665_v52 = vmul.f32 %v4618_v40, %v4204_v13  ;;  %v4775_v56 = vpop.f32.mrb[75].mxu1  ;;  %v4781_v35 = vadd.f32 %v10421_v30, %v13295_v1  ;;  %7551 = vrot.lane.b32.xlu1 %v11003_v33, %s11032_s16  ;;  %v13299_v30 = vld [vmem:[#allocation58_spill] sm:$0xff] }
 0x8b2   :  { %v12109_v53 = vadd.f32 %v4666_v24, %v4456_v41  ;;  %v4776_v55 = vadd.f32 %v4775_v56, %v13295_v1  ;;  %v13298_v41 = vld [vmem:[#allocation5_spill] sm:$0xff] }
 0x8b3   :  { %v12113_v43 = vadd.f32 %v4665_v52, %v4455_v25  ;;  %7549 = vrot.lane.b32.xlu0 %v13298_v41, %s11032_s16 }
 0x8b4   :  { %10430 = vmatprep.mubr.msk.f32.mxu0 %vm148_vm1, %v4776_v55 }
 0x8b5   :  { %10431 = vmatmul.mubr.msk.f32.vlgmr.msra.gmra.mrb[78].mxu0 %vm148_vm1, %v4781_v35 }
 0x8b6   :  { %10872 = vmatpush3.bf16.msra.mxu0 %v13275_v15 }
 0x8b7   :  { %10874 = vmatprep.subr.bf16.mxu0 %v13296_v50 }
 0x8ba   :  { %10876 = vmatpush3.bf16.msra.mxu0 %v13296_v50 }
 0x8bb   :  { %10886 = vmatprep.subr.bf16.mxu0 %v13273_v3 }
 0x988   :  { %v10432_v2 = vpop.f32.mrb[78].mxu0 }
 0x989   :  { %v4862_v5 = vadd.f32 %v10432_v2, %v13297_v38  ;;  %v4856_v26 = vpop.f32.mrb[79].mxu0 }
 0x98a   :  { %v4857_v47 = vadd.f32 %v4856_v26, %v13297_v38  ;;  %v13300_v26 = vmov 0.0  }
 0x98b   :  { %v4866_v40 = vmax.f32 %v4862_v5, 0.0 }
 0x98c   :  { %v4865_v22 = vmax.f32 %v4857_v47, 0.0 }
 0x98e   :  { %10441 = vmatprep.mubr.msk.f32.mxu1 %vm148_vm1, %v4865_v22 }
 0x98f   :  { %10442 = vmatmul.mubr.msk.f32.vlgmr.msra.gmra.mrb[76].mxu1 %vm148_vm1, %v4866_v40 }
 0x990   :  { %10880 = vmatpush3.bf16.msra.mxu1 %v13271_v29  ;;  %10463 = vmatprep.mubr.msk.f32.mxu1 %vm148_vm1, %v4865_v22 }
 0x991   :  { %10882 = vmatprep.subr.bf16.mxu1 %v13272_v39 }
 0x994   :  { %10884 = vmatpush3.bf16.msra.mxu1 %v13272_v39 }
 0x995   :  { %10894 = vmatprep.subr.bf16.mxu1 %v13273_v3 }
 0x997   :  { %10464 = vmatmul.mubr.msk.f32.vlgmr.msra.gmra.mrb[78].mxu1 %vm148_vm1, %v4866_v40 }
 0x998   :  { %10896 = vmatpush3.bf16.msra.mxu1 %v13273_v3 }
 0x999   :  { %10898 = vmatprep.subr.bf16.mxu1 %v13274_v14 }
 0x99c   :  { %10900 = vmatpush3.bf16.msra.mxu1 %v13274_v14 }
 0xa62   :  { %v10443_v24 = vpop.f32.mrb[76].mxu1 }
 0xa63   :  { %v4945_v13 = vadd.f32 %v10443_v24, %v13299_v30  ;;  %v4939_v17 = vpop.f32.mrb[77].mxu1 }
 0xa64   :  { %v4940_v25 = vadd.f32 %v4939_v17, %v13299_v30 }
 0xa65   :  { %v4949_v56 = vmax.f32 %v4945_v13, 0.0 }
 0xa66   :  { %v4948_v52 = vmax.f32 %v4940_v25, 0.0 }
 0xa68   :  { %10452 = vmatprep.mubr.msk.f32.mxu0 %vm148_vm1, %v4948_v52 }
 0xa69   :  { %10453 = vmatmul.mubr.msk.f32.vlgmr.msra.gmra.mrb[80].mxu0 %vm148_vm1, %v4949_v56 }
 0xa6a   :  { %v10465_v55 = vpop.f32.mrb[78].mxu1  ;;  %10888 = vmatpush3.bf16.msra.mxu0 %v13273_v3  ;;  %10474 = vmatprep.mubr.msk.f32.mxu0 %vm148_vm1, %v4948_v52 }
 0xa6b   :  { %v5097_v35 = vpop.f32.mrb[79].mxu1  ;;  %10890 = vmatprep.subr.bf16.mxu0 %v13274_v14  ;;  %v5103_v5 = vadd.f32 %v10465_v55, %v13297_v38 }
 0xa6c   :  { %v5098_v2 = vadd.f32 %v5097_v35, %v13297_v38 }
 0xa6d   :  { %vm5107_vm12 = vcmp.gt.f32.partialorder %v5103_v5, 0.0 }
 0xa6e   :  { %vm5106_vm11 = vcmp.gt.f32.partialorder %v5098_v2, 0.0  ;;  %10892 = vmatpush3.bf16.msra.mxu0 %v13274_v14  ;;  %v9557_v25 = vsel %vm5107_vm12, 1.0, %v13300_v26 }
 0xa6f   :  { %v9556_v47 = vsel %vm5106_vm11, 1.0, %v13300_v26  ;;  %10902 = vmatprep.subr.bf16.mxu0 %v13275_v15  ;;  %v5251_v5 = vrot.slane %v9557_v25, %v11216_v54 }
 0xa70   :  { %v5195_v22 = vcombine.high %v9556_v47, %v9556_v47  ;;  %v5202_v40 = vrot.slane %v9556_v47, %v11216_v54 }
 0xa71   :  { %10475 = vmatmul.mubr.msk.f32.vlgmr.msra.gmra.mrb[82].mxu0 %vm148_vm1, %v4949_v56 }
 0xa72   :  { %v5209_v33 = vrot.slane %v5195_v22, %v11216_v54  ;;  %v5210_v24 = vcombine.high %v5202_v40, %v5202_v40  ;;  %v5218_v13 = vrot.slane %v5202_v40, %v11216_v54  ;;  %10904 = vmatpush3.bf16.msra.mxu0 %v13275_v15  ;;  %v11004_v40 = vld [vmem:[%s13083_s3 + $0xa8] sm:$0xff] }
 0xa73   :  { %10906 = vmatprep.subr.bf16.mxu0 %v13296_v50 }
 0xa74   :  { %v5232_v17 = vrot.slane %v5210_v24, %v11216_v54  ;;  %v5211_v52 = vcombine.high %v5209_v33, %v5209_v33  ;;  %v5240_v55 = vcombine.high %v5218_v13, %v5218_v13  ;;  %v5225_v56 = vrot.slane %v5209_v33, %v11216_v54 }
 0xa75   :  { %v5296_v2 = vrot.slane %v5218_v13, %v11133_v16 }
 0xa76   :  { %10908 = vmatpush3.bf16.msra.mxu0 %v13296_v50  ;;  %v5242_v35 = vcombine.high %v5232_v17, %v5232_v17  ;;  %v5300_v47 = vrot.slane %v5232_v17, %v11133_v16  ;;  %v5304_v22 = vrot.slane %v5240_v55, %v11133_v16  ;;  %v5239_v38 = vrot.slane %v5211_v52, %v11216_v54 }
 0xa77   :  { %v5373_v24 = vmul.f32 %v11004_v40, %v5296_v2  ;;  %v5241_v1 = vcombine.high %v5225_v56, %v5225_v56  ;;  %v5312_v13 = vrot.slane %v5225_v56, %v11133_v16  ;;  %v5244_v17 = vcombine.high %v9557_v25, %v9557_v25 }
 0xa78   :  { %v5374_v15 = vmul.f32 %v11004_v40, %v5300_v47  ;;  %v5375_v50 = vmul.f32 %v11004_v40, %v5304_v22  ;;  %v5308_v33 = vrot.slane %v5242_v35, %v11133_v16  ;;  %v5259_v55 = vcombine.high %v5251_v5, %v5251_v5 }
 0xa79   :  { %10485 = vmatprep.mubr.msk.f32.mxu1 %vm148_vm1, %v5373_v24  ;;  %v5243_v39 = vcombine.high %v5239_v38, %v5239_v38  ;;  %v5316_v2 = vrot.slane %v5239_v38, %v11133_v16  ;;  %v5267_v52 = vrot.slane %v5251_v5, %v11216_v54  ;;  %v5377_v47 = vmul.f32 %v11004_v40, %v5312_v13 }
 0xa7a   :  { %10486 = vmatmul.mubr.msk.f32.vlgmr.msra.gmra.mrb[80].mxu1 %vm148_vm1, %v5374_v15  ;;  %v5376_v29 = vmul.f32 %v11004_v40, %v5308_v33  ;;  %v5320_v35 = vrot.slane %v5241_v1, %v11133_v16  ;;  %v5258_v56 = vrot.slane %v5244_v17, %v11216_v54  ;;  %v5281_v15 = vrot.slane %v5259_v55, %v11216_v54 }
 0xa7b   :  { %10488 = vmatprep.mubr.msk.f32.mxu1 %vm148_vm1, %v5375_v50  ;;  %v5378_v25 = vmul.f32 %v11004_v40, %v5316_v2  ;;  %v5324_v50 = vrot.slane %v5243_v39, %v11133_v16  ;;  %v5289_v22 = vcombine.high %v5267_v52, %v5267_v52  ;;  %v5328_v24 = vrot.slane %v5267_v52, %v11133_v16 }
 0xa7c   :  { %v5379_v38 = vmul.f32 %v11004_v40, %v5320_v35  ;;  %v5260_v1 = vcombine.high %v5258_v56, %v5258_v56  ;;  %v5291_v5 = vcombine.high %v5281_v15, %v5281_v15  ;;  %v5274_v13 = vrot.slane %v5258_v56, %v11216_v54 }
 0xa7d   :  { %v5380_v33 = vmul.f32 %v11004_v40, %v5324_v50  ;;  %v5336_v17 = vrot.slane %v5289_v22, %v11133_v16  ;;  %v5381_v55 = vmul.f32 %v11004_v40, %v5328_v24 }
 0xa7e   :  { %10489 = vmatmul.mubr.msk.f32.gmra.mrb[82].mxu1 %vm148_vm1, %v5376_v29  ;;  %v5332_v29 = vrot.slane %v5281_v15, %v11133_v16  ;;  %v5288_v39 = vrot.slane %v5260_v1, %v11216_v54  ;;  %v5340_v52 = vrot.slane %v5291_v5, %v11133_v16  ;;  %v5344_v35 = vrot.slane %v5274_v13, %v11133_v16 }
 0xa7f   :  { %10491 = vmatprep.mubr.msk.f32.mxu1 %vm148_vm1, %v5377_v47  ;;  %v5290_v47 = vcombine.high %v5274_v13, %v5274_v13 }
 0xa80   :  { %v5382_v2 = vmul.f32 %v11004_v40, %v5332_v29  ;;  %v5292_v56 = vcombine.high %v5288_v39, %v5288_v39  ;;  %v5384_v15 = vmul.f32 %v11004_v40, %v5340_v52  ;;  %v5348_v50 = vrot.slane %v5288_v39, %v11133_v16 }
 0xa81   :  { %v5385_v22 = vmul.f32 %v11004_v40, %v5344_v35  ;;  %v5352_v24 = vrot.slane %v5290_v47, %v11133_v16 }
 0xa82   :  { %10492 = vmatmul.mubr.msk.f32.gmra.mrb[84].mxu1 %vm148_vm1, %v5378_v25  ;;  %v5383_v25 = vmul.f32 %v11004_v40, %v5336_v17  ;;  %v5356_v1 = vrot.slane %v5292_v56, %v11133_v16  ;;  %v13301_v17 = vld [vmem:[#allocation59_spill] sm:$0xff] }
 0xa83   :  { %10494 = vmatprep.mubr.msk.f32.mxu1 %vm148_vm1, %v5379_v38  ;;  %v5386_v38 = vmul.f32 %v11004_v40, %v5348_v50  ;;  %v5387_v5 = vmul.f32 %v11004_v40, %v5352_v24 }
 0xa84   :  { %v5388_v29 = vmul.f32 %v11004_v40, %v5356_v1  ;;  %v7550_v1 = vpop.permute.xlu0 %7549 }
 0xa86   :  { %10495 = vmatmul.mubr.msk.f32.gmra.mrb[86].mxu1 %vm148_vm1, %v5380_v33 }
 0xa87   :  { %10497 = vmatprep.mubr.msk.f32.mxu1 %vm148_vm1, %v5381_v55 }
 0xa8a   :  { %10498 = vmatmul.mubr.msk.f32.gmra.mrb[88].mxu1 %vm148_vm1, %v5382_v2 }
 0xa8b   :  { %10500 = vmatprep.mubr.msk.f32.mxu1 %vm148_vm1, %v5383_v25 }
 0xa8e   :  { %10501 = vmatmul.mubr.msk.f32.gmra.mrb[90].mxu1 %vm148_vm1, %v5384_v15 }
 0xa8f   :  { %10503 = vmatprep.mubr.msk.f32.mxu1 %vm148_vm1, %v5385_v22 }
 0xa92   :  { %10504 = vmatmul.mubr.msk.f32.gmra.mrb[92].mxu1 %vm148_vm1, %v5386_v38 }
 0xa93   :  { %10506 = vmatprep.mubr.msk.f32.mxu1 %vm148_vm1, %v5387_v5 }
 0xa96   :  { %10507 = vmatmul.mubr.msk.f32.gmra.mrb[94].mxu1 %vm148_vm1, %v5388_v29 }
 0xa97   :  { %10543 = vmatprep.mubr.msk.f32.mxu1 %vm1636_vm4, %v11996_v32 }
 0xb3c   :  { %v12204_v33 = vpop.f32.mrb[80].mxu0 }
 0xb3d   :  { %v5022_v13 = vpop.f32.mrb[81].mxu0 }
 0xb3e   :  { %v5023_v55 = vadd.f32 %v5022_v13, %v13301_v17 }
 0xb40   :  { %v7541_v39 = vmul.f32 %v5023_v55, %v11950_v42 }
 0xb42   :  { %v7543_v2 = vadd.f32 %v7541_v39, %v11348_v51 }
 0xb44   :  { %v10476_v52 = vpop.f32.mrb[82].mxu0  ;;  %v7545_v47 = vmul.f32 1.442695, %v7543_v2 }
 0xb45   :  { %v5178_v35 = vpop.f32.mrb[83].mxu0  ;;  %v5184_v40 = vadd.f32 %v10476_v52, %v13299_v30 }
 0xb46   :  { %v5179_v25 = vadd.f32 %v5178_v35, %v13299_v30  ;;  %10979 = vpow2.f32 %v7545_v47 }
 0xb47   :  { %vm5188_vm14 = vcmp.gt.f32.partialorder %v5184_v40, 0.0 }
 0xb48   :  { %vm5187_vm13 = vcmp.gt.f32.partialorder %v5179_v25, 0.0  ;;  %v9561_v13 = vsel %vm5188_vm14, 1.0, %v13300_v26 }
 0xb49   :  { %v9560_v32 = vsel %vm5187_vm13, 1.0, %v13300_v26 }
 0xb4a   :  { %v5584_v56 = vcombine.high %v9560_v32, %v9560_v32  ;;  %v5591_v15 = vrot.slane %v9560_v32, %v11216_v54 }
 0xb4c   :  { %v5598_v50 = vrot.slane %v5584_v56, %v11216_v54  ;;  %v5599_v22 = vcombine.high %v5591_v15, %v5591_v15  ;;  %v5607_v51 = vrot.slane %v5591_v15, %v11216_v54  ;;  %v5640_v56 = vrot.slane %v9561_v13, %v11216_v54 }
 0xb4d   :  { %v10487_v55 = vpop.f32.mrb[80].mxu1 }
 0xb4e   :  { %v5621_v24 = vrot.slane %v5599_v22, %v11216_v54  ;;  %v5685_v38 = vrot.slane %v5607_v51, %v11133_v16  ;;  %v5629_v5 = vcombine.high %v5607_v51, %v5607_v51  ;;  %v5600_v29 = vcombine.high %v5598_v50, %v5598_v50  ;;  %v5503_v47 = vpop.f32.mrb[81].mxu1 }
 0xb50   :  { %v12218_v39 = vpop.eup %10979  ;;  %v5689_v52 = vrot.slane %v5621_v24, %v11133_v16  ;;  %v5631_v35 = vcombine.high %v5621_v24, %v5621_v24  ;;  %v5762_v25 = vmul.f32 %v5685_v38, %v5503_v47  ;;  %v5693_v32 = vrot.slane %v5629_v5, %v11133_v16 }
 0xb51   :  { %v12222_v40 = vmul.f32 %v12218_v39, %v7550_v1  ;;  %v5628_v51 = vrot.slane %v5600_v29, %v11216_v54  ;;  %v10490_v14 = vpop.f32.mrb[82].mxu1  ;;  %v5614_v24 = vrot.slane %v5598_v50, %v11216_v54 }
 0xb52   :  { %v5763_v15 = vmul.f32 %v10487_v55, %v5689_v52  ;;  %v5697_v22 = vrot.slane %v5631_v35, %v11133_v16  ;;  %10517 = vmatprep.mubr.msk.f32.mxu0 %vm148_vm1, %v5762_v25  ;;  %v5513_v1 = vpop.f32.mrb[83].mxu1  ;;  %v5633_v55 = vcombine.high %v9561_v13, %v9561_v13  ;;  %v5648_v52 = vcombine.high %v5640_v56, %v5640_v56 }
 0xb53   :  { %v12229_v30 = vadd.f32 %v12222_v40, %v7543_v2  ;;  %v5764_v5 = vmul.f32 %v5693_v32, %v5513_v1  ;;  %v5632_v47 = vcombine.high %v5628_v51, %v5628_v51  ;;  %v5705_v2 = vrot.slane %v5628_v51, %v11133_v16 }
 0xb54   :  { %v5765_v38 = vmul.f32 %v10490_v14, %v5697_v22  ;;  %10518 = vmatmul.mubr.msk.f32.vlgmr.msra.gmra.mrb[84].mxu0 %vm148_vm1, %v5763_v15  ;;  %v5630_v35 = vcombine.high %v5614_v24, %v5614_v24  ;;  %v5701_v50 = vrot.slane %v5614_v24, %v11133_v16  ;;  %v5647_v32 = vrot.slane %v5633_v55, %v11216_v54 }
 0xb55   :  { %13302 = vst [vmem:[#allocation19_spill] sm:$0xff] %v12229_v30  ;;  %7992 = vrot.lane.b32.xlu0 %v12229_v30, %s11033_s18  ;;  %v10493_v29 = vpop.f32.mrb[84].mxu1  ;;  %10520 = vmatprep.mubr.msk.f32.mxu0 %vm148_vm1, %v5764_v5  ;;  %v5713_v22 = vrot.slane %v5632_v47, %v11133_v16  ;;  %v5670_v13 = vrot.slane %v5648_v52, %v11216_v54 }
 0xb56   :  { %v5523_v25 = vpop.f32.mrb[85].mxu1  ;;  %v5767_v14 = vmul.f32 %v10493_v29, %v5705_v2  ;;  %v5709_v30 = vrot.slane %v5630_v35, %v11133_v16  ;;  %v5656_v51 = vrot.slane %v5640_v56, %v11216_v54  ;;  %v5649_v29 = vcombine.high %v5647_v32, %v5647_v32 }
 0xb57   :  { %v5766_v15 = vmul.f32 %v5701_v50, %v5523_v25  ;;  %v5680_v55 = vcombine.high %v5670_v13, %v5670_v13 }
 0xb58   :  { %10521 = vmatmul.mubr.msk.f32.gmra.mrb[86].mxu0 %vm148_vm1, %v5765_v38  ;;  %v5721_v38 = vrot.slane %v5670_v13, %v11133_v16  ;;  %v5717_v52 = vrot.slane %v5656_v51, %v11133_v16  ;;  %v5678_v47 = vcombine.high %v5656_v51, %v5656_v51 }
 0xb59   :  { %v10496_v1 = vpop.f32.mrb[86].mxu1  ;;  %10523 = vmatprep.mubr.msk.f32.mxu0 %vm148_vm1, %v5766_v15  ;;  %v5729_v50 = vrot.slane %v5680_v55, %v11133_v16  ;;  %v5663_v15 = vrot.slane %v5647_v32, %v11216_v54 }
 0xb5a   :  { %v5769_v5 = vmul.f32 %v10496_v1, %v5713_v22  ;;  %v5533_v3 = vpop.f32.mrb[87].mxu1 }
 0xb5b   :  { %v5768_v24 = vmul.f32 %v5709_v30, %v5533_v3  ;;  %v5677_v3 = vrot.slane %v5649_v29, %v11216_v54  ;;  %v5679_v55 = vcombine.high %v5663_v15, %v5663_v15 }
 0xb5c   :  { %10524 = vmatmul.mubr.msk.f32.gmra.mrb[88].mxu0 %vm148_vm1, %v5767_v14  ;;  %v5725_v14 = vrot.slane %v5678_v47, %v11133_v16 }
 0xb5d   :  { %v10499_v2 = vpop.f32.mrb[88].mxu1  ;;  %10526 = vmatprep.mubr.msk.f32.mxu0 %vm148_vm1, %v5768_v24  ;;  %v5737_v51 = vrot.slane %v5677_v3, %v11133_v16  ;;  %v5681_v24 = vcombine.high %v5677_v3, %v5677_v3 }
 0xb5e   :  { %v5771_v35 = vmul.f32 %v10499_v2, %v5721_v38  ;;  %v5543_v25 = vpop.f32.mrb[89].mxu1  ;;  %v5733_v38 = vrot.slane %v5663_v15, %v11133_v16  ;;  %v13303_v15 = vld [vmem:[#allocation10_spill] sm:$0xff] }
 0xb5f   :  { %v5770_v56 = vmul.f32 %v5717_v52, %v5543_v25  ;;  %v5745_v32 = vrot.slane %v5681_v24, %v11133_v16 }
 0xb60   :  { %10527 = vmatmul.mubr.msk.f32.gmra.mrb[90].mxu0 %vm148_vm1, %v5769_v5 }
 0xb61   :  { %v10502_v30 = vpop.f32.mrb[90].mxu1  ;;  %10529 = vmatprep.mubr.msk.f32.mxu0 %vm148_vm1, %v5770_v56 }
 0xb62   :  { %v5773_v22 = vmul.f32 %v10502_v30, %v5729_v50  ;;  %v5553_v13 = vpop.f32.mrb[91].mxu1  ;;  %v12274_v30 = vld [vmem:[%s13082_s2] sm:$0xff]  ;;  %s11036_s2 = smov 16  }
 0xb63   :  { %v5772_v1 = vmul.f32 %v5725_v14, %v5553_v13  ;;  %v7999_v14 = vrot.slane %v12274_v30, %v11133_v16 }
 0xb64   :  { %10530 = vmatmul.mubr.msk.f32.gmra.mrb[92].mxu0 %vm148_vm1, %v5771_v35  ;;  %v5741_v35 = vrot.slane %v5679_v55, %v11133_v16  ;;  %v13308_v55 = vsub.s32 5, %v13303_v15 }
 0xb65   :  { %v10505_v5 = vpop.f32.mrb[92].mxu1  ;;  %10532 = vmatprep.mubr.msk.f32.mxu0 %vm148_vm1, %v5772_v1  ;;  %8001 = vbcast.lane.b32.xlu1 %v7999_v14, 256 }
 0xb66   :  { %v5775_v29 = vmul.f32 %v10505_v5, %v5737_v51  ;;  %v5563_v2 = vpop.f32.mrb[93].mxu1  ;;  %v13306_v51 = vsub.s32 3, %v13303_v15  ;;  %v13307_v5 = vsub.s32 4, %v13303_v15 }
 0xb67   :  { %v5774_v52 = vmul.f32 %v5733_v38, %v5563_v2  ;;  %v13309_v2 = vsub.s32 6, %v13303_v15 }
 0xb68   :  { %10533 = vmatmul.mubr.msk.f32.gmra.mrb[94].mxu0 %vm148_vm1, %v5773_v22  ;;  %v13304_v22 = vsub.s32 1, %v13303_v15  ;;  %v8020_v24 = vrot.slane %v12274_v30, %v13306_v51  ;;  %v8027_v38 = vrot.slane %v12274_v30, %v13307_v5 }
 0xb69   :  { %v10508_v47 = vpop.f32.mrb[94].mxu1  ;;  %10535 = vmatprep.mubr.msk.f32.mxu0 %vm148_vm1, %v5774_v52  ;;  %8118 = vbcast.lane.b32.xlu1 %v7999_v14, 264  ;;  %v8041_v52 = vrot.slane %v12274_v30, %v13309_v2 }
 0xb6a   :  { %v5777_v25 = vmul.f32 %v10508_v47, %v5745_v32  ;;  %v5573_v56 = vpop.f32.mrb[95].mxu1  ;;  %v8006_v13 = vrot.slane %v12274_v30, %v13304_v22  ;;  %v13310_v32 = vsub.s32 7, %v13303_v15 }
 0xb6b   :  { %v5776_v50 = vmul.f32 %v5741_v35, %v5573_v56 }
 0xb6c   :  { %10536 = vmatmul.mubr.msk.f32.gmra.mrb[96].mxu0 %vm148_vm1, %v5775_v29  ;;  %8008 = vbcast.lane.b32.xlu0 %v8006_v13, 256  ;;  %v8034_v29 = vrot.slane %v12274_v30, %v13308_v55  ;;  %v8048_v47 = vrot.slane %v12274_v30, %v13310_v32 }
 0xb6d   :  { %10538 = vmatprep.mubr.msk.f32.mxu0 %vm148_vm1, %v5776_v50 }
 0xb70   :  { %10539 = vmatmul.mubr.msk.f32.gmra.mrb[98].mxu0 %vm148_vm1, %v5777_v25  ;;  %8122 = vbcast.lane.b32.xlu0 %v8006_v13, 264 }
 0xb71   :  { %10553 = vmatprep.mubr.msk.f32.mxu0 %vm1636_vm4, %v12014_v27  ;;  %v13305_v27 = vsub.s32 2, %v13303_v15 }
 0xb73   :  { %v8013_v1 = vrot.slane %v12274_v30, %v13305_v27 }
 0xb75   :  { %8015 = vbcast.lane.b32.xlu1 %v8013_v1, 256  ;;  %8126 = vbcast.lane.b32.xlu0 %v8013_v1, 264 }
 0xb79   :  { %8022 = vbcast.lane.b32.xlu1 %v8020_v24, 256  ;;  %8130 = vbcast.lane.b32.xlu0 %v8020_v24, 264  ;;  %v7557_v24 = vadd.f32 1.0, %v12222_v40 }
 0xb7d   :  { %8029 = vbcast.lane.b32.xlu1 %v8027_v38, 256  ;;  %8134 = vbcast.lane.b32.xlu0 %v8027_v38, 264 }
 0xb81   :  { %8036 = vbcast.lane.b32.xlu1 %v8034_v29, 256  ;;  %8138 = vbcast.lane.b32.xlu0 %v8034_v29, 264 }
 0xb85   :  { %8043 = vbcast.lane.b32.xlu1 %v8041_v52, 256  ;;  %8142 = vbcast.lane.b32.xlu0 %v8041_v52, 264 }
 0xb89   :  { %8050 = vbcast.lane.b32.xlu1 %v8048_v47, 256  ;;  %8146 = vbcast.lane.b32.xlu0 %v8048_v47, 264 }
 0xb8d   :  { %9307 = vrot.lane.b32.xlu1 %v12274_v30, %s11036_s2 }
 0xbc7   :  { %v12268_v3 = vpop.permute.xlu0 %7992 }
 0xbc8   :  { %9305 = vst.msk [vmem:[#allocation2] sm:$0xff] %vm9304_vm15, %v12268_v3  ;;  %vm9310_vm15 = vcmask 195712  }
 0xc27   :  { %v10519_v35 = vpop.f32.mrb[84].mxu0 }
 0xc28   :  { %v5892_v25 = vpop.f32.mrb[85].mxu0 }
 0xc29   :  { %10541 = vmatprep.subr.mxu1 %v5892_v25 }
 0xc2a   :  { %10542 = vmatpush3.msra.mxu1 %v5892_v25  ;;  %v7575_v25 = vrot.slane %v7557_v24, %v11216_v54 }
 0xc2b   :  { %v10522_v56 = vpop.f32.mrb[86].mxu0  ;;  %10544 = vmatmul.mubr.msk.f32.vlgmr.msra.gmra.mrb[96].mxu1 %vm1636_vm4, %v11992_v6  ;;  %10546 = vmatprep.subr.mxu1 %v10519_v35 }
 0xc2c   :  { %v5902_v50 = vpop.f32.mrb[87].mxu0  ;;  %10547 = vmatpush3.msra.mxu1 %v10519_v35  ;;  %10548 = vmatprep.mubr.msk.f32.mxu1 %vm1636_vm4, %v12012_v37 }
 0xc2d   :  { %10551 = vmatprep.subr.mxu0 %v5902_v50  ;;  %10556 = vmatprep.subr.mxu1 %v10522_v56 }
 0xc2e   :  { %10552 = vmatpush3.msra.mxu0 %v5902_v50  ;;  %v7787_v50 = vrot.slane %v12218_v39, %v11216_v54 }
 0xc2f   :  { %10549 = vmatmul.mubr.msk.f32.vlgmr.msra.gmra.mrb[98].mxu1 %vm1636_vm4, %v12007_v10  ;;  %10554 = vmatmul.mubr.msk.f32.vlgmr.msra.gmra.mrb[100].mxu0 %vm1636_vm4, %v12009_v46  ;;  %v10525_v14 = vpop.f32.mrb[88].mxu0 }
 0xc30   :  { %10557 = vmatpush3.msra.mxu1 %v10522_v56  ;;  %10558 = vmatprep.mubr.msk.f32.mxu1 %vm1636_vm4, %v12027_v7  ;;  %v5912_v6 = vpop.f32.mrb[89].mxu0 }
 0xc31   :  { %10563 = vmatprep.mubr.msk.f32.mxu0 %vm1636_vm4, %v12031_v23  ;;  %10566 = vmatprep.subr.mxu1 %v10525_v14 }
 0xc32   :  { %10561 = vmatprep.subr.mxu0 %v5912_v6 }
 0xc33   :  { %10562 = vmatpush3.msra.mxu0 %v5912_v6  ;;  %10559 = vmatmul.mubr.msk.f32.vlgmr.msra.gmra.mrb[100].mxu1 %vm1636_vm4, %v12022_v34  ;;  %v10528_v37 = vpop.f32.mrb[90].mxu0 }
 0xc34   :  { %10564 = vmatmul.mubr.msk.f32.vlgmr.msra.gmra.mrb[102].mxu0 %vm1636_vm4, %v12025_v31  ;;  %10567 = vmatpush3.msra.mxu1 %v10525_v14  ;;  %v5922_v10 = vpop.f32.mrb[91].mxu0 }
 0xc35   :  { %10568 = vmatprep.mubr.msk.f32.mxu1 %vm1636_vm4, %v12044_v20  ;;  %10573 = vmatprep.mubr.msk.f32.mxu0 %vm1636_vm4, %v12049_v18  ;;  %v7995_v20 = vsel %vm1636_vm4, %v13298_v41, %v12268_v3  ;;  %v13312_v18 = vld [vmem:[#allocation7_spill] sm:$0xff] }
 0xc36   :  { %10576 = vmatprep.subr.mxu1 %v10528_v37  ;;  %10571 = vmatprep.subr.mxu0 %v5922_v10 }
 0xc37   :  { %10572 = vmatpush3.msra.mxu0 %v5922_v10  ;;  %10569 = vmatmul.mubr.msk.f32.vlgmr.msra.gmra.mrb[102].mxu1 %vm1636_vm4, %v12038_v11  ;;  %v10531_v7 = vpop.f32.mrb[92].mxu0 }
 0xc38   :  { %10574 = vmatmul.mubr.msk.f32.vlgmr.msra.gmra.mrb[104].mxu0 %vm1636_vm4, %v12042_v8  ;;  %10577 = vmatpush3.msra.mxu1 %v10528_v37  ;;  %v5932_v46 = vpop.f32.mrb[93].mxu0 }
 0xc39   :  { %10578 = vmatprep.mubr.msk.f32.mxu1 %vm1636_vm4, %v12059_v62  ;;  %10583 = vmatprep.mubr.msk.f32.mxu0 %vm1636_vm4, %v12063_v12  ;;  %v13315_v62 = vld [vmem:[#allocation12_spill] sm:$0xff]  ;;  %v5028_v12 = vadd.f32 %v12204_v33, %v13301_v17  ;;  %v13324_v17 = vld [vmem:[#allocation23_spill] sm:$0xff] }
 0xc3a   :  { %10586 = vmatprep.subr.mxu1 %v10531_v7  ;;  %10581 = vmatprep.subr.mxu0 %v5932_v46 }
 0xc3b   :  { %10582 = vmatpush3.msra.mxu0 %v5932_v46  ;;  %10579 = vmatmul.mubr.msk.f32.vlgmr.msra.gmra.mrb[104].mxu1 %vm1636_vm4, %v12054_v45  ;;  %v10534_v34 = vpop.f32.mrb[94].mxu0  ;;  %v13313_v45 = vld [vmem:[#allocation9_spill] sm:$0xff] }
 0xc3c   :  { %10584 = vmatmul.mubr.msk.f32.vlgmr.msra.gmra.mrb[106].mxu0 %vm1636_vm4, %v12057_v19  ;;  %10587 = vmatpush3.msra.mxu1 %v10531_v7  ;;  %v5942_v31 = vpop.f32.mrb[95].mxu0  ;;  %v13314_v19 = vld [vmem:[#allocation8_spill] sm:$0xff] }
 0xc3d   :  { %10588 = vmatprep.mubr.msk.f32.mxu1 %vm1636_vm4, %v12075_v21  ;;  %10593 = vmatprep.mubr.msk.f32.mxu0 %vm1636_vm4, %v12078_v57 }
 0xc3e   :  { %10596 = vmatprep.subr.mxu1 %v10534_v34  ;;  %10591 = vmatprep.subr.mxu0 %v5942_v31 }
 0xc3f   :  { %10592 = vmatpush3.msra.mxu0 %v5942_v31  ;;  %10589 = vmatmul.mubr.msk.f32.vlgmr.msra.gmra.mrb[106].mxu1 %vm1636_vm4, %v12069_v4  ;;  %v10537_v23 = vpop.f32.mrb[96].mxu0  ;;  %v13316_v31 = vlaneseq }
 0xc40   :  { %10594 = vmatmul.mubr.msk.f32.vlgmr.msra.gmra.mrb[108].mxu0 %vm1636_vm4, %v12073_v36  ;;  %10597 = vmatpush3.msra.mxu1 %v10534_v34  ;;  %v5952_v11 = vpop.f32.mrb[97].mxu0  ;;  %v7542_v36 = vmul.f32 %v5028_v12, %v11959_v44 }
 0xc41   :  { %10598 = vmatprep.mubr.msk.f32.mxu1 %vm1636_vm4, %v12089_v49  ;;  %10603 = vmatprep.mubr.msk.f32.mxu0 %vm1636_vm4, %v12092_v61  ;;  %v13178_v61 = vmov 0.0|0.0   ;;  %v7306_v49 = vrot.slane %v11950_v42, %v11216_v54 }
 0xc42   :  { %10606 = vmatprep.subr.mxu1 %v10537_v23  ;;  %10601 = vmatprep.subr.mxu0 %v5952_v11  ;;  %v7544_v21 = vadd.f32 %v7542_v36, %v13269_v48  ;;  %v7348_v48 = vcombine.high %v11959_v44, %v11959_v44 }
 0xc43   :  { %10602 = vmatpush3.msra.mxu0 %v5952_v11  ;;  %10599 = vmatmul.mubr.msk.f32.vlgmr.msra.gmra.mrb[108].mxu1 %vm1636_vm4, %v12084_v58  ;;  %v10540_v8 = vpop.f32.mrb[98].mxu0  ;;  %v7299_v58 = vcombine.high %v11950_v42, %v11950_v42  ;;  %v7322_v33 = vrot.slane %v7306_v49, %v11216_v54 }
 0xc44   :  { %10604 = vmatmul.mubr.msk.f32.vlgmr.msra.gmra.mrb[110].mxu0 %vm1636_vm4, %v12087_v0  ;;  %10607 = vmatpush3.msra.mxu1 %v10537_v23  ;;  %v5962_v4 = vpop.f32.mrb[99].mxu0  ;;  %v13311_v0 = vld [vmem:[#allocation6_spill] sm:$0xff]  ;;  %v7547_v57 = vmul.f32 1.442695, %v7544_v21  ;;  %v7362_v13 = vrot.slane %v7348_v48, %v11216_v54  ;;  %v7562_v23 = vand.u32 127, %v13316_v31 }
 0xc45   :  { %10608 = vmatprep.mubr.msk.f32.mxu1 %vm1636_vm4, %v12103_v60  ;;  %10613 = vmatprep.mubr.msk.f32.mxu0 %vm1636_vm4, %v12105_v63  ;;  %v7552_v60 = vpop.permute.xlu1 %7551  ;;  %v7314_v63 = vcombine.high %v7306_v49, %v7306_v49  ;;  %v7344_v5 = vcombine.high %v7322_v33, %v7322_v33  ;;  %v12406_v2 = vrot.slane %v7322_v33, %v11133_v16 }
 0xc46   :  { %10616 = vmatprep.subr.mxu1 %v10540_v8  ;;  %10611 = vmatprep.subr.mxu0 %v5962_v4  ;;  %10981 = vpow2.f32 %v7547_v57  ;;  %v7364_v29 = vcombine.high %v7362_v13, %v7362_v13  ;;  %v7378_v37 = vrot.slane %v7362_v13, %v11216_v54  ;;  %v7803_v33 = vrot.slane %v7787_v50, %v11216_v54 }
 0xc47   :  { %10612 = vmatpush3.msra.mxu0 %v5962_v4  ;;  %10609 = vmatmul.mubr.msk.f32.vlgmr.msra.gmra.mrb[110].mxu1 %vm1636_vm4, %v12097_v9  ;;  %v7313_v9 = vrot.slane %v7299_v58, %v11216_v54  ;;  %v7336_v22 = vrot.slane %v7314_v63, %v11216_v54  ;;  %v12413_v40 = vrot.slane %v7344_v5, %v11133_v16 }
 0xc48   :  { %10614 = vmatmul.mubr.msk.f32.vlgmr.msra.gmra.mrb[112].mxu0 %vm1636_vm4, %v12101_v28  ;;  %10617 = vmatpush3.msra.mxu1 %v10540_v8  ;;  %v7392_v34 = vrot.slane %v7364_v29, %v11216_v54  ;;  %v7394_v36 = vcombine.high %v7378_v37, %v7378_v37  ;;  %v12453_v58 = vrot.slane %v7378_v37, %v11133_v16 }
 0xc49   :  { %10909 = vmatprep.subr.bf16.mxu0 %v13178_v61  ;;  %10618 = vmatprep.mubr.msk.f32.mxu1 %vm1636_vm4, %v12113_v43  ;;  %v7315_v3 = vcombine.high %v7313_v9, %v7313_v9  ;;  %v7329_v27 = vrot.slane %v7313_v9, %v11216_v54  ;;  %v7346_v38 = vcombine.high %v7336_v22, %v7336_v22 }
 0xc4a   :  { %10911 = vmatpush3.bf16.msra.mxu0 %v13311_v0  ;;  %10625 = vmatprep.mubr.msk.f32.mxu0 %vm11035_vm2, %v13300_v26  ;;  %v12409_v52 = vrot.slane %v7336_v22, %v11133_v16  ;;  %13318 = vst [vmem:[#allocation63_spill] sm:$0xff] %v12453_v58  ;;  %v7591_v9 = vrot.slane %v7575_v25, %v11216_v54 }
 0xc4b   :  { %10619 = vmatmul.mubr.msk.f32.vlgmr.msra.gmra.mrb[112].mxu1 %vm1636_vm4, %v12109_v53  ;;  %10912 = vmatprep.subr.bf16.mxu1 %v13178_v61  ;;  %v7355_v53 = vrot.slane %v11959_v44, %v11216_v54  ;;  %v7343_v44 = vrot.slane %v7315_v3, %v11216_v54  ;;  %v7345_v32 = vcombine.high %v7329_v27, %v7329_v27 }
 0xc4c   :  { %10914 = vmatpush3.bf16.msra.mxu1 %v13312_v18  ;;  %10636 = vmatprep.mubr.msk.f32.mxu1 %vm11035_vm2, %v13300_v26  ;;  %v12418_v14 = vrot.slane %v7346_v38, %v11133_v16  ;;  %v12421_v6 = vrot.slane %v7329_v27, %v11133_v16  ;;  %v7780_v18 = vcombine.high %v12218_v39, %v12218_v39 }
 0xc4d   :  { %10626 = vmatmul.mubr.msk.f32.vlgmr.msra.gmra.mrb[114].mxu0 %vm62_vm0, %v7995_v20  ;;  %10915 = vmatprep.subr.bf16.mxu1 %v13178_v61  ;;  %v7363_v42 = vcombine.high %v7355_v53, %v7355_v53  ;;  %v7371_v1 = vrot.slane %v7355_v53, %v11216_v54  ;;  %v7347_v56 = vcombine.high %v7343_v44, %v7343_v44 }
 0xc4e   :  { %10918 = vmatprep.subr.bf16.mxu0 %v13178_v61  ;;  %10647 = vmatprep.mubr.msk.f32.mxu0 %vm11035_vm2, %v13300_v26  ;;  %v12431_v11 = vrot.slane %v7343_v44, %v11133_v16  ;;  %v12434_v8 = vrot.slane %v7345_v32, %v11133_v16  ;;  %v7583_v20 = vcombine.high %v7575_v25, %v7575_v25 }
 0xc4f   :  { %10920 = vmatpush3.bf16.msra.mxu0 %v13313_v45  ;;  %v7385_v55 = vrot.slane %v7363_v42, %v11216_v54  ;;  %v7393_v47 = vcombine.high %v7371_v1, %v7371_v1  ;;  %v12426_v7 = vrot.slane %v7371_v1, %v11133_v16  ;;  %v12443_v45 = vrot.slane %v7347_v56, %v11133_v16 }
 0xc50   :  { %10917 = vmatpush3.bf16.msra.mxu1 %v13314_v19  ;;  %10921 = vmatprep.subr.bf16.mxu0 %v13178_v61  ;;  %v12390_v28 = vpop.eup %10981  ;;  %v7568_v19 = vcombine.high %v7557_v24, %v7557_v24  ;;  %v7396_v39 = vcombine.high %v7392_v34, %v7392_v34  ;;  %vm7563_vm0 = vcmp.eq.s32.totalorder %v13303_v15, %v7562_v23 }
 0xc51   :  { %10924 = vmatprep.subr.bf16.mxu1 %v13178_v61  ;;  %v7556_v43 = vmul.f32 %v12390_v28, %v7552_v60  ;;  %v7395_v46 = vcombine.high %v7385_v55, %v7385_v55  ;;  %v12437_v4 = vrot.slane %v7393_v47, %v11133_v16  ;;  %v12446_v12 = vrot.slane %v7385_v55, %v11133_v16 }
 0xc52   :  { %v12461_v60 = vrot.slane %v7392_v34, %v11133_v16  ;;  %v7605_v53 = vrot.slane %v7583_v20, %v11216_v54  ;;  %v7794_v48 = vrot.slane %v7780_v18, %v11216_v54  ;;  %v12472_v22 = vrot.slane %v7394_v36, %v11133_v16 }
 0xc53   :  { %10923 = vmatpush3.bf16.msra.mxu0 %v13315_v62  ;;  %v7558_v51 = vadd.f32 1.0, %v7556_v43  ;;  %v7795_v62 = vcombine.high %v7787_v50, %v7787_v50  ;;  %v12450_v57 = vrot.slane %v7395_v46, %v11133_v16  ;;  %v7582_v43 = vrot.slane %v7568_v19, %v11216_v54 }
 0xc54   :  { %10661 = vmatprep.subr.mxu0 %v13300_v26  ;;  %13319 = vst [vmem:[#allocation64_spill] sm:$0xff] %v12461_v60  ;;  %13320 = vst [vmem:[#allocation65_spill] sm:$0xff] %v12472_v22  ;;  %v12478_v42 = vsel %vm7563_vm0, 1.0, %v13300_v26  ;;  %v7836_v13 = vrot.slane %v12390_v28, %v11216_v54  ;;  %v12483_v27 = vrot.slane %v7396_v39, %v11133_v16 }
 0xc55   :  { %v7617_v35 = vcombine.high %v7558_v51, %v7558_v51  ;;  %v7624_v10 = vrot.slane %v7558_v51, %v11216_v54  ;;  %13317 = vst [vmem:[#allocation60_spill] sm:$0xff] %v12450_v57  ;;  %v7817_v3 = vrot.slane %v7795_v62, %v11216_v54  ;;  %v7613_v24 = vcombine.high %v7591_v9, %v7591_v9 }
 0xc56   :  { %13321 = vst [vmem:[#allocation67_spill] sm:$0xff] %v12483_v27  ;;  %v7829_v5 = vcombine.high %v12390_v28, %v12390_v28  ;;  %v7615_v55 = vcombine.high %v7605_v53, %v7605_v53  ;;  %v7796_v29 = vcombine.high %v7794_v48, %v7794_v48  ;;  %v7825_v32 = vcombine.high %v7803_v33, %v7803_v33 }
 0xc57   :  { %v7631_v0 = vrot.slane %v7617_v35, %v11216_v54  ;;  %v7632_v21 = vcombine.high %v7624_v10, %v7624_v10  ;;  %v12456_v49 = vrot.slane %v7624_v10, %v11216_v54  ;;  %v7827_v47 = vcombine.high %v7817_v3, %v7817_v3 }
 0xc58   :  { %v7810_v35 = vrot.slane %v7794_v48, %v11216_v54  ;;  %v7584_v25 = vcombine.high %v7582_v43, %v7582_v43  ;;  %v7881_v50 = vrot.slane %v7803_v33, %v11133_v16  ;;  %v7598_v28 = vrot.slane %v7582_v43, %v11216_v54 }
 0xc59   :  { %v7633_v63 = vcombine.high %v7631_v0, %v7631_v0  ;;  %v12464_v30 = vrot.slane %v7631_v0, %v11216_v54  ;;  %v12475_v15 = vrot.slane %v7632_v21, %v11216_v54  ;;  %v7662_v1 = vcombine.high %v12456_v49, %v12456_v49 }
 0xc5a   :  { %v12489_v51 = vrot.slane %v12456_v49, %v11133_v16  ;;  %v7844_v37 = vcombine.high %v7836_v13, %v7836_v13  ;;  %v12504_v10 = vrot.slane %v7591_v9, %v11133_v16  ;;  %v7885_v46 = vrot.slane %v7817_v3, %v11133_v16 }
 0xc5b   :  { %v12494_v44 = vrot.slane %v7633_v63, %v11216_v54  ;;  %v7664_v56 = vcombine.high %v12475_v15, %v12475_v15  ;;  %v7852_v34 = vrot.slane %v7836_v13, %v11216_v54  ;;  %v7843_v31 = vrot.slane %v7829_v5, %v11216_v54 }
 0xc5c   :  { %v12510_v23 = vrot.slane %v7605_v53, %v11133_v16  ;;  %v12513_v0 = vrot.slane %v7613_v24, %v11133_v16  ;;  %v12516_v20 = vrot.slane %v7615_v55, %v11133_v16  ;;  %v7824_v18 = vrot.slane %v7796_v29, %v11216_v54 }
 0xc5d   :  { %v7889_v19 = vrot.slane %v7825_v32, %v11133_v16  ;;  %v7893_v62 = vrot.slane %v7827_v47, %v11133_v16  ;;  %v7612_v36 = vrot.slane %v7584_v25, %v11216_v54  ;;  %v7826_v21 = vcombine.high %v7810_v35, %v7810_v35 }
 0xc5e   :  { %v12523_v39 = vmul.f32 %v12478_v42, %v7881_v50  ;;  %v12526_v49 = vrot.slane %v7598_v28, %v11133_v16  ;;  %v7897_v9 = vrot.slane %v7810_v35, %v11133_v16  ;;  %v7866_v63 = vrot.slane %v7844_v37, %v11216_v54 }
 0xc5f   :  { %v12531_v53 = vmul.f32 %v12478_v42, %v7885_v46  ;;  %v7913_v48 = vrot.slane %v7852_v34, %v11133_v16  ;;  %v7859_v43 = vrot.slane %v7843_v31, %v11216_v54  ;;  %v7845_v33 = vcombine.high %v7843_v31, %v7843_v31 }
 0xc60   :  { %v7901_v3 = vrot.slane %v7824_v18, %v11133_v16  ;;  %v7614_v13 = vcombine.high %v7598_v28, %v7598_v28  ;;  %v7874_v24 = vcombine.high %v7852_v34, %v7852_v34  ;;  %v7828_v5 = vcombine.high %v7824_v18, %v7824_v18  ;;  %v8002_v18 = vpop.permute.xlu1 %8001 }
 0xc61   :  { %v12537_v55 = vmul.f32 %v12478_v42, %v7889_v19  ;;  %v12540_v29 = vmul.f32 %v12478_v42, %v7893_v62  ;;  %v12543_v32 = vrot.slane %v7612_v36, %v11133_v16  ;;  %v7905_v47 = vrot.slane %v7826_v21, %v11133_v16 }
 0xc62   :  { %v12547_v35 = vmul.f32 %v12478_v42, %v7897_v9  ;;  %v12551_v25 = vrot.slane %v12475_v15, %v11133_v16  ;;  %v7616_v50 = vcombine.high %v7612_v36, %v7612_v36  ;;  %v7876_v28 = vcombine.high %v7866_v63, %v7866_v63 }
 0xc63   :  { %v12554_v37 = vmul.f32 %v12478_v42, %v7913_v48  ;;  %v7917_v46 = vrot.slane %v7866_v63, %v11133_v16  ;;  %v7873_v34 = vrot.slane %v7845_v33, %v11216_v54  ;;  %v7875_v31 = vcombine.high %v7859_v43, %v7859_v43 }
 0xc64   :  { %v12559_v19 = vmul.f32 %v12478_v42, %v7901_v3  ;;  %v12562_v62 = vrot.slane %v7614_v13, %v11133_v16  ;;  %v7921_v15 = vrot.slane %v7874_v24, %v11133_v16  ;;  %v7909_v36 = vrot.slane %v7828_v5, %v11133_v16  ;;  %v12586_v24 = vpop.permute.xlu0 %8008 }
 0xc65   :  { %v12567_v21 = vmul.f32 %v12478_v42, %v7905_v47  ;;  %v12570_v9 = vrot.slane %v7662_v1, %v11133_v16  ;;  %v12573_v54 = vrot.slane %v7664_v56, %v11133_v16  ;;  %v12577_v63 = vrot.slane %v12464_v30, %v11133_v16 }
 0xc66   :  { %v12580_v48 = vrot.slane %v7616_v50, %v11133_v16  ;;  %v7925_v33 = vrot.slane %v7876_v28, %v11133_v16  ;;  %v7929_v3 = vrot.slane %v7859_v43, %v11133_v16  ;;  %v7665_v13 = vcombine.high %v12494_v44, %v12494_v44 }
 0xc67   :  { %13322 = vst [vmem:[#allocation66_spill] sm:$0xff] %v12573_v54  ;;  %13323 = vst [vmem:[#allocation68_spill] sm:$0xff] %v12577_v63  ;;  %v12589_v56 = vmul.f32 %v12478_v42, %v7917_v46  ;;  %v7933_v5 = vrot.slane %v7873_v34, %v11133_v16  ;;  %v7937_v47 = vrot.slane %v7875_v31, %v11133_v16  ;;  %v8119_v31 = vpop.permute.xlu1 %8118 }
 0xc68   :  { %v7877_v61 = vcombine.high %v7873_v34, %v7873_v34  ;;  %v12596_v43 = vmul.f32 %v12478_v42, %v7921_v15  ;;  %v12599_v41 = vmul.f32 %v12478_v42, %v7909_v36  ;;  %v12605_v27 = vrot.slane %v12494_v44, %v11133_v16 }
 0xc69   :  { %v12617_v36 = vmul.f32 %v12478_v42, %v7929_v3 }
 0xc6a   :  { %13325 = vst [vmem:[#allocation70_spill] sm:$0xff] %v12605_v27  ;;  %v12623_v27 = vmul.f32 %v12478_v42, %v7933_v5 }
 0xc6b   :  { %13329 = vst [vmem:[#allocation72_spill] sm:$0xff] %v12617_v36 }
 0xc6c   :  { %13331 = vst [vmem:[#allocation62_spill] sm:$0xff] %v12623_v27  ;;  %v13335_v27 = vld [vmem:[#allocation25_spill] sm:$0xff] }
 0xcfe   :  { %v10545_v1 = vpop.f32.mrb[96].mxu1 }
 0xcff   :  { %v7268_v50 = vadd.f32 %v10545_v1, %v11452_v59  ;;  %v7478_v28 = vmul.f32 %v10545_v1, %v12406_v2  ;;  %v6043_v38 = vpop.f32.mrb[97].mxu1  ;;  %v13326_v59 = vcombine.high %v12464_v30, %v12464_v30  ;;  %v12614_v1 = vmul.f32 %v12478_v42, %v7925_v33 }
 0xd00   :  { %v7267_v26 = vadd.f32 %v6043_v38, %v13324_v17  ;;  %v7477_v46 = vmul.f32 %v12406_v2, %v6043_v38  ;;  %v12620_v17 = vrot.slane %v7665_v13, %v11133_v16  ;;  %v12626_v30 = vmul.f32 %v12478_v42, %v7937_v47 }
 0xd01   :  { %v12611_v34 = vrot.slane %v13326_v59, %v11133_v16  ;;  %v7510_v15 = vadd.f32 %v7478_v28, %v7268_v50  ;;  %13328 = vst [vmem:[#allocation71_spill] sm:$0xff] %v12614_v1  ;;  %v7941_v50 = vrot.slane %v7877_v61, %v11133_v16  ;;  %v13333_v28 = vld [vmem:[#allocation24_spill] sm:$0xff] }
 0xd02   :  { %13330 = vst [vmem:[#allocation61_spill] sm:$0xff] %v12620_v17  ;;  %v7509_v2 = vadd.f32 %v7477_v46, %v7267_v26  ;;  %v10550_v44 = vpop.f32.mrb[98].mxu1  ;;  %v10555_v38 = vpop.f32.mrb[100].mxu0  ;;  %13332 = vst [vmem:[#allocation73_spill] sm:$0xff] %v12626_v30 }
 0xd03   :  { %13327 = vst [vmem:[#allocation69_spill] sm:$0xff] %v12611_v34  ;;  %v7762_v33 = vmul.f32 %v12504_v10, %v7510_v15  ;;  %v7270_v59 = vadd.f32 %v10550_v44, %v13333_v28  ;;  %v7480_v3 = vmul.f32 %v10550_v44, %v12409_v52  ;;  %v13334_v34 = vld [vmem:[#allocation26_spill] sm:$0xff]  ;;  %v6124_v17 = vpop.f32.mrb[99].mxu1  ;;  %v6205_v26 = vpop.f32.mrb[101].mxu0  ;;  %v7482_v5 = vmul.f32 %v10555_v38, %v12413_v40  ;;  %v13336_v15 = vld [vmem:[#allocation27_spill] sm:$0xff] }
 0xd04   :  { %v7272_v13 = vadd.f32 %v10555_v38, %v13334_v34  ;;  %v8123_v46 = vpop.permute.xlu0 %8122  ;;  %v7746_v22 = vmul.f32 %v12504_v10, %v7509_v2  ;;  %v7269_v47 = vadd.f32 %v6124_v17, %v13335_v27  ;;  %v7479_v30 = vmul.f32 %v12409_v52, %v6124_v17  ;;  %v13338_v38 = vld [vmem:[#allocation28_spill] sm:$0xff] }
 0xd05   :  { %v7974_v16 = vadd.f32 %v12523_v39, %v7762_v33  ;;  %v7512_v61 = vadd.f32 %v7480_v3, %v7270_v59  ;;  %v7271_v28 = vadd.f32 %v6205_v26, %v13336_v15  ;;  %v7481_v44 = vmul.f32 %v12413_v40, %v6205_v26 }
 0xd06   :  { %v8052_v60 = vmul.f32 %v8002_v18, %v7746_v22  ;;  %v7514_v34 = vadd.f32 %v7482_v5, %v7272_v13  ;;  %v7511_v36 = vadd.f32 %v7479_v30, %v7269_v47  ;;  %v10560_v63 = vpop.f32.mrb[100].mxu1  ;;  %v12641_v1 = vmul.f32 %v12478_v42, %v7941_v50  ;;  %v8016_v50 = vpop.permute.xlu1 %8015 }
 0xd07   :  { %v8148_v10 = vmul.f32 %v8119_v31, %v7974_v16  ;;  %v7763_v2 = vmul.f32 %v12510_v23, %v7512_v61  ;;  %v7513_v27 = vadd.f32 %v7481_v44, %v7271_v28  ;;  %v7274_v52 = vadd.f32 %v10560_v63, %v13338_v38  ;;  %v10565_v17 = vpop.f32.mrb[102].mxu0  ;;  %v12645_v39 = vpop.f32.mrb[101].mxu1  ;;  %v13339_v61 = vld [vmem:[#allocation30_spill] sm:$0xff] }
 0xd08   :  { %13337 = vst [vmem:[#allocation74_spill] sm:$0xff] %v12641_v1  ;;  %v8060_v33 = vsel %vm1636_vm4, %v8052_v60, 0.0  ;;  %v7764_v40 = vmul.f32 %v12513_v0, %v7514_v34  ;;  %v7747_v22 = vmul.f32 %v12510_v23, %v7511_v36  ;;  %v7484_v18 = vmul.f32 %v10560_v63, %v12418_v14  ;;  %v12651_v30 = vpop.f32.mrb[103].mxu0  ;;  %v8127_v26 = vpop.permute.xlu0 %8126 }
 0xd09   :  { %v8156_v42 = vsel %vm1636_vm4, %v8148_v10, 0.0  ;;  %v8061_v31 = vrot.slane %v8060_v33, 4  ;;  %v7975_v59 = vadd.f32 %v12531_v53, %v7763_v2  ;;  %v7748_v3 = vmul.f32 %v12513_v0, %v7513_v27 }
 0xd0a   :  { %v8157_v13 = vrot.slane %v8156_v42, 4  ;;  %v7976_v60 = vadd.f32 %v12537_v55, %v7764_v40  ;;  %v8053_v5 = vmul.f32 %v12586_v24, %v7747_v22  ;;  %v7516_v47 = vadd.f32 %v7484_v18, %v7274_v52  ;;  %v12658_v23 = vpop.f32.mrb[102].mxu1 }
 0xd0b   :  { %v8062_v63 = vadd.f32 %v8061_v31, %v8060_v33  ;;  %v8149_v36 = vmul.f32 %v8123_v46, %v7975_v59  ;;  %v8054_v16 = vmul.f32 %v8016_v50, %v7748_v3  ;;  %v7276_v15 = vadd.f32 %v10565_v17, %v13339_v61  ;;  %v12661_v28 = vpop.f32.mrb[104].mxu0  ;;  %v12663_v44 = vpop.f32.mrb[103].mxu1 }
 0xd0c   :  { %v8158_v53 = vadd.f32 %v8157_v13, %v8156_v42  ;;  %v8150_v0 = vmul.f32 %v8127_v26, %v7976_v60  ;;  %v8067_v34 = vsel %vm1636_vm4, %v8053_v5, 0.0  ;;  %v7765_v55 = vmul.f32 %v12516_v20, %v7516_v47  ;;  %v12667_v10 = vpop.f32.mrb[105].mxu0  ;;  %v8131_v5 = vpop.permute.xlu0 %8130 }
 0xd0d   :  { %v8063_v24 = vrot.slane %v8062_v63, 2  ;;  %v8163_v2 = vsel %vm1636_vm4, %v8149_v36, 0.0  ;;  %v8068_v27 = vrot.slane %v8067_v34, 4  ;;  %v8074_v46 = vsel %vm1636_vm4, %v8054_v16, 0.0 }
 0xd0e   :  { %v8159_v38 = vrot.slane %v8158_v53, 2  ;;  %v8164_v52 = vrot.slane %v8163_v2, 4  ;;  %v8170_v33 = vsel %vm1636_vm4, %v8150_v0, 0.0  ;;  %v8075_v40 = vrot.slane %v8074_v46, 4  ;;  %v12672_v22 = vpop.f32.mrb[104].mxu1 }
 0xd0f   :  { %v8064_v18 = vadd.f32 %v8063_v24, %v8062_v63  ;;  %v8171_v42 = vrot.slane %v8170_v33, 4  ;;  %v8069_v31 = vadd.f32 %v8068_v27, %v8067_v34  ;;  %v7977_v50 = vadd.f32 %v12540_v29, %v7765_v55  ;;  %v12675_v59 = vpop.f32.mrb[106].mxu0  ;;  %v12677_v3 = vpop.f32.mrb[105].mxu1 }
 0xd10   :  { %v8160_v13 = vadd.f32 %v8159_v38, %v8158_v53  ;;  %v8165_v26 = vadd.f32 %v8164_v52, %v8163_v2  ;;  %v8076_v60 = vadd.f32 %v8075_v40, %v8074_v46  ;;  %v7486_v47 = vmul.f32 %v10565_v17, %v12421_v6  ;;  %v12680_v36 = vpop.f32.mrb[107].mxu0  ;;  %v8023_v40 = vpop.permute.xlu1 %8022 }
 0xd11   :  { %v8065_v16 = vrot.slane %v8064_v18, 1  ;;  %v8172_v61 = vadd.f32 %v8171_v42, %v8170_v33  ;;  %v8070_v0 = vrot.slane %v8069_v31, 2  ;;  %v8151_v63 = vmul.f32 %v8131_v5, %v7977_v50 }
 0xd12   :  { %v8161_v24 = vrot.slane %v8160_v13, 1  ;;  %v8166_v34 = vrot.slane %v8165_v26, 2  ;;  %v8077_v27 = vrot.slane %v8076_v60, 2  ;;  %v7518_v29 = vadd.f32 %v7486_v47, %v7276_v15  ;;  %v12682_v55 = vpop.f32.mrb[106].mxu1  ;;  %v13340_v47 = vld [vmem:[#allocation29_spill] sm:$0xff] }
 0xd13   :  { %v8066_v1 = vadd.f32 %v8065_v16, %v8064_v18  ;;  %v8173_v54 = vrot.slane %v8172_v61, 2  ;;  %v8071_v53 = vadd.f32 %v8070_v0, %v8069_v31  ;;  %v8177_v2 = vsel %vm1636_vm4, %v8151_v63, 0.0  ;;  %v12685_v46 = vpop.f32.mrb[108].mxu0  ;;  %v12687_v17 = vpop.f32.mrb[107].mxu1 }
 0xd14   :  { %v8162_v38 = vadd.f32 %v8161_v24, %v8160_v13  ;;  %v8167_v52 = vadd.f32 %v8166_v34, %v8165_v26  ;;  %v8078_v33 = vadd.f32 %v8077_v27, %v8076_v60  ;;  %v8178_v42 = vrot.slane %v8177_v2, 4  ;;  %v12689_v50 = vpop.f32.mrb[109].mxu0  ;;  %v13341_v34 = vld [vmem:[#allocation31_spill] sm:$0xff] }
 0xd15   :  { %v8174_v5 = vadd.f32 %v8173_v54, %v8172_v61  ;;  %v8072_v15 = vrot.slane %v8071_v53, 1  ;;  %v7273_v18 = vadd.f32 %v12645_v39, %v13340_v47  ;;  %v7483_v31 = vmul.f32 %v12418_v14, %v12645_v39 }
 0xd16   :  { %v12695_v16 = vadd.f32 %v8162_v38, %v8066_v1  ;;  %v8168_v0 = vrot.slane %v8167_v52, 1  ;;  %v8079_v63 = vrot.slane %v8078_v33, 1  ;;  %v8179_v58 = vadd.f32 %v8178_v42, %v8177_v2  ;;  %v12697_v13 = vpop.f32.mrb[108].mxu1  ;;  %v13342_v42 = vld [vmem:[#allocation32_spill] sm:$0xff] }
 0xd17   :  { %v8175_v26 = vrot.slane %v8174_v5, 1  ;;  %v8073_v60 = vadd.f32 %v8072_v15, %v8071_v53  ;;  %v7515_v24 = vadd.f32 %v7483_v31, %v7273_v18  ;;  %v7275_v54 = vadd.f32 %v12651_v30, %v13341_v34  ;;  %v12701_v61 = vpop.f32.mrb[110].mxu0  ;;  %v12703_v27 = vpop.f32.mrb[109].mxu1 }
 0xd18   :  { %v8169_v47 = vadd.f32 %v8168_v0, %v8167_v52  ;;  %v8080_v57 = vadd.f32 %v8079_v63, %v8078_v33  ;;  %v8180_v14 = vrot.slane %v8179_v58, 2  ;;  %v7485_v1 = vmul.f32 %v12421_v6, %v12651_v30  ;;  %v12707_v39 = vpop.f32.mrb[111].mxu0  ;;  %v8030_v52 = vpop.permute.xlu1 %8029 }
 0xd19   :  { %v8176_v2 = vadd.f32 %v8175_v26, %v8174_v5  ;;  %v7749_v38 = vmul.f32 %v12516_v20, %v7515_v24  ;;  %v7766_v53 = vmul.f32 %v12526_v49, %v7518_v29  ;;  %v7278_v15 = vadd.f32 %v12658_v23, %v13342_v42  ;;  %v13343_v5 = vld [vmem:[#allocation34_spill] sm:$0xff]  ;;  %v8135_v24 = vpop.permute.xlu0 %8134 }
 0xd1a   :  { %v12713_v18 = vadd.f32 %v8169_v47, %v8073_v60  ;;  %v8181_v31 = vadd.f32 %v8180_v14, %v8179_v58  ;;  %v7517_v34 = vadd.f32 %v7485_v1, %v7275_v54  ;;  %v7488_v33 = vmul.f32 %v12658_v23, %v12431_v11  ;;  %v12717_v0 = vpop.f32.mrb[110].mxu1  ;;  %v13344_v47 = vld [vmem:[#allocation33_spill] sm:$0xff] }
 0xd1b   :  { %v12719_v6 = vadd.f32 %v8176_v2, %v8080_v57  ;;  %v8055_v30 = vmul.f32 %v8023_v40, %v7749_v38  ;;  %v7978_v20 = vadd.f32 %v12547_v35, %v7766_v53  ;;  %v7280_v29 = vadd.f32 %v12661_v28, %v13343_v5  ;;  %v12724_v63 = vpop.f32.mrb[112].mxu0  ;;  %v12726_v26 = vpop.f32.mrb[111].mxu1 }
 0xd1c   :  { %v8182_v58 = vrot.slane %v8181_v31, 1  ;;  %v7750_v60 = vmul.f32 %v12526_v49, %v7517_v34  ;;  %v7520_v54 = vadd.f32 %v7488_v33, %v7278_v15  ;;  %v7490_v23 = vmul.f32 %v12661_v28, %v12434_v8  ;;  %v12731_v57 = vpop.f32.mrb[113].mxu0  ;;  %v13345_v34 = vld [vmem:[#allocation35_spill] sm:$0xff] }
 0xd1d   :  { %v8081_v40 = vsel %vm1636_vm4, %v8055_v30, 0.0  ;;  %v8152_v35 = vmul.f32 %v8135_v24, %v7978_v20  ;;  %v7277_v14 = vadd.f32 %v12663_v44, %v13344_v47  ;;  %v7487_v1 = vmul.f32 %v12431_v11, %v12663_v44  ;;  %v13346_v24 = vld [vmem:[#allocation36_spill] sm:$0xff] }
 0xd1e   :  { %v12738_v2 = vadd.f32 %v8182_v58, %v8181_v31  ;;  %v8082_v38 = vrot.slane %v8081_v40, 4  ;;  %v8056_v49 = vmul.f32 %v8030_v52, %v7750_v60  ;;  %v7522_v53 = vadd.f32 %v7490_v23, %v7280_v29  ;;  %v12740_v42 = vpop.f32.mrb[112].mxu1 }
 0xd1f   :  { %v8184_v28 = vsel %vm1636_vm4, %v8152_v35, 0.0  ;;  %v7519_v15 = vadd.f32 %v7487_v1, %v7277_v14  ;;  %v7279_v33 = vadd.f32 %v12667_v10, %v13345_v34  ;;  %v7489_v30 = vmul.f32 %v12434_v8, %v12667_v10  ;;  %v12747_v20 = vpop.f32.mrb[113].mxu1  ;;  %v8037_v10 = vpop.permute.xlu1 %8036 }
 0xd20   :  { %v8083_v5 = vadd.f32 %v8082_v38, %v8081_v40  ;;  %v8088_v11 = vsel %vm1636_vm4, %v8056_v49, 0.0  ;;  %v8185_v44 = vrot.slane %v8184_v28, 4  ;;  %v7767_v31 = vmul.f32 %v12543_v32, %v7520_v54  ;;  %v12751_v52 = vpop.f32.mrb[114].mxu0  ;;  %v8139_v38 = vpop.permute.xlu0 %8138  ;;  %v13347_v49 = vld [vmem:[#allocation38_spill] sm:$0xff] }
 0xd21   :  { %v8089_v29 = vrot.slane %v8088_v11, 4  ;;  %v7521_v58 = vadd.f32 %v7489_v30, %v7279_v33  ;;  %v7751_v60 = vmul.f32 %v12543_v32, %v7519_v15  ;;  %v7282_v23 = vadd.f32 %v12672_v22, %v13346_v24  ;;  %v10627_v35 = vpop.f32.mrb[115].mxu0 }
 0xd22   :  { %v8084_v47 = vrot.slane %v8083_v5, 2  ;;  %v8186_v8 = vadd.f32 %v8185_v44, %v8184_v28  ;;  %v7979_v40 = vadd.f32 %v12559_v19, %v7767_v31  ;;  %v7492_v14 = vmul.f32 %v12672_v22, %v12443_v45  ;;  %v13348_v31 = vld [vmem:[#allocation37_spill] sm:$0xff] }
 0xd23   :  { %v8090_v1 = vadd.f32 %v8089_v29, %v8088_v11  ;;  %v8057_v54 = vmul.f32 %v8037_v10, %v7751_v60  ;;  %v7284_v34 = vadd.f32 %v12675_v59, %v13347_v49  ;;  %v7494_v32 = vmul.f32 %v12675_v59, %v12426_v7 }
 0xd24   :  { %v8085_v15 = vadd.f32 %v8084_v47, %v8083_v5  ;;  %v8187_v33 = vrot.slane %v8186_v8, 2  ;;  %v8153_v30 = vmul.f32 %v8139_v38, %v7979_v40  ;;  %v12763_v24 = vadd.f32 %v7492_v14, %v7282_v23  ;;  %v13349_v14 = vld [vmem:[#allocation39_spill] sm:$0xff] }
 0xd25   :  { %v8091_v28 = vrot.slane %v8090_v1, 2  ;;  %v8095_v19 = vsel %vm1636_vm4, %v8057_v54, 0.0  ;;  %v7526_v44 = vadd.f32 %v7494_v32, %v7284_v34  ;;  %v7281_v22 = vadd.f32 %v12677_v3, %v13348_v31 }
 0xd26   :  { %v8086_v11 = vrot.slane %v8085_v15, 1  ;;  %v8188_v29 = vadd.f32 %v8187_v33, %v8186_v8  ;;  %v8096_v60 = vrot.slane %v8095_v19, 4  ;;  %v8191_v35 = vsel %vm1636_vm4, %v8153_v30, 0.0 }
 0xd27   :  { %v8092_v10 = vadd.f32 %v8091_v28, %v8090_v1  ;;  %v8192_v49 = vrot.slane %v8191_v35, 4  ;;  %v7770_v59 = vmul.f32 %v12489_v51, %v7526_v44  ;;  %v7491_v5 = vmul.f32 %v12443_v45, %v12677_v3  ;;  %v8044_v1 = vpop.permute.xlu1 %8043 }
 0xd28   :  { %v12772_v23 = vadd.f32 %v8086_v11, %v8085_v15  ;;  %v8189_v47 = vrot.slane %v8188_v29, 1  ;;  %v8097_v40 = vadd.f32 %v8096_v60, %v8095_v19  ;;  %v7283_v54 = vadd.f32 %v12680_v36, %v13349_v14 }
 0xd29   :  { %v8093_v38 = vrot.slane %v8092_v10, 1  ;;  %v8193_v34 = vadd.f32 %v8192_v49, %v8191_v35  ;;  %v7982_v8 = vadd.f32 %v12554_v37, %v7770_v59  ;;  %v12777_v32 = vadd.f32 %v7491_v5, %v7281_v22  ;;  %v8143_v35 = vpop.permute.xlu0 %8142  ;;  %v13350_v37 = vld [vmem:[#allocation40_spill] sm:$0xff] }
 0xd2a   :  { %v8190_v33 = vadd.f32 %v8189_v47, %v8188_v29  ;;  %v8098_v30 = vrot.slane %v8097_v40, 2  ;;  %v7493_v28 = vmul.f32 %v12426_v7, %v12680_v36  ;;  %v7752_v45 = vmul.f32 %v12562_v62, %v7521_v58 }
 0xd2b   :  { %v8094_v3 = vadd.f32 %v8093_v38, %v8092_v10  ;;  %v8194_v15 = vrot.slane %v8193_v34, 2  ;;  %v8284_v19 = vmul.f32 %v7982_v8, %v7982_v8  ;;  %v7768_v44 = vmul.f32 %v12562_v62, %v7522_v53 }
 0xd2c   :  { %v8099_v31 = vadd.f32 %v8098_v30, %v8097_v40  ;;  %v7525_v11 = vadd.f32 %v7493_v28, %v7283_v54  ;;  %v8058_v60 = vmul.f32 %v8044_v1, %v7752_v45  ;;  %v7286_v22 = vadd.f32 %v12682_v55, %v13350_v37 }
 0xd2d   :  { %v12785_v49 = vadd.f32 %v8190_v33, %v8094_v3  ;;  %v8195_v29 = vadd.f32 %v8194_v15, %v8193_v34  ;;  %v8292_v59 = vsel %vm1636_vm4, %v8284_v19, 0.0  ;;  %v7980_v7 = vadd.f32 %v12567_v21, %v7768_v44  ;;  %v13351_v34 = vld [vmem:[#allocation42_spill] sm:$0xff] }
 0xd2e   :  { %v8100_v36 = vrot.slane %v8099_v31, 1  ;;  %v8293_v58 = vrot.slane %v8292_v59, 4  ;;  %v7754_v10 = vmul.f32 %v12489_v51, %v7525_v11  ;;  %v8102_v62 = vsel %vm1636_vm4, %v8058_v60, 0.0 }
 0xd2f   :  { %v8196_v53 = vrot.slane %v8195_v29, 1  ;;  %v8103_v5 = vrot.slane %v8102_v62, 4  ;;  %v8154_v47 = vmul.f32 %v8143_v35, %v7980_v7  ;;  %v7496_v40 = vmul.f32 %v12682_v55, %v12446_v12  ;;  %v13352_v35 = vld [vmem:[#allocation41_spill] sm:$0xff] }
 0xd30   :  { %v8101_v14 = vadd.f32 %v8100_v36, %v8099_v31  ;;  %v8294_v54 = vadd.f32 %v8293_v58, %v8292_v59  ;;  %v8220_v38 = vmul.f32 %v7754_v10, %v7754_v10  ;;  %v7288_v8 = vadd.f32 %v12685_v46, %v13351_v34  ;;  %v13353_v10 = vld [vmem:[#allocation43_spill] sm:$0xff] }
 0xd31   :  { %v8197_v1 = vadd.f32 %v8196_v53, %v8195_v29  ;;  %v8104_v21 = vadd.f32 %v8103_v5, %v8102_v62  ;;  %v8198_v33 = vsel %vm1636_vm4, %v8154_v47, 0.0  ;;  %v7528_v30 = vadd.f32 %v7496_v40, %v7286_v22 }
 0xd32   :  { %v8295_v51 = vrot.slane %v8294_v54, 2  ;;  %v8228_v28 = vsel %vm1636_vm4, %v8220_v38, 0.0  ;;  %v8199_v45 = vrot.slane %v8198_v33, 4  ;;  %v7498_v3 = vmul.f32 %v12685_v46, %v12437_v4 }
 0xd33   :  { %v12799_v15 = vadd.f32 %v8197_v1, %v8101_v14  ;;  %v8229_v55 = vrot.slane %v8228_v28, 4  ;;  %v8105_v19 = vrot.slane %v8104_v21, 2  ;;  %v7771_v44 = vmul.f32 %v12551_v25, %v7528_v30 }
 0xd34   :  { %v8296_v31 = vadd.f32 %v8295_v51, %v8294_v54  ;;  %v8200_v11 = vadd.f32 %v8199_v45, %v8198_v33  ;;  %v7530_v60 = vadd.f32 %v7498_v3, %v7288_v8  ;;  %v7285_v37 = vadd.f32 %v12687_v17, %v13352_v35  ;;  %v8051_v51 = vpop.permute.xlu1 %8050 }
 0xd35   :  { %v8230_v22 = vadd.f32 %v8229_v55, %v8228_v28  ;;  %v8106_v29 = vadd.f32 %v8105_v19, %v8104_v21  ;;  %v7983_v59 = vadd.f32 %v12589_v56, %v7771_v44  ;;  %v7495_v7 = vmul.f32 %v12446_v12, %v12687_v17 }
 0xd36   :  { %v8297_v46 = vrot.slane %v8296_v31, 1  ;;  %v8201_v36 = vrot.slane %v8200_v11, 2  ;;  %v7772_v58 = vmul.f32 %v12570_v9, %v7530_v60  ;;  %v7287_v62 = vadd.f32 %v12689_v50, %v13353_v10 }
 0xd37   :  { %v8231_v53 = vrot.slane %v8230_v22, 2  ;;  %v8107_v5 = vrot.slane %v8106_v29, 1  ;;  %v8285_v47 = vmul.f32 %v7983_v59, %v7983_v59  ;;  %v7527_v40 = vadd.f32 %v7495_v7, %v7285_v37  ;;  %v13354_v59 = vld [vmem:[#allocation44_spill] sm:$0xff] }
 0xd38   :  { %v8298_v14 = vadd.f32 %v8297_v46, %v8296_v31  ;;  %v8202_v54 = vadd.f32 %v8201_v36, %v8200_v11  ;;  %v7984_v38 = vadd.f32 %v12596_v43, %v7772_v58  ;;  %v7497_v56 = vmul.f32 %v12437_v4, %v12689_v50 }
 0xd39   :  { %v8232_v34 = vadd.f32 %v8231_v53, %v8230_v22  ;;  %v12813_v12 = vadd.f32 %v8107_v5, %v8106_v29  ;;  %v8299_v17 = vsel %vm1636_vm4, %v8285_v47, 0.0  ;;  %v7755_v8 = vmul.f32 %v12551_v25, %v7527_v40  ;;  %v8147_v22 = vpop.permute.xlu0 %8146  ;;  %v13355_v40 = vld [vmem:[#allocation60_spill] sm:$0xff] }
 0xd3a   :  { %v8203_v1 = vrot.slane %v8202_v54, 1  ;;  %v8300_v21 = vrot.slane %v8299_v17, 4  ;;  %v8286_v33 = vmul.f32 %v7984_v38, %v7984_v38  ;;  %v7529_v30 = vadd.f32 %v7497_v56, %v7287_v62 }
 0xd3b   :  { %v8233_v28 = vrot.slane %v8232_v34, 1  ;;  %v8221_v45 = vmul.f32 %v7755_v8, %v7755_v8  ;;  %v7753_v43 = vmul.f32 %v12580_v48, %v12777_v32  ;;  %v7769_v4 = vmul.f32 %v12580_v48, %v12763_v24 }
 0xd3c   :  { %v12821_v50 = vadd.f32 %v8203_v1, %v8202_v54  ;;  %v8301_v3 = vadd.f32 %v8300_v21, %v8299_v17  ;;  %v8306_v55 = vsel %vm1636_vm4, %v8286_v33, 0.0  ;;  %v7756_v25 = vmul.f32 %v12570_v9, %v7529_v30 }
 0xd3d   :  { %v8234_v19 = vadd.f32 %v8233_v28, %v8232_v34  ;;  %v8307_v44 = vrot.slane %v8306_v55, 4  ;;  %v8235_v31 = vsel %vm1636_vm4, %v8221_v45, 0.0  ;;  %v8059_v11 = vmul.f32 %v8051_v51, %v7753_v43  ;;  %v13356_v34 = vld [vmem:[#allocation46_spill] sm:$0xff]  ;;  %v13357_v45 = vld [vmem:[#allocation63_spill] sm:$0xff] }
 0xd3e   :  { %v8302_v60 = vrot.slane %v8301_v3, 2  ;;  %v8236_v35 = vrot.slane %v8235_v31, 4  ;;  %v8222_v37 = vmul.f32 %v7756_v25, %v7756_v25  ;;  %v7981_v32 = vadd.f32 %v12599_v41, %v7769_v4 }
 0xd3f   :  { %v12827_v29 = vadd.f32 %v8298_v14, %v8234_v19  ;;  %v8308_v48 = vadd.f32 %v8307_v44, %v8306_v55  ;;  %v8109_v24 = vsel %vm1636_vm4, %v8059_v11, 0.0  ;;  %v7290_v7 = vadd.f32 %v12697_v13, %v13354_v59  ;;  %v13358_v55 = vld [vmem:[#allocation45_spill] sm:$0xff]  ;;  %v13361_v59 = vld [vmem:[#allocation68_spill] sm:$0xff] }
 0xd40   :  { %v8303_v9 = vadd.f32 %v8302_v60, %v8301_v3  ;;  %v8237_v46 = vadd.f32 %v8236_v35, %v8235_v31  ;;  %v8242_v36 = vsel %vm1636_vm4, %v8222_v37, 0.0  ;;  %v8110_v58 = vrot.slane %v8109_v24, 4  ;;  %v13359_v31 = vld [vmem:[#allocation66_spill] sm:$0xff] }
 0xd41   :  { %10983 = vrsqrt.f32 %v12827_v29  ;;  %v8309_v10 = vrot.slane %v8308_v48, 2  ;;  %v8243_v62 = vrot.slane %v8242_v36, 4  ;;  %v8155_v53 = vmul.f32 %v8147_v22, %v7981_v32 }
 0xd42   :  { %v8304_v5 = vrot.slane %v8303_v9, 1  ;;  %v8238_v41 = vrot.slane %v8237_v46, 2  ;;  %v8111_v47 = vadd.f32 %v8110_v58, %v8109_v24  ;;  %v7500_v14 = vmul.f32 %v12697_v13, %v13355_v40  ;;  %v13360_v24 = vld [vmem:[#allocation71_spill] sm:$0xff] }
 0xd43   :  { %v8310_v54 = vadd.f32 %v8309_v10, %v8308_v48  ;;  %v8244_v38 = vadd.f32 %v8243_v62, %v8242_v36  ;;  %v8205_v56 = vsel %vm1636_vm4, %v8155_v53, 0.0  ;;  %v7292_v17 = vadd.f32 %v12701_v61, %v13356_v34 }
 0xd44   :  { %v8305_v8 = vadd.f32 %v8304_v5, %v8303_v9  ;;  %v8239_v1 = vadd.f32 %v8238_v41, %v8237_v46  ;;  %v8112_v21 = vrot.slane %v8111_v47, 2  ;;  %v8206_v33 = vrot.slane %v8205_v56, 4  ;;  %v13362_v9 = vld [vmem:[#allocation47_spill] sm:$0xff] }
 0xd45   :  { %v8311_v30 = vrot.slane %v8310_v54, 1  ;;  %v8245_v51 = vrot.slane %v8244_v38, 2  ;;  %v7532_v28 = vadd.f32 %v7500_v14, %v7290_v7  ;;  %v7502_v43 = vmul.f32 %v12701_v61, %v13357_v45 }
 0xd46   :  { %v8240_v4 = vrot.slane %v8239_v1, 1  ;;  %v8113_v3 = vadd.f32 %v8112_v21, %v8111_v47  ;;  %v8207_v13 = vadd.f32 %v8206_v33, %v8205_v56  ;;  %v7289_v25 = vadd.f32 %v12703_v27, %v13358_v55  ;;  %v13363_v47 = vld [vmem:[#allocation72_spill] sm:$0xff] }
 0xd47   :  { %v8312_v19 = vadd.f32 %v8311_v30, %v8310_v54  ;;  %v8246_v44 = vadd.f32 %v8245_v51, %v8244_v38  ;;  %v7773_v11 = vmul.f32 %v13359_v31, %v7532_v28  ;;  %v7534_v60 = vadd.f32 %v7502_v43, %v7292_v17  ;;  %v13364_v38 = vld [vmem:[#allocation48_spill] sm:$0xff]  ;;  %v13366_v43 = vld [vmem:[#allocation50_spill] sm:$0xff] }
 0xd48   :  { %v8241_v35 = vadd.f32 %v8240_v4, %v8239_v1  ;;  %v8114_v37 = vrot.slane %v8113_v3, 1  ;;  %v8208_v22 = vrot.slane %v8207_v13, 2  ;;  %v7499_v32 = vmul.f32 %v13355_v40, %v12703_v27  ;;  %v13365_v51 = vld [vmem:[#allocation64_spill] sm:$0xff] }
 0xd49   :  { %v8247_v48 = vrot.slane %v8246_v44, 1  ;;  %v7985_v61 = vadd.f32 %v13360_v24, %v7773_v11  ;;  %v7774_v7 = vmul.f32 %v13361_v59, %v7534_v60  ;;  %v7291_v46 = vadd.f32 %v12707_v39, %v13362_v9  ;;  %v13371_v9 = vld [vmem:[#allocation51_spill] sm:$0xff] }
 0xd4a   :  { %v12850_v36 = vadd.f32 %v8305_v8, %v8241_v35  ;;  %v12852_v58 = vadd.f32 %v8114_v37, %v8113_v3  ;;  %v8209_v10 = vadd.f32 %v8208_v22, %v8207_v13  ;;  %v7531_v62 = vadd.f32 %v7499_v32, %v7289_v25  ;;  %v13367_v3 = vld [vmem:[#allocation65_spill] sm:$0xff]  ;;  %v13369_v32 = vld [vmem:[#allocation70_spill] sm:$0xff] }
 0xd4b   :  { %v12854_v53 = vpop.eup %10983  ;;  %v8248_v5 = vadd.f32 %v8247_v48, %v8246_v44  ;;  %v8287_v41 = vmul.f32 %v7985_v61, %v7985_v61  ;;  %v7986_v27 = vadd.f32 %v13363_v47, %v7774_v7  ;;  %v7501_v40 = vmul.f32 %v13357_v45, %v12707_v39  ;;  %v13368_v35 = vld [vmem:[#allocation49_spill] sm:$0xff] }
 0xd4c   :  { %10985 = vrsqrt.f32 %v12850_v36  ;;  %v8210_v14 = vrot.slane %v8209_v10, 1  ;;  %v7757_v54 = vmul.f32 %v13359_v31, %v7531_v62  ;;  %v7294_v56 = vadd.f32 %v12717_v0, %v13364_v38 }
 0xd4d   :  { %v12863_v34 = vadd.f32 %v8312_v19, %v8248_v5  ;;  %v8313_v17 = vsel %vm1636_vm4, %v8287_v41, 0.0  ;;  %v8288_v8 = vmul.f32 %v7986_v27, %v7986_v27  ;;  %v7533_v1 = vadd.f32 %v7501_v40, %v7291_v46  ;;  %v13372_v41 = vld [vmem:[#allocation62_spill] sm:$0xff]  ;;  %v13373_v40 = vld [vmem:[#allocation73_spill] sm:$0xff] }
 0xd4e   :  { %v12866_v21 = vadd.f32 %v8210_v14, %v8209_v10  ;;  %v8314_v33 = vrot.slane %v8313_v17, 4  ;;  %v8223_v30 = vmul.f32 %v7757_v54, %v7757_v54  ;;  %v7504_v39 = vmul.f32 %v12717_v0, %v13365_v51 }
 0xd4f   :  { %v8320_v28 = vsel %vm1636_vm4, %v8288_v8, 0.0  ;;  %v7758_v45 = vmul.f32 %v13361_v59, %v7533_v1  ;;  %v7296_v4 = vadd.f32 %v12724_v63, %v13366_v43  ;;  %v7506_v13 = vmul.f32 %v12724_v63, %v13367_v3  ;;  %v13370_v59 = vld [vmem:[#allocation69_spill] sm:$0xff] }
 0xd50   :  { %v8315_v55 = vadd.f32 %v8314_v33, %v8313_v17  ;;  %v8321_v25 = vrot.slane %v8320_v28, 4  ;;  %v8249_v19 = vsel %vm1636_vm4, %v8223_v30, 0.0  ;;  %v7536_v44 = vadd.f32 %v7504_v39, %v7294_v56 }
 0xd51   :  { %v8250_v31 = vrot.slane %v8249_v19, 4  ;;  %v8224_v11 = vmul.f32 %v7758_v45, %v7758_v45  ;;  %v7538_v60 = vadd.f32 %v7506_v13, %v7296_v4  ;;  %v7293_v0 = vadd.f32 %v12726_v26, %v13368_v35 }
 0xd52   :  { %v8316_v37 = vrot.slane %v8315_v55, 2  ;;  %v8322_v22 = vadd.f32 %v8321_v25, %v8320_v28  ;;  %v7775_v48 = vmul.f32 %v13369_v32, %v7536_v44  ;;  %v7503_v24 = vmul.f32 %v13365_v51, %v12726_v26 }
 0xd53   :  { %v8251_v61 = vadd.f32 %v8250_v31, %v8249_v19  ;;  %v8256_v63 = vsel %vm1636_vm4, %v8224_v11, 0.0  ;;  %v7776_v7 = vmul.f32 %v13370_v59, %v7538_v60  ;;  %v7295_v46 = vadd.f32 %v12731_v57, %v13371_v9  ;;  %v13376_v9 = vld [vmem:[#allocation11_spill] sm:$0xff] }
 0xd54   :  { %v8317_v10 = vadd.f32 %v8316_v37, %v8315_v55  ;;  %v8323_v62 = vrot.slane %v8322_v22, 2  ;;  %v8257_v5 = vrot.slane %v8256_v63, 4  ;;  %v7987_v47 = vadd.f32 %v13372_v41, %v7775_v48 }
 0xd55   :  { %v8252_v27 = vrot.slane %v8251_v61, 2  ;;  %v7988_v14 = vadd.f32 %v13373_v40, %v7776_v7  ;;  %v7535_v54 = vadd.f32 %v7503_v24, %v7293_v0  ;;  %v7505_v26 = vmul.f32 %v13367_v3, %v12731_v57  ;;  %v13374_v0 = vld [vmem:[#allocation52_spill] sm:$0xff]  ;;  %v13375_v7 = vld [vmem:[#allocation67_spill] sm:$0xff] }
 0xd56   :  { %v12890_v38 = vpop.eup %10985  ;;  %v8318_v56 = vrot.slane %v8317_v10, 1  ;;  %v8324_v17 = vadd.f32 %v8323_v62, %v8322_v22  ;;  %v8258_v8 = vadd.f32 %v8257_v5, %v8256_v63  ;;  %v8289_v1 = vmul.f32 %v7987_v47, %v7987_v47 }
 0xd57   :  { %v8253_v33 = vadd.f32 %v8252_v27, %v8251_v61  ;;  %v8290_v30 = vmul.f32 %v7988_v14, %v7988_v14  ;;  %v7759_v51 = vmul.f32 %v13369_v32, %v7535_v54  ;;  %v7537_v39 = vadd.f32 %v7505_v26, %v7295_v46  ;;  %v13377_v14 = vld [vmem:[#allocation53_spill] sm:$0xff] }
 0xd58   :  { %v8319_v28 = vadd.f32 %v8318_v56, %v8317_v10  ;;  %v8325_v45 = vrot.slane %v8324_v17, 1  ;;  %v8259_v43 = vrot.slane %v8258_v8, 2  ;;  %v8327_v4 = vsel %vm1636_vm4, %v8289_v1, 0.0 }
 0xd59   :  { %v8254_v13 = vrot.slane %v8253_v33, 1  ;;  %v8328_v55 = vrot.slane %v8327_v4, 4  ;;  %v8334_v57 = vsel %vm1636_vm4, %v8290_v30, 0.0  ;;  %v8225_v3 = vmul.f32 %v7759_v51, %v7759_v51  ;;  %v13380_v30 = vld [vmem:[#allocation61_spill] sm:$0xff] }
 0xd5a   :  { %v8326_v25 = vadd.f32 %v8325_v45, %v8324_v17  ;;  %v8260_v19 = vadd.f32 %v8259_v43, %v8258_v8  ;;  %v8335_v44 = vrot.slane %v8334_v57, 4  ;;  %v7760_v31 = vmul.f32 %v13370_v59, %v7537_v39  ;;  %v13378_v17 = vld [vmem:[#allocation13_spill] sm:$0xff] }
 0xd5b   :  { %v8255_v11 = vadd.f32 %v8254_v13, %v8253_v33  ;;  %v8329_v60 = vadd.f32 %v8328_v55, %v8327_v4  ;;  %v8263_v35 = vsel %vm1636_vm4, %v8225_v3, 0.0  ;;  %v7298_v37 = vadd.f32 %v12740_v42, %v13374_v0  ;;  %v13382_v55 = vld [vmem:[#allocation74_spill] sm:$0xff] }
 0xd5c   :  { %v8261_v22 = vrot.slane %v8260_v19, 1  ;;  %v8336_v32 = vadd.f32 %v8335_v44, %v8334_v57  ;;  %v8264_v48 = vrot.slane %v8263_v35, 4  ;;  %v8226_v24 = vmul.f32 %v7760_v31, %v7760_v31 }
 0xd5d   :  { %v12899_v61 = vadd.f32 %v8319_v28, %v8255_v11  ;;  %v8330_v63 = vrot.slane %v8329_v60, 2  ;;  %v7508_v59 = vmul.f32 %v12740_v42, %v13375_v7  ;;  %v8482_v46 = vadd.f32 %v12751_v52, %v13376_v9 }
 0xd5e   :  { %v8262_v10 = vadd.f32 %v8261_v22, %v8260_v19  ;;  %v8337_v62 = vrot.slane %v8336_v32, 2  ;;  %v8265_v5 = vadd.f32 %v8264_v48, %v8263_v35  ;;  %v8270_v41 = vsel %vm1636_vm4, %v8226_v24, 0.0 }
 0xd5f   :  { %v8331_v47 = vadd.f32 %v8330_v63, %v8329_v60  ;;  %v8271_v27 = vrot.slane %v8270_v41, 4  ;;  %v7540_v40 = vadd.f32 %v7508_v59, %v7298_v37  ;;  %v7297_v54 = vadd.f32 %v12747_v20, %v13377_v14  ;;  %10637 = vmatmul.mubr.msk.f32.vlgmr.msra.gmra.mrb[114].mxu1 %vm148_vm1, %v8482_v46 }
 0xd60   :  { %v12909_v26 = vadd.f32 %v8326_v25, %v8262_v10  ;;  %v8338_v56 = vadd.f32 %v8337_v62, %v8336_v32  ;;  %v8266_v42 = vrot.slane %v8265_v5, 2  ;;  %v7507_v52 = vmul.f32 %v13375_v7, %v12747_v20  ;;  %10926 = vmatpush3.bf16.msra.mxu1 %v13378_v17 }
 0xd61   :  { %v13379_v8 = vmov 0.0   ;;  %v8332_v1 = vrot.slane %v8331_v47, 1  ;;  %v8272_v33 = vadd.f32 %v8271_v27, %v8270_v41  ;;  %v7777_v51 = vmul.f32 %v13380_v30, %v7540_v40 }
 0xd62   :  { %10658 = vmatprep.mubr.msk.f32.mxu1 %vm11035_vm2, %v13379_v8  ;;  %v8215_v39 = vadd.f32 %v12738_v2, %v12772_v23  ;;  %v13381_v28 = vmov 0.0|0.0   ;;  %v8267_v45 = vadd.f32 %v8266_v42, %v8265_v5  ;;  %v7539_v43 = vadd.f32 %v7507_v52, %v7297_v54  ;;  %v13383_v23 = vld [vmem:[#allocation15_spill] sm:$0xff] }
 0xd63   :  { %10927 = vmatprep.subr.bf16.mxu1 %v13381_v28  ;;  %v8218_v4 = vadd.f32 %v12821_v50, %v12813_v12  ;;  %v8339_v20 = vrot.slane %v8338_v56, 1  ;;  %v8273_v13 = vrot.slane %v8272_v33, 2  ;;  %v7989_v57 = vadd.f32 %v13382_v55, %v7777_v51 }
 0xd64   :  { %v8219_v3 = vadd.f32 %v12866_v21, %v12852_v58  ;;  %v8333_v25 = vadd.f32 %v8332_v1, %v8331_v47  ;;  %v8268_v19 = vrot.slane %v8267_v45, 1  ;;  %v7761_v44 = vmul.f32 %v13380_v30, %v7539_v43  ;;  %10929 = vmatpush3.bf16.msra.mxu1 %v13383_v23 }
 0xd65   :  { %v9321_v2 = vsel %vm9320_vm3, %v12713_v18, %v12695_v16  ;;  %v8274_v31 = vadd.f32 %v8273_v13, %v8272_v33  ;;  %v8291_v12 = vmul.f32 %v7989_v57, %v7989_v57  ;;  %10936 = vmatprep.subr.bf16.mxu1 %v13381_v28  ;;  %v8340_v60 = vadd.f32 %v8339_v20, %v8338_v56  ;;  %v9308_v56 = vpop.permute.xlu1 %9307 }
 0xd66   :  { %v9323_v50 = vsel %vm9322_vm5, %v12719_v6, %v9321_v2  ;;  %v8269_v11 = vadd.f32 %v8268_v19, %v8267_v45  ;;  %v8227_v58 = vmul.f32 %v7761_v44, %v7761_v44  ;;  %v8364_v59 = vmul.f32 %v12890_v38, %v12850_v36  ;;  %9311 = vst.msk [vmem:[#allocation2] sm:$0xff] %vm9310_vm15, %v9308_v56  ;;  %v13390_v56 = vld [vmem:[#allocation20_spill] sm:$0xff] }
 0xd67   :  { %v9325_v21 = vsel %vm9324_vm6, %v8215_v39, %v9323_v50  ;;  %v8275_v35 = vrot.slane %v8274_v31, 1  ;;  %v8341_v0 = vsel %vm1636_vm4, %v8291_v12, 0.0  ;;  %v8357_v10 = vmul.f32 %v12854_v53, %v12827_v29 }
 0xd68   :  { %v9327_v16 = vsel %vm9326_vm7, %v12785_v49, %v9325_v21  ;;  %v12937_v18 = vadd.f32 %v8333_v25, %v8269_v11  ;;  %v8342_v37 = vrot.slane %v8341_v0, 4  ;;  %v8277_v6 = vsel %vm1636_vm4, %v8227_v58, 0.0 }
 0xd69   :  { %v9329_v22 = vsel %vm9328_vm8, %v12799_v15, %v9327_v16  ;;  %v8276_v32 = vadd.f32 %v8275_v35, %v8274_v31  ;;  %v8278_v48 = vrot.slane %v8277_v6, 4  ;;  %vm8365_vm11 = vcmp.eq.f32.partialorder %v12850_v36, inf }
 0xd6a   :  { %v9331_v24 = vsel %vm9330_vm9, %v8218_v4, %v9329_v22  ;;  %v8343_v63 = vadd.f32 %v8342_v37, %v8341_v0  ;;  %10987 = vrsqrt.f32 %v12863_v34  ;;  %v8366_v5 = vsel %vm8365_vm11, %v12850_v36, %v8364_v59 }
 0xd6b   :  { %v9333_v7 = vsel %vm9332_vm10, %v8219_v3, %v9331_v24  ;;  %v12946_v9 = vadd.f32 %v8340_v60, %v8276_v32  ;;  %v8279_v49 = vadd.f32 %v8278_v48, %v8277_v6  ;;  %10989 = vrsqrt.f32 %v12899_v61 }
 0xd6c   :  { %9334 = vrot.lane.b32.xlu0 %v9333_v7, %s11037_s21  ;;  %v8344_v46 = vrot.slane %v8343_v63, 2  ;;  %vm8358_vm12 = vcmp.eq.f32.partialorder %v12827_v29, inf  ;;  %v8368_v41 = vand.u32 2147483648, %v12850_v36  ;;  %vm8367_vm13 = vcmp.eq.f32.partialorder %v12850_v36, 0.0  ;;  %v13384_v7 = vld [vmem:[#allocation14_spill] sm:$0xff] }
 0xd6d   :  { %v8280_v15 = vrot.slane %v8279_v49, 2  ;;  %v8359_v27 = vsel %vm8358_vm12, %v12827_v29, %v8357_v10  ;;  %10991 = vrsqrt.f32 %v12909_v26  ;;  %v8361_v40 = vand.u32 2147483648, %v12827_v29 }
 0xd6e   :  { %v8345_v62 = vadd.f32 %v8344_v46, %v8343_v63  ;;  %v8369_v14 = vsel %vm8367_vm13, %v8368_v41, %v8366_v5  ;;  %10993 = vrsqrt.f32 %v12937_v18  ;;  %vm8360_vm14 = vcmp.eq.f32.partialorder %v12827_v29, 0.0  ;;  %v11005_v46 = vld [vmem:[%s13083_s3 + $0x60] sm:$0xff]  ;;  %v13386_v41 = vld [vmem:[#allocation21_spill] sm:$0xff]  ;;  %s11040_s3 = smov 48  }
 0xd6f   :  { %v8281_v38 = vadd.f32 %v8280_v15, %v8279_v49  ;;  %10995 = vrsqrt.f32 %v12946_v9  ;;  %v8362_v52 = vsel %vm8360_vm14, %v8361_v40, %v8359_v27  ;;  %vm8372_vm0 = vcmp.eq.f32.partialorder %v12863_v34, inf  ;;  %v13385_v15 = vld [vmem:[#allocation16_spill] sm:$0xff] }
 0xd70   :  { %v8346_v47 = vrot.slane %v8345_v62, 1  ;;  %v9349_v17 = vsel %vm9320_vm3, %v8369_v14, %v8362_v52  ;;  %vm8374_vm11 = vcmp.eq.f32.partialorder %v12863_v34, 0.0  ;;  %v8375_v29 = vand.u32 2147483648, %v12863_v34  ;;  %v13391_v52 = vld [vmem:[#allocation22_spill] sm:$0xff] }
 0xd71   :  { %v8282_v53 = vrot.slane %v8281_v38, 1  ;;  %vm8379_vm12 = vcmp.eq.f32.partialorder %v12899_v61, inf  ;;  %vm8381_vm3 = vcmp.eq.f32.partialorder %v12899_v61, 0.0  ;;  %v8382_v39 = vand.u32 2147483648, %v12899_v61 }
 0xd72   :  { %v8347_v54 = vadd.f32 %v8346_v47, %v8345_v62  ;;  %vm8386_vm13 = vcmp.eq.f32.partialorder %v12909_v26, inf  ;;  %vm8388_vm14 = vcmp.eq.f32.partialorder %v12909_v26, 0.0  ;;  %v8389_v4 = vand.u32 2147483648, %v12909_v26  ;;  %v13387_v47 = vld [vmem:[#allocation54_spill] sm:$0xff] }
 0xd73   :  { %v8283_v42 = vadd.f32 %v8282_v53, %v8281_v38  ;;  %vm8393_vm15 = vcmp.eq.f32.partialorder %v12937_v18, inf  ;;  %v8396_v2 = vand.u32 2147483648, %v12937_v18  ;;  %v8403_v50 = vand.u32 2147483648, %v12946_v9  ;;  %v13388_v53 = vld [vmem:[#allocation18_spill] sm:$0xff] }
 0xd74   :  { %v10988_v1 = vpop.eup %10987  ;;  %v11039_v48 = vmov 1.0  }
 0xd75   :  { %v8355_v36 = vadd.f32 %v8347_v54, %v8283_v42  ;;  %v10990_v33 = vpop.eup %10989  ;;  %v8371_v30 = vmul.f32 %v10988_v1, %v12863_v34  ;;  %v13389_v54 = vld [vmem:[#allocation17_spill] sm:$0xff]  ;;  %v13392_v1 = vld [vmem:[#allocation55_spill] sm:$0xff] }
 0xd76   :  { %v8378_v51 = vmul.f32 %v10990_v33, %v12899_v61  ;;  %v13393_v33 = vld [vmem:[#allocation57_spill] sm:$0xff] }
 0xd77   :  { %10997 = vrsqrt.f32 %v8355_v36  ;;  %v10992_v45 = vpop.eup %10991  ;;  %v8373_v43 = vsel %vm8372_vm0, %v12863_v34, %v8371_v30  ;;  %vm8395_vm0 = vcmp.eq.f32.partialorder %v12937_v18, 0.0 }
 0xd78   :  { %v10994_v20 = vpop.eup %10993  ;;  %v8376_v13 = vsel %vm8374_vm11, %v8375_v29, %v8373_v43  ;;  %v8380_v55 = vsel %vm8379_vm12, %v12899_v61, %v8378_v51  ;;  %v8385_v57 = vmul.f32 %v10992_v45, %v12909_v26  ;;  %vm8400_vm11 = vcmp.eq.f32.partialorder %v12946_v9, inf  ;;  %v13394_v29 = vld [vmem:[#allocation56_spill] sm:$0xff] }
 0xd79   :  { %v10996_v3 = vpop.eup %10995  ;;  %v8383_v25 = vsel %vm8381_vm3, %v8382_v39, %v8380_v55  ;;  %v8392_v19 = vmul.f32 %v10994_v20, %v12937_v18  ;;  %v9350_v34 = vsel %vm9322_vm5, %v8376_v13, %v9349_v17  ;;  %vm8402_vm5 = vcmp.eq.f32.partialorder %v12946_v9, 0.0 }
 0xd7a   :  { %v8387_v44 = vsel %vm8386_vm13, %v12909_v26, %v8385_v57  ;;  %v8399_v23 = vmul.f32 %v10996_v3, %v12946_v9  ;;  %v9351_v61 = vsel %vm9324_vm6, %v8383_v25, %v9350_v34  ;;  %vm8407_vm6 = vcmp.eq.f32.partialorder %v8355_v36, inf  ;;  %v13396_v3 = vld [vmem:[#allocation59_spill] sm:$0xff] }
 0xd7b   :  { %v8390_v31 = vsel %vm8388_vm14, %v8389_v4, %v8387_v44  ;;  %v8394_v12 = vsel %vm8393_vm15, %v12937_v18, %v8392_v19  ;;  %v8410_v18 = vand.u32 2147483648, %v8355_v36  ;;  %vm8409_vm12 = vcmp.eq.f32.partialorder %v8355_v36, 0.0  ;;  %v13395_v4 = vld [vmem:[#allocation58_spill] sm:$0xff] }
 0xd7c   :  { %v8397_v11 = vsel %vm8395_vm0, %v8396_v2, %v8394_v12  ;;  %v8401_v58 = vsel %vm8400_vm11, %v12946_v9, %v8399_v23  ;;  %v9352_v21 = vsel %vm9326_vm7, %v8390_v31, %v9351_v61  ;;  %vm9337_vm3 = vcmask 261312  }
 0xd7d   :  { %v8404_v60 = vsel %vm8402_vm5, %v8403_v50, %v8401_v58  ;;  %v9353_v35 = vsel %vm9328_vm8, %v8397_v11, %v9352_v21  ;;  %vm9339_vm13 = vcmask 326912   ;;  %vm9359_vm7 = vcmask 392512  }
 0xd7e   :  { %v9354_v26 = vsel %vm9330_vm9, %v8404_v60, %v9353_v35 }
 0xd81   :  { %v10998_v0 = vpop.eup %10997 }
 0xd82   :  { %v8406_v16 = vmul.f32 %v10998_v0, %v8355_v36 }
 0xd84   :  { %v8408_v37 = vsel %vm8407_vm6, %v8355_v36, %v8406_v16 }
 0xd85   :  { %v8411_v6 = vsel %vm8409_vm12, %v8410_v18, %v8408_v37 }
 0xd86   :  { %v9355_v22 = vsel %vm9332_vm10, %v8411_v6, %v9354_v26 }
 0xd87   :  { %9356 = vrot.lane.b32.xlu1 %v9355_v22, %s11038_s22 }
 0xdde   :  { %v9335_v32 = vpop.permute.xlu0 %9334 }
 0xddf   :  { %9338 = vst.msk [vmem:[#allocation2] sm:$0xff] %vm9337_vm3, %v9335_v32  ;;  %v13398_v32 = vld [vmem:[#allocation19_spill] sm:$0xff] }
 0xde0   :  { %9340 = vst.msk [vmem:[#allocation2] sm:$0xff] %vm9339_vm13, %v11039_v48 }
 0xdf9   :  { %v9357_v24 = vpop.permute.xlu1 %9356 }
 0xdfa   :  { %9360 = vst.msk [vmem:[#allocation2] sm:$0xff] %vm9359_vm7, %v9357_v24 }
 0xe32   :  { %v8554_v63 = vpop.f32.mrb[114].mxu1 }
 0xe33   :  { %v8555_v59 = vadd.f32 %v8554_v63, %v13384_v7  ;;  %v10638_v9 = vpop.f32.mrb[115].mxu1 }
 0xe35   :  { %v8558_v49 = vmax.f32 %v8555_v59, 0.0 }
 0xe37   :  { %10648 = vmatmul.mubr.msk.f32.vlgmr.msra.gmra.mrb[116].mxu0 %vm148_vm1, %v8558_v49 }
 0xe38   :  { %10662 = vmatpush3.msra.mxu0 %v11005_v46  ;;  %10663 = vmatprep.mubr.msk.f32.mxu0 %vm11035_vm2, %v13379_v8 }
 0xe39   :  { %10930 = vmatprep.subr.bf16.mxu0 %v13381_v28 }
 0xf0a   :  { %v8628_v10 = vpop.f32.mrb[116].mxu0 }
 0xf0b   :  { %v8629_v62 = vadd.f32 %v8628_v10, %v13385_v15  ;;  %v10649_v5 = vpop.f32.mrb[117].mxu0 }
 0xf0d   :  { %v8632_v38 = vmax.f32 %v8629_v62, 0.0 }
 0xf0f   :  { %10659 = vmatmul.mubr.msk.f32.vlgmr.msra.gmra.mrb[116].mxu1 %vm148_vm1, %v8632_v38 }
 0xf10   :  { %10938 = vmatpush3.bf16.msra.mxu1 %v13386_v41  ;;  %10685 = vmatprep.mubr.msk.f32.mxu1 %vm11035_vm2, %v13379_v8 }
 0xf11   :  { %10939 = vmatprep.subr.bf16.mxu1 %v13381_v28 }
 0xf14   :  { %10941 = vmatpush3.bf16.msra.mxu1 %v13387_v47 }
 0xf15   :  { %10699 = vmatprep.subr.mxu1 %v13379_v8 }
 0xfe2   :  { %v8702_v27 = vpop.f32.mrb[116].mxu1 }
 0xfe3   :  { %v13014_v40 = vadd.f32 %v8702_v27, %v13388_v53  ;;  %v10660_v14 = vpop.f32.mrb[117].mxu1 }
 0xfe5   :  { %10664 = vmatmul.mubr.msk.f32.vlgmr.msra.gmra.mrb[118].mxu0 %vm1636_vm4, %v13014_v40 }
 0xfe6   :  { %10932 = vmatpush3.bf16.msra.mxu0 %v13389_v54  ;;  %10674 = vmatprep.mubr.msk.f32.mxu0 %vm11035_vm2, %v13379_v8 }
 0xfe7   :  { %10933 = vmatprep.subr.bf16.mxu0 %v13381_v28 }
 0xfea   :  { %10935 = vmatpush3.bf16.msra.mxu0 %v13390_v56 }
 0xfeb   :  { %10942 = vmatprep.subr.bf16.mxu0 %v13381_v28 }
0x10b8   :  { %v8775_v42 = vpop.f32.mrb[118].mxu0 }
0x10b9   :  { %v8776_v17 = vadd.f32 %v8775_v42, %v13391_v52  ;;  %v10665_v36 = vpop.f32.mrb[119].mxu0 }
0x10bb   :  { %10675 = vmatmul.mubr.msk.f32.vlgmr.msra.gmra.mrb[120].mxu0 %vm148_vm1, %v8776_v17 }
0x10bc   :  { %10944 = vmatpush3.bf16.msra.mxu0 %v13392_v1  ;;  %10696 = vmatprep.mubr.msk.f32.mxu0 %vm11035_vm2, %v13379_v8 }
0x10bd   :  { %10945 = vmatprep.subr.bf16.mxu0 %v13381_v28 }
0x10c0   :  { %10947 = vmatpush3.bf16.msra.mxu0 %v13393_v33 }
0x10c1   :  { %10954 = vmatprep.subr.bf16.mxu0 %v13381_v28 }
0x118e   :  { %v8848_v30 = vpop.f32.mrb[120].mxu0 }
0x118f   :  { %v8849_v51 = vadd.f32 %v8848_v30, %v13394_v29  ;;  %v10676_v39 = vpop.f32.mrb[121].mxu0 }
0x1191   :  { %v8852_v45 = vmax.f32 %v8849_v51, 0.0 }
0x1193   :  { %10686 = vmatmul.mubr.msk.f32.vlgmr.msra.gmra.mrb[118].mxu1 %vm148_vm1, %v8852_v45 }
0x1194   :  { %10700 = vmatpush3.msra.mxu1 %v11005_v46  ;;  %10701 = vmatprep.mubr.msk.f32.mxu1 %vm11035_vm2, %v13379_v8 }
0x1195   :  { %10948 = vmatprep.subr.bf16.mxu1 %v13381_v28 }
0x1266   :  { %v8922_v43 = vpop.f32.mrb[118].mxu1 }
0x1267   :  { %v8923_v20 = vadd.f32 %v8922_v43, %v13395_v4  ;;  %v10687_v13 = vpop.f32.mrb[119].mxu1 }
0x1269   :  { %v8926_v55 = vmax.f32 %v8923_v20, 0.0 }
0x126b   :  { %10697 = vmatmul.mubr.msk.f32.vlgmr.msra.gmra.mrb[122].mxu0 %vm148_vm1, %v8926_v55 }
0x126c   :  { %10956 = vmatpush3.bf16.msra.mxu0 %v13386_v41  ;;  %10723 = vmatprep.mubr.msk.f32.mxu0 %vm11035_vm2, %v13379_v8 }
0x126d   :  { %10957 = vmatprep.subr.bf16.mxu0 %v13381_v28 }
0x1270   :  { %10959 = vmatpush3.bf16.msra.mxu0 %v13387_v47 }
0x133e   :  { %v8996_v57 = vpop.f32.mrb[122].mxu0 }
0x133f   :  { %v8997_v25 = vadd.f32 %v8996_v57, %v13396_v3  ;;  %v10698_v19 = vpop.f32.mrb[123].mxu0 }
0x1341   :  { %v9000_v34 = vmul.f32 %v8997_v25, %v13014_v40 }
0x1343   :  { %v9001_v44 = vadd.f32 %v9000_v34, %v8997_v25 }
0x1345   :  { %10702 = vmatmul.mubr.msk.f32.vlgmr.msra.gmra.mrb[120].mxu1 %vm1636_vm4, %v9001_v44  ;;  %vm9364_vm4 = vcmask 458112  }
0x1346   :  { %10950 = vmatpush3.bf16.msra.mxu1 %v13389_v54  ;;  %10712 = vmatprep.mubr.msk.f32.mxu1 %vm11035_vm2, %v13379_v8 }
0x1347   :  { %10951 = vmatprep.subr.bf16.mxu1 %v13381_v28 }
0x134a   :  { %10953 = vmatpush3.bf16.msra.mxu1 %v13390_v56 }
0x134b   :  { %10960 = vmatprep.subr.bf16.mxu1 %v13381_v28 }
0x1418   :  { %v9071_v2 = vpop.f32.mrb[120].mxu1 }
0x1419   :  { %v9072_v23 = vadd.f32 %v9071_v2, %v13391_v52  ;;  %v10703_v61 = vpop.f32.mrb[121].mxu1 }
0x141b   :  { %10713 = vmatmul.mubr.msk.f32.vlgmr.msra.gmra.mrb[122].mxu1 %vm148_vm1, %v9072_v23 }
0x141c   :  { %10962 = vmatpush3.bf16.msra.mxu1 %v13392_v1  ;;  %10734 = vmatprep.mubr.msk.f32.mxu1 %vm11035_vm2, %v13379_v8  ;;  %v13397_v8 = vld [vmem:[#allocation5_spill] sm:$0xff] }
0x141d   :  { %10963 = vmatprep.subr.bf16.mxu1 %v13381_v28  ;;  %9361 = vrot.lane.b32.xlu0 %v13397_v8, %s11040_s3 }
0x1420   :  { %10965 = vmatpush3.bf16.msra.mxu1 %v13393_v33 }
0x148f   :  { %v9362_v28 = vpop.permute.xlu0 %9361 }
0x1490   :  { %9365 = vst.msk [vmem:[#allocation2] sm:$0xff] %vm9364_vm4, %v9362_v28 }
0x14ee   :  { %v9144_v31 = vpop.f32.mrb[122].mxu1 }
0x14ef   :  { %v9145_v12 = vadd.f32 %v9144_v31, %v13394_v29  ;;  %v10714_v50 = vpop.f32.mrb[123].mxu1 }
0x14f1   :  { %v9148_v11 = vmax.f32 %v9145_v12, 0.0 }
0x14f3   :  { %10724 = vmatmul.mubr.msk.f32.vlgmr.msra.gmra.mrb[124].mxu0 %vm148_vm1, %v9148_v11 }
0x15c6   :  { %v9218_v58 = vpop.f32.mrb[124].mxu0 }
0x15c7   :  { %v9219_v21 = vadd.f32 %v9218_v58, %v13395_v4  ;;  %v10725_v60 = vpop.f32.mrb[125].mxu0 }
0x15c9   :  { %v9222_v35 = vmax.f32 %v9219_v21, 0.0 }
0x15cb   :  { %10735 = vmatmul.mubr.msk.f32.vlgmr.msra.gmra.mrb[124].mxu1 %vm148_vm1, %v9222_v35  ;;  %vm9370_vm1 = vcmask 523712  }
0x169e   :  { %v9292_v0 = vpop.f32.mrb[124].mxu1 }
0x169f   :  { %v9293_v26 = vadd.f32 %v9292_v0, %v13396_v3  ;;  %v10736_v16 = vpop.f32.mrb[125].mxu1 }
0x16a1   :  { %v9296_v18 = vmul.f32 %v9293_v26, %v9001_v44 }
0x16a3   :  { %v9297_v37 = vadd.f32 %v9296_v18, %v13014_v40 }
0x16a5   :  { %v9299_v6 = vsub.f32 0.0, %v9297_v37  ;;  %v9298_v48 = vsub.f32 %v13398_v32, %v9297_v37 }
0x16a7   :  { %v9300_v22 = vmul.f32 1.442695, %v9299_v6 }
0x16a9   :  { %10999 = vpow2.f32 %v9300_v22 }
0x16b3   :  { %v11000_v24 = vpop.eup %10999 }
0x16b4   :  { %v9302_v63 = vmul.f32 %v11000_v24, %v9298_v48 }
0x16b6   :  { %9367 = vrot.lane.b32.xlu1 %v9302_v63, %s11041_s25 }
0x1728   :  { %v9368_v7 = vpop.permute.xlu1 %9367 }
0x1729   :  { %9371 = vst.msk [vmem:[#allocation2] sm:$0xff] %vm9370_vm1, %v9368_v7 }
0x172a   :  { %11017 = shalt.err (!%p11014_p4)
}
0x172b   :  { %s11018_s0 = scalar_lea.hbm %s13086_s6, 128 }
0x172c   :  { %p11019_p5 = scmp.ne.s32.totalorder %s13086_s6, %s11018_s0  ;;  %p11022_p6 = scmp.lt.u32.totalorder %s11018_s0, %s13086_s6 }
0x172e   :  { %p11024_p7 = pnand %p11022_p6, %p11019_p5 }
0x1730   :  { %11027 = shalt.err (!%p11024_p7)
}
0x1731   :  { %9381 = dma.vmem_to_hbm [thread:$0]  %s9379_s27, 128, %s13086_s6, [#allocation3]  }
0x1732   :  { %11028 = dma.done.wait [#allocation3], 128  }
0x1733   :  { %11029 = vsyncadd [#allocation3], 4294967168 }
0x1734   :  { %9385 = vsyncpa [#allocation3], 1 }

</bundles_post_ra>
